<compile_context>
chip_gen: v5e
topology: v5e:2x2
jax: 0.10.0
libtpu: 0.0.40
codegen_flags: <defaults>
</compile_context>

<pallas_src>
from functools import partial

import jax
import jax.numpy as jnp
from jax import lax
from jax.experimental import pallas as pl
from jax.experimental.pallas import tpu as pltpu

BP = 8     # batch padded to sublane granularity (8)
HP = 128   # per-gate lane padding (vreg lane width)


def encoder_kernel(tok_ref, emb_ref, wih_ref, bih_ref, whh_ref, bhh_ref, out_ref):
    """Bidirectional GRU over the whole (padded) batch in one invocation.

    tok_ref : (T*BP, 1) int32   time-major padded token ids (row t*BP + b)
    emb_ref : (V, E)            embedding table
    wih_ref : (E, 6*HP)         [fwd r|z|n | bwd r|z|n], each gate padded to HP lanes
    bih_ref : (1, 6*HP)
    whh_ref : (HP, 6*HP)        rows >= H are zero
    bhh_ref : (1, 6*HP)
    out_ref : (T*BP, 2*HP)      lanes [0,HP) = fwd hidden, [HP,2HP) = bwd hidden
    """
    TBP = tok_ref.shape[0]
    V, _ = emb_ref.shape
    T = TBP // BP
    HP3 = 3 * HP
    f32 = jnp.float32

    # ---- fused (Embedding @ W_ih + b_ih) table for BOTH directions: one matmul ----
    table = jnp.dot(emb_ref[...], wih_ref[...],
                    preferred_element_type=f32) + bih_ref[...]          # (V, 6*HP)

    # ---- in-kernel embedding "gather" as a one-hot matmul (MXU, no gather op) ----
    tok = tok_ref[...]                                                  # (T*BP, 1) int32
    vocab = lax.broadcasted_iota(jnp.int32, (TBP, V), 1)                # (T*BP, V)
    onehot = jnp.where(tok == vocab, 1.0, 0.0).astype(f32)              # (T*BP, V)
    gi = jnp.dot(onehot, table, preferred_element_type=f32)             # (T*BP, 6*HP), incl. b_ih

    whh = whh_ref[...]                                                  # (HP, 6*HP)
    bhh = jnp.broadcast_to(bhh_ref[...], (2 * BP, 6 * HP))              # hoisted broadcast

    def gates(gi_blk, gh_blk, h_prev):
        # gi_blk/gh_blk: (BP, 3*HP), gate order [r | z | n] (PyTorch convention).
        # All slices below are 128-lane aligned -> whole-vreg picks, no rotates.
        r = jax.nn.sigmoid(gi_blk[:, 0:HP] + gh_blk[:, 0:HP])
        z = jax.nn.sigmoid(gi_blk[:, HP:2 * HP] + gh_blk[:, HP:2 * HP])
        n = jnp.tanh(gi_blk[:, 2 * HP:3 * HP] + r * gh_blk[:, 2 * HP:3 * HP])
        return (1.0 - z) * n + z * h_prev

    # rows [0, BP) = forward state, rows [BP, 2*BP) = backward state
    h_all = jnp.zeros((2 * BP, HP), f32)
    out_f = [None] * T
    out_b = [None] * T

    # Fused fwd/bwd recurrence, fully unrolled (T static & small): one stacked
    # (2*BP, HP) @ (HP, 6*HP) matmul per step feeds both directions' gates.
    for i in range(T):
        tf = i
        tb = T - 1 - i
        gh = jnp.dot(h_all, whh, preferred_element_type=f32) + bhh      # (2*BP, 6*HP)
        h_f = gates(gi[tf * BP:(tf + 1) * BP, 0:HP3],
                    gh[0:BP, 0:HP3], h_all[0:BP])
        h_b = gates(gi[tb * BP:(tb + 1) * BP, HP3:2 * HP3],
                    gh[BP:2 * BP, HP3:2 * HP3], h_all[BP:2 * BP])
        out_f[tf] = h_f
        out_b[tb] = h_b
        h_all = jnp.concatenate([h_f, h_b], axis=0)

    # Single bulk, lane-dense (256-lane) store; no per-step masked stores.
    out_ref[...] = jnp.concatenate(
        [jnp.concatenate(out_f, axis=0), jnp.concatenate(out_b, axis=0)], axis=1)


def _pad_gates(w, rows_pad, H):
    """(rows, 3H) -> (rows_pad, 3*HP): gate g goes to lanes [g*HP, g*HP + H)."""
    rows = w.shape[0]
    out = jnp.zeros((rows_pad, 3 * HP), w.dtype)
    for g in range(3):
        out = out.at[:rows, g * HP:g * HP + H].set(w[:, g * H:(g + 1) * H])
    return out


def prepare_params(p):
    """One-time fusion/padding of PyTorch-layout params into kernel layout."""
    E = p["embedding"].shape[1]
    H = p["whh_f_t"].shape[0]
    wih = jnp.concatenate([_pad_gates(p["wih_f_t"], E, H),
                           _pad_gates(p["wih_b_t"], E, H)], axis=1)      # (E, 6*HP)
    bih = jnp.concatenate([_pad_gates(p["bih_f"], 1, H),
                           _pad_gates(p["bih_b"], 1, H)], axis=1)        # (1, 6*HP)
    whh = jnp.concatenate([_pad_gates(p["whh_f_t"], HP, H),
                           _pad_gates(p["whh_b_t"], HP, H)], axis=1)     # (HP, 6*HP)
    bhh = jnp.concatenate([_pad_gates(p["bhh_f"], 1, H),
                           _pad_gates(p["bhh_b"], 1, H)], axis=1)        # (1, 6*HP)
    return {"embedding": p["embedding"], "wih": wih, "bih": bih,
            "whh": whh, "bhh": bhh}


@partial(jax.jit, static_argnames=("hidden_dim",))
def encoder_forward(token_seq, kp, *, hidden_dim):
    H = hidden_dim
    B, T = token_seq.shape
    V, E = kp["embedding"].shape

    # Tiny int32 index prep (fuses under jit): time-major, batch padded to BP.
    tok_tm = (jnp.zeros((T, BP), jnp.int32)
              .at[:, :B].set(token_seq.T.astype(jnp.int32))
              .reshape(T * BP, 1))

    full2 = lambda i: (0, 0)
    out2d = pl.pallas_call(
        encoder_kernel,
        out_shape=jax.ShapeDtypeStruct((T * BP, 2 * HP), jnp.float32),
        grid_spec=pltpu.PrefetchScalarGridSpec(
            num_scalar_prefetch=0,
            grid=(1,),
            in_specs=[
                pl.BlockSpec((T * BP, 1), full2),      # token ids (time-major, padded)
                pl.BlockSpec((V, E), full2),           # embedding table
                pl.BlockSpec((E, 6 * HP), full2),      # fused W_ih (both dirs, gate-padded)
                pl.BlockSpec((1, 6 * HP), full2),      # fused b_ih
                pl.BlockSpec((HP, 6 * HP), full2),     # fused W_hh (both dirs, gate-padded)
                pl.BlockSpec((1, 6 * HP), full2),      # fused b_hh
            ],
            out_specs=pl.BlockSpec((T * BP, 2 * HP), full2),
        ),
        compiler_params=pltpu.CompilerParams(
            dimension_semantics=("arbitrary",)),
    )(tok_tm, kp["embedding"], kp["wih"], kp["bih"], kp["whh"], kp["bhh"])

    # Un-pad: (T*BP, 2*HP) -> (T, BP, 2, HP) -> keep real batch rows & first H lanes.
    out4 = out2d.reshape(T, BP, 2, HP)[:, :B, :, :H]                    # (T, B, 2, H)
    outputs = jnp.transpose(out4.reshape(T, B, 2 * H), (1, 0, 2))       # (B, T, 2H)
    # Final hidden states: fwd @ t = T-1, bwd @ t = 0 (== cat(hidden[0], hidden[1])).
    hidden_cat = jnp.concatenate([out4[T - 1, :, 0, :], out4[0, :, 1, :]], axis=-1)
    return hidden_cat, outputs


def encoder_ref(token_seq, p):
    """Pure-JAX reference mirroring the PyTorch forward."""
    emb = p["embedding"][token_seq]                 # (B, T, E)
    B, T, E = emb.shape
    H = p["whh_f_t"].shape[0]

    def cell(h, x, wih, whh, bih, bhh):
        gi = x @ wih + bih[0]
        gh = h @ whh + bhh[0]
        r = jax.nn.sigmoid(gi[:, :H] + gh[:, :H])
        z = jax.nn.sigmoid(gi[:, H:2 * H] + gh[:, H:2 * H])
        n = jnp.tanh(gi[:, 2 * H:] + r * gh[:, 2 * H:])
        return (1.0 - z) * n + z * h

    x_tm = jnp.swapaxes(emb, 0, 1)                  # (T, B, E)
    h0 = jnp.zeros((B, H), jnp.float32)

    def fscan(h, x):
        hn = cell(h, x, p["wih_f_t"], p["whh_f_t"], p["bih_f"], p["bhh_f"])
        return hn, hn

    def bscan(h, x):
        hn = cell(h, x, p["wih_b_t"], p["whh_b_t"], p["bih_b"], p["bhh_b"])
        return hn, hn

    h_f, out_f = lax.scan(fscan, h0, x_tm)
    h_b, out_b_rev = lax.scan(bscan, h0, x_tm[::-1])
    out_b = out_b_rev[::-1]

    outputs = jnp.concatenate(
        [jnp.swapaxes(out_f, 0, 1), jnp.swapaxes(out_b, 0, 1)], axis=-1)
    hidden_cat = jnp.concatenate([h_f, h_b], axis=-1)
    return hidden_cat, outputs


if __name__ == "__main__":
    # module hyperparams: input_dim (vocab) V, emb_dim E, hidden_dim H (bidirectional -> 2H)
    V, E, H = 40, 16, 16
    H2, H3 = 2 * H, 3 * H
    B, T = 2, 8

    key = jax.random.PRNGKey(0)
    ks = jax.random.split(key, 12)
    sc = 0.1
    params = {
        "embedding": jax.random.normal(ks[0], (V, E), jnp.float32) * sc,
        # forward direction: weight_ih_l0^T (E,3H), weight_hh_l0^T (H,3H), biases (1,3H)
        "wih_f_t": jax.random.normal(ks[1], (E, H3), jnp.float32) * sc,
        "whh_f_t": jax.random.normal(ks[2], (H, H3), jnp.float32) * sc,
        "bih_f": jax.random.normal(ks[3], (1, H3), jnp.float32) * sc,
        "bhh_f": jax.random.normal(ks[4], (1, H3), jnp.float32) * sc,
        # reverse direction: weight_ih_l0_reverse^T etc.
        "wih_b_t": jax.random.normal(ks[5], (E, H3), jnp.float32) * sc,
        "whh_b_t": jax.random.normal(ks[6], (H, H3), jnp.float32) * sc,
        "bih_b": jax.random.normal(ks[7], (1, H3), jnp.float32) * sc,
        "bhh_b": jax.random.normal(ks[8], (1, H3), jnp.float32) * sc,
    }
    token_seq = jax.random.randint(ks[9], (B, T), 0, V, dtype=jnp.int32)

    kp = prepare_params(params)                       # one-time weight fusion/padding
    hidden_cat, outputs = encoder_forward(token_seq, kp, hidden_dim=H)
    jax.block_until_ready((hidden_cat, outputs))

    ref_hidden, ref_outputs = encoder_ref(token_seq, params)
    assert hidden_cat.shape == (B, H2) and outputs.shape == (B, T, H2)
    assert jnp.allclose(hidden_cat, ref_hidden, rtol=1e-4, atol=1e-4)
    assert jnp.allclose(outputs, ref_outputs, rtol=1e-4, atol=1e-4)

    print("KERNEL_OK")
</pallas_src>

<mosaic_0001>
module attributes {stable_mosaic.version = 11 : i64} {
  func.func @encoder_kernel(%arg0: i32, %arg1: memref<64x1xi32, #tpu.memory_space<vmem>>, %arg2: memref<40x16xf32, #tpu.memory_space<vmem>>, %arg3: memref<16x768xf32, #tpu.memory_space<vmem>>, %arg4: memref<1x768xf32, #tpu.memory_space<vmem>>, %arg5: memref<128x768xf32, #tpu.memory_space<vmem>>, %arg6: memref<1x768xf32, #tpu.memory_space<vmem>>, %arg7: memref<64x256xf32, #tpu.memory_space<vmem>>) attributes {dimension_semantics = [#tpu.dimension_semantics<arbitrary>], iteration_bounds = array<i64: 1>, scalar_prefetch = 0 : i64, scratch_operands = 0 : i64, tpu.core_type = #tpu.core_type<tc>, window_params = [{pipeline_mode = #tpu.pipeline_mode<synchronous>, transform_indices = @transform_0, window_bounds = array<i64: 64, 1>}, {pipeline_mode = #tpu.pipeline_mode<synchronous>, transform_indices = @transform_1, window_bounds = array<i64: 40, 16>}, {pipeline_mode = #tpu.pipeline_mode<synchronous>, transform_indices = @transform_2, window_bounds = array<i64: 16, 768>}, {pipeline_mode = #tpu.pipeline_mode<synchronous>, transform_indices = @transform_3, window_bounds = array<i64: 1, 768>}, {pipeline_mode = #tpu.pipeline_mode<synchronous>, transform_indices = @transform_4, window_bounds = array<i64: 128, 768>}, {pipeline_mode = #tpu.pipeline_mode<synchronous>, transform_indices = @transform_5, window_bounds = array<i64: 1, 768>}, {pipeline_mode = #tpu.pipeline_mode<synchronous>, transform_indices = @transform_6, window_bounds = array<i64: 64, 256>}]} {
    %c0 = arith.constant 0 : index
    %c0_0 = arith.constant 0 : index
    %0 = vector.load %arg2[%c0, %c0_0] : memref<40x16xf32, #tpu.memory_space<vmem>>, vector<40x16xf32>
    %c0_1 = arith.constant 0 : index
    %c0_2 = arith.constant 0 : index
    %1 = vector.load %arg3[%c0_1, %c0_2] : memref<16x768xf32, #tpu.memory_space<vmem>>, vector<16x768xf32>
    %cst = arith.constant dense<0.000000e+00> : vector<40x768xf32>
    %2 = tpu.matmul %0, %1, %cst {dimension_numbers = #tpu.dot_dimension_numbers<[1], [0], [0], [1], [0, 0, 1, 1], [], []>} : vector<40x16xf32>, vector<16x768xf32>, vector<40x768xf32> -> vector<40x768xf32>
    %c0_3 = arith.constant 0 : index
    %c0_4 = arith.constant 0 : index
    %3 = vector.load %arg4[%c0_3, %c0_4] : memref<1x768xf32, #tpu.memory_space<vmem>>, vector<1x768xf32>
    %4 = vector.broadcast %3 : vector<1x768xf32> to vector<40x768xf32>
    %5 = arith.addf %2, %4 : vector<40x768xf32>
    %c0_5 = arith.constant 0 : index
    %c0_6 = arith.constant 0 : index
    %6 = vector.load %arg1[%c0_5, %c0_6] : memref<64x1xi32, #tpu.memory_space<vmem>>, vector<64x1xi32>
    %7 = tpu.iota {dimensions = array<i32: 1>} : vector<64x40xi32>
    %8 = vector.broadcast %6 : vector<64x1xi32> to vector<64x40xi32>
    %9 = arith.cmpi eq, %8, %7 : vector<64x40xi32>
    %cst_7 = arith.constant 1.000000e+00 : f32
    %cst_8 = arith.constant 0.000000e+00 : f32
    %10 = vector.broadcast %cst_7 : f32 to vector<64x40xf32>
    %11 = vector.broadcast %cst_8 : f32 to vector<64x40xf32>
    %12 = arith.select %9, %10, %11 : vector<64x40xi1>, vector<64x40xf32>
    %cst_9 = arith.constant dense<0.000000e+00> : vector<64x768xf32>
    %13 = tpu.matmul %12, %5, %cst_9 {dimension_numbers = #tpu.dot_dimension_numbers<[1], [0], [0], [1], [0, 0, 1, 1], [], []>} : vector<64x40xf32>, vector<40x768xf32>, vector<64x768xf32> -> vector<64x768xf32>
    %c0_10 = arith.constant 0 : index
    %c0_11 = arith.constant 0 : index
    %14 = vector.load %arg5[%c0_10, %c0_11] : memref<128x768xf32, #tpu.memory_space<vmem>>, vector<128x768xf32>
    %c0_12 = arith.constant 0 : index
    %c0_13 = arith.constant 0 : index
    %15 = vector.load %arg6[%c0_12, %c0_13] : memref<1x768xf32, #tpu.memory_space<vmem>>, vector<1x768xf32>
    %16 = vector.shape_cast %15 : vector<1x768xf32> to vector<1x768xf32>
    %17 = vector.broadcast %16 : vector<1x768xf32> to vector<16x768xf32>
    %cst_14 = arith.constant 0.000000e+00 : f32
    %18 = vector.broadcast %cst_14 : f32 to vector<16x128xf32>
    %cst_15 = arith.constant dense<0.000000e+00> : vector<16x768xf32>
    %19 = tpu.matmul %18, %14, %cst_15 {dimension_numbers = #tpu.dot_dimension_numbers<[1], [0], [0], [1], [0, 0, 1, 1], [], []>} : vector<16x128xf32>, vector<128x768xf32>, vector<16x768xf32> -> vector<16x768xf32>
    %20 = arith.addf %19, %17 : vector<16x768xf32>
    %21 = vector.extract_strided_slice %13 {offsets = [0, 0], sizes = [8, 384], strides = [1, 1]} : vector<64x768xf32> to vector<8x384xf32>
    %22 = vector.extract_strided_slice %20 {offsets = [0, 0], sizes = [8, 384], strides = [1, 1]} : vector<16x768xf32> to vector<8x384xf32>
    %23 = vector.extract_strided_slice %18 {offsets = [0, 0], sizes = [8, 128], strides = [1, 1]} : vector<16x128xf32> to vector<8x128xf32>
    %24 = vector.extract_strided_slice %21 {offsets = [0, 0], sizes = [8, 128], strides = [1, 1]} : vector<8x384xf32> to vector<8x128xf32>
    %25 = vector.extract_strided_slice %22 {offsets = [0, 0], sizes = [8, 128], strides = [1, 1]} : vector<8x384xf32> to vector<8x128xf32>
    %26 = arith.addf %24, %25 : vector<8x128xf32>
    %27 = arith.negf %26 : vector<8x128xf32>
    %28 = math.exp %27 : vector<8x128xf32>
    %cst_16 = arith.constant 1.000000e+00 : f32
    %29 = vector.broadcast %cst_16 : f32 to vector<8x128xf32>
    %30 = arith.addf %29, %28 : vector<8x128xf32>
    %31 = arith.divf %29, %30 : vector<8x128xf32>
    %32 = vector.extract_strided_slice %21 {offsets = [0, 128], sizes = [8, 128], strides = [1, 1]} : vector<8x384xf32> to vector<8x128xf32>
    %33 = vector.extract_strided_slice %22 {offsets = [0, 128], sizes = [8, 128], strides = [1, 1]} : vector<8x384xf32> to vector<8x128xf32>
    %34 = arith.addf %32, %33 : vector<8x128xf32>
    %35 = arith.negf %34 : vector<8x128xf32>
    %36 = math.exp %35 : vector<8x128xf32>
    %cst_17 = arith.constant 1.000000e+00 : f32
    %37 = vector.broadcast %cst_17 : f32 to vector<8x128xf32>
    %38 = arith.addf %37, %36 : vector<8x128xf32>
    %39 = arith.divf %37, %38 : vector<8x128xf32>
    %40 = vector.extract_strided_slice %21 {offsets = [0, 256], sizes = [8, 128], strides = [1, 1]} : vector<8x384xf32> to vector<8x128xf32>
    %41 = vector.extract_strided_slice %22 {offsets = [0, 256], sizes = [8, 128], strides = [1, 1]} : vector<8x384xf32> to vector<8x128xf32>
    %42 = arith.mulf %31, %41 : vector<8x128xf32>
    %43 = arith.addf %40, %42 : vector<8x128xf32>
    %44 = math.tanh %43 : vector<8x128xf32>
    %cst_18 = arith.constant 1.000000e+00 : f32
    %45 = vector.broadcast %cst_18 : f32 to vector<8x128xf32>
    %46 = arith.subf %45, %39 : vector<8x128xf32>
    %47 = arith.mulf %46, %44 : vector<8x128xf32>
    %48 = arith.mulf %39, %23 : vector<8x128xf32>
    %49 = arith.addf %47, %48 : vector<8x128xf32>
    %50 = vector.extract_strided_slice %13 {offsets = [56, 384], sizes = [8, 384], strides = [1, 1]} : vector<64x768xf32> to vector<8x384xf32>
    %51 = vector.extract_strided_slice %20 {offsets = [8, 384], sizes = [8, 384], strides = [1, 1]} : vector<16x768xf32> to vector<8x384xf32>
    %52 = vector.extract_strided_slice %18 {offsets = [8, 0], sizes = [8, 128], strides = [1, 1]} : vector<16x128xf32> to vector<8x128xf32>
    %53 = vector.extract_strided_slice %50 {offsets = [0, 0], sizes = [8, 128], strides = [1, 1]} : vector<8x384xf32> to vector<8x128xf32>
    %54 = vector.extract_strided_slice %51 {offsets = [0, 0], sizes = [8, 128], strides = [1, 1]} : vector<8x384xf32> to vector<8x128xf32>
    %55 = arith.addf %53, %54 : vector<8x128xf32>
    %56 = arith.negf %55 : vector<8x128xf32>
    %57 = math.exp %56 : vector<8x128xf32>
    %cst_19 = arith.constant 1.000000e+00 : f32
    %58 = vector.broadcast %cst_19 : f32 to vector<8x128xf32>
    %59 = arith.addf %58, %57 : vector<8x128xf32>
    %60 = arith.divf %58, %59 : vector<8x128xf32>
    %61 = vector.extract_strided_slice %50 {offsets = [0, 128], sizes = [8, 128], strides = [1, 1]} : vector<8x384xf32> to vector<8x128xf32>
    %62 = vector.extract_strided_slice %51 {offsets = [0, 128], sizes = [8, 128], strides = [1, 1]} : vector<8x384xf32> to vector<8x128xf32>
    %63 = arith.addf %61, %62 : vector<8x128xf32>
    %64 = arith.negf %63 : vector<8x128xf32>
    %65 = math.exp %64 : vector<8x128xf32>
    %cst_20 = arith.constant 1.000000e+00 : f32
    %66 = vector.broadcast %cst_20 : f32 to vector<8x128xf32>
    %67 = arith.addf %66, %65 : vector<8x128xf32>
    %68 = arith.divf %66, %67 : vector<8x128xf32>
    %69 = vector.extract_strided_slice %50 {offsets = [0, 256], sizes = [8, 128], strides = [1, 1]} : vector<8x384xf32> to vector<8x128xf32>
    %70 = vector.extract_strided_slice %51 {offsets = [0, 256], sizes = [8, 128], strides = [1, 1]} : vector<8x384xf32> to vector<8x128xf32>
    %71 = arith.mulf %60, %70 : vector<8x128xf32>
    %72 = arith.addf %69, %71 : vector<8x128xf32>
    %73 = math.tanh %72 : vector<8x128xf32>
    %cst_21 = arith.constant 1.000000e+00 : f32
    %74 = vector.broadcast %cst_21 : f32 to vector<8x128xf32>
    %75 = arith.subf %74, %68 : vector<8x128xf32>
    %76 = arith.mulf %75, %73 : vector<8x128xf32>
    %77 = arith.mulf %68, %52 : vector<8x128xf32>
    %78 = arith.addf %76, %77 : vector<8x128xf32>
    %79 = tpu.concatenate %49, %78 in 0 : vector<8x128xf32>, vector<8x128xf32> -> vector<16x128xf32>
    %cst_22 = arith.constant dense<0.000000e+00> : vector<16x768xf32>
    %80 = tpu.matmul %79, %14, %cst_22 {dimension_numbers = #tpu.dot_dimension_numbers<[1], [0], [0], [1], [0, 0, 1, 1], [], []>} : vector<16x128xf32>, vector<128x768xf32>, vector<16x768xf32> -> vector<16x768xf32>
    %81 = arith.addf %80, %17 : vector<16x768xf32>
    %82 = vector.extract_strided_slice %13 {offsets = [8, 0], sizes = [8, 384], strides = [1, 1]} : vector<64x768xf32> to vector<8x384xf32>
    %83 = vector.extract_strided_slice %81 {offsets = [0, 0], sizes = [8, 384], strides = [1, 1]} : vector<16x768xf32> to vector<8x384xf32>
    %84 = vector.extract_strided_slice %79 {offsets = [0, 0], sizes = [8, 128], strides = [1, 1]} : vector<16x128xf32> to vector<8x128xf32>
    %85 = vector.extract_strided_slice %82 {offsets = [0, 0], sizes = [8, 128], strides = [1, 1]} : vector<8x384xf32> to vector<8x128xf32>
    %86 = vector.extract_strided_slice %83 {offsets = [0, 0], sizes = [8, 128], strides = [1, 1]} : vector<8x384xf32> to vector<8x128xf32>
    %87 = arith.addf %85, %86 : vector<8x128xf32>
    %88 = arith.negf %87 : vector<8x128xf32>
    %89 = math.exp %88 : vector<8x128xf32>
    %cst_23 = arith.constant 1.000000e+00 : f32
    %90 = vector.broadcast %cst_23 : f32 to vector<8x128xf32>
    %91 = arith.addf %90, %89 : vector<8x128xf32>
    %92 = arith.divf %90, %91 : vector<8x128xf32>
    %93 = vector.extract_strided_slice %82 {offsets = [0, 128], sizes = [8, 128], strides = [1, 1]} : vector<8x384xf32> to vector<8x128xf32>
    %94 = vector.extract_strided_slice %83 {offsets = [0, 128], sizes = [8, 128], strides = [1, 1]} : vector<8x384xf32> to vector<8x128xf32>
    %95 = arith.addf %93, %94 : vector<8x128xf32>
    %96 = arith.negf %95 : vector<8x128xf32>
    %97 = math.exp %96 : vector<8x128xf32>
    %cst_24 = arith.constant 1.000000e+00 : f32
    %98 = vector.broadcast %cst_24 : f32 to vector<8x128xf32>
    %99 = arith.addf %98, %97 : vector<8x128xf32>
    %100 = arith.divf %98, %99 : vector<8x128xf32>
    %101 = vector.extract_strided_slice %82 {offsets = [0, 256], sizes = [8, 128], strides = [1, 1]} : vector<8x384xf32> to vector<8x128xf32>
    %102 = vector.extract_strided_slice %83 {offsets = [0, 256], sizes = [8, 128], strides = [1, 1]} : vector<8x384xf32> to vector<8x128xf32>
    %103 = arith.mulf %92, %102 : vector<8x128xf32>
    %104 = arith.addf %101, %103 : vector<8x128xf32>
    %105 = math.tanh %104 : vector<8x128xf32>
    %cst_25 = arith.constant 1.000000e+00 : f32
    %106 = vector.broadcast %cst_25 : f32 to vector<8x128xf32>
    %107 = arith.subf %106, %100 : vector<8x128xf32>
    %108 = arith.mulf %107, %105 : vector<8x128xf32>
    %109 = arith.mulf %100, %84 : vector<8x128xf32>
    %110 = arith.addf %108, %109 : vector<8x128xf32>
    %111 = vector.extract_strided_slice %13 {offsets = [48, 384], sizes = [8, 384], strides = [1, 1]} : vector<64x768xf32> to vector<8x384xf32>
    %112 = vector.extract_strided_slice %81 {offsets = [8, 384], sizes = [8, 384], strides = [1, 1]} : vector<16x768xf32> to vector<8x384xf32>
    %113 = vector.extract_strided_slice %79 {offsets = [8, 0], sizes = [8, 128], strides = [1, 1]} : vector<16x128xf32> to vector<8x128xf32>
    %114 = vector.extract_strided_slice %111 {offsets = [0, 0], sizes = [8, 128], strides = [1, 1]} : vector<8x384xf32> to vector<8x128xf32>
    %115 = vector.extract_strided_slice %112 {offsets = [0, 0], sizes = [8, 128], strides = [1, 1]} : vector<8x384xf32> to vector<8x128xf32>
    %116 = arith.addf %114, %115 : vector<8x128xf32>
    %117 = arith.negf %116 : vector<8x128xf32>
    %118 = math.exp %117 : vector<8x128xf32>
    %cst_26 = arith.constant 1.000000e+00 : f32
    %119 = vector.broadcast %cst_26 : f32 to vector<8x128xf32>
    %120 = arith.addf %119, %118 : vector<8x128xf32>
    %121 = arith.divf %119, %120 : vector<8x128xf32>
    %122 = vector.extract_strided_slice %111 {offsets = [0, 128], sizes = [8, 128], strides = [1, 1]} : vector<8x384xf32> to vector<8x128xf32>
    %123 = vector.extract_strided_slice %112 {offsets = [0, 128], sizes = [8, 128], strides = [1, 1]} : vector<8x384xf32> to vector<8x128xf32>
    %124 = arith.addf %122, %123 : vector<8x128xf32>
    %125 = arith.negf %124 : vector<8x128xf32>
    %126 = math.exp %125 : vector<8x128xf32>
    %cst_27 = arith.constant 1.000000e+00 : f32
    %127 = vector.broadcast %cst_27 : f32 to vector<8x128xf32>
    %128 = arith.addf %127, %126 : vector<8x128xf32>
    %129 = arith.divf %127, %128 : vector<8x128xf32>
    %130 = vector.extract_strided_slice %111 {offsets = [0, 256], sizes = [8, 128], strides = [1, 1]} : vector<8x384xf32> to vector<8x128xf32>
    %131 = vector.extract_strided_slice %112 {offsets = [0, 256], sizes = [8, 128], strides = [1, 1]} : vector<8x384xf32> to vector<8x128xf32>
    %132 = arith.mulf %121, %131 : vector<8x128xf32>
    %133 = arith.addf %130, %132 : vector<8x128xf32>
    %134 = math.tanh %133 : vector<8x128xf32>
    %cst_28 = arith.constant 1.000000e+00 : f32
    %135 = vector.broadcast %cst_28 : f32 to vector<8x128xf32>
    %136 = arith.subf %135, %129 : vector<8x128xf32>
    %137 = arith.mulf %136, %134 : vector<8x128xf32>
    %138 = arith.mulf %129, %113 : vector<8x128xf32>
    %139 = arith.addf %137, %138 : vector<8x128xf32>
    %140 = tpu.concatenate %110, %139 in 0 : vector<8x128xf32>, vector<8x128xf32> -> vector<16x128xf32>
    %cst_29 = arith.constant dense<0.000000e+00> : vector<16x768xf32>
    %141 = tpu.matmul %140, %14, %cst_29 {dimension_numbers = #tpu.dot_dimension_numbers<[1], [0], [0], [1], [0, 0, 1, 1], [], []>} : vector<16x128xf32>, vector<128x768xf32>, vector<16x768xf32> -> vector<16x768xf32>
    %142 = arith.addf %141, %17 : vector<16x768xf32>
    %143 = vector.extract_strided_slice %13 {offsets = [16, 0], sizes = [8, 384], strides = [1, 1]} : vector<64x768xf32> to vector<8x384xf32>
    %144 = vector.extract_strided_slice %142 {offsets = [0, 0], sizes = [8, 384], strides = [1, 1]} : vector<16x768xf32> to vector<8x384xf32>
    %145 = vector.extract_strided_slice %140 {offsets = [0, 0], sizes = [8, 128], strides = [1, 1]} : vector<16x128xf32> to vector<8x128xf32>
    %146 = vector.extract_strided_slice %143 {offsets = [0, 0], sizes = [8, 128], strides = [1, 1]} : vector<8x384xf32> to vector<8x128xf32>
    %147 = vector.extract_strided_slice %144 {offsets = [0, 0], sizes = [8, 128], strides = [1, 1]} : vector<8x384xf32> to vector<8x128xf32>
    %148 = arith.addf %146, %147 : vector<8x128xf32>
    %149 = arith.negf %148 : vector<8x128xf32>
    %150 = math.exp %149 : vector<8x128xf32>
    %cst_30 = arith.constant 1.000000e+00 : f32
    %151 = vector.broadcast %cst_30 : f32 to vector<8x128xf32>
    %152 = arith.addf %151, %150 : vector<8x128xf32>
    %153 = arith.divf %151, %152 : vector<8x128xf32>
    %154 = vector.extract_strided_slice %143 {offsets = [0, 128], sizes = [8, 128], strides = [1, 1]} : vector<8x384xf32> to vector<8x128xf32>
    %155 = vector.extract_strided_slice %144 {offsets = [0, 128], sizes = [8, 128], strides = [1, 1]} : vector<8x384xf32> to vector<8x128xf32>
    %156 = arith.addf %154, %155 : vector<8x128xf32>
    %157 = arith.negf %156 : vector<8x128xf32>
    %158 = math.exp %157 : vector<8x128xf32>
    %cst_31 = arith.constant 1.000000e+00 : f32
    %159 = vector.broadcast %cst_31 : f32 to vector<8x128xf32>
    %160 = arith.addf %159, %158 : vector<8x128xf32>
    %161 = arith.divf %159, %160 : vector<8x128xf32>
    %162 = vector.extract_strided_slice %143 {offsets = [0, 256], sizes = [8, 128], strides = [1, 1]} : vector<8x384xf32> to vector<8x128xf32>
    %163 = vector.extract_strided_slice %144 {offsets = [0, 256], sizes = [8, 128], strides = [1, 1]} : vector<8x384xf32> to vector<8x128xf32>
    %164 = arith.mulf %153, %163 : vector<8x128xf32>
    %165 = arith.addf %162, %164 : vector<8x128xf32>
    %166 = math.tanh %165 : vector<8x128xf32>
    %cst_32 = arith.constant 1.000000e+00 : f32
    %167 = vector.broadcast %cst_32 : f32 to vector<8x128xf32>
    %168 = arith.subf %167, %161 : vector<8x128xf32>
    %169 = arith.mulf %168, %166 : vector<8x128xf32>
    %170 = arith.mulf %161, %145 : vector<8x128xf32>
    %171 = arith.addf %169, %170 : vector<8x128xf32>
    %172 = vector.extract_strided_slice %13 {offsets = [40, 384], sizes = [8, 384], strides = [1, 1]} : vector<64x768xf32> to vector<8x384xf32>
    %173 = vector.extract_strided_slice %142 {offsets = [8, 384], sizes = [8, 384], strides = [1, 1]} : vector<16x768xf32> to vector<8x384xf32>
    %174 = vector.extract_strided_slice %140 {offsets = [8, 0], sizes = [8, 128], strides = [1, 1]} : vector<16x128xf32> to vector<8x128xf32>
    %175 = vector.extract_strided_slice %172 {offsets = [0, 0], sizes = [8, 128], strides = [1, 1]} : vector<8x384xf32> to vector<8x128xf32>
    %176 = vector.extract_strided_slice %173 {offsets = [0, 0], sizes = [8, 128], strides = [1, 1]} : vector<8x384xf32> to vector<8x128xf32>
    %177 = arith.addf %175, %176 : vector<8x128xf32>
    %178 = arith.negf %177 : vector<8x128xf32>
    %179 = math.exp %178 : vector<8x128xf32>
    %cst_33 = arith.constant 1.000000e+00 : f32
    %180 = vector.broadcast %cst_33 : f32 to vector<8x128xf32>
    %181 = arith.addf %180, %179 : vector<8x128xf32>
    %182 = arith.divf %180, %181 : vector<8x128xf32>
    %183 = vector.extract_strided_slice %172 {offsets = [0, 128], sizes = [8, 128], strides = [1, 1]} : vector<8x384xf32> to vector<8x128xf32>
    %184 = vector.extract_strided_slice %173 {offsets = [0, 128], sizes = [8, 128], strides = [1, 1]} : vector<8x384xf32> to vector<8x128xf32>
    %185 = arith.addf %183, %184 : vector<8x128xf32>
    %186 = arith.negf %185 : vector<8x128xf32>
    %187 = math.exp %186 : vector<8x128xf32>
    %cst_34 = arith.constant 1.000000e+00 : f32
    %188 = vector.broadcast %cst_34 : f32 to vector<8x128xf32>
    %189 = arith.addf %188, %187 : vector<8x128xf32>
    %190 = arith.divf %188, %189 : vector<8x128xf32>
    %191 = vector.extract_strided_slice %172 {offsets = [0, 256], sizes = [8, 128], strides = [1, 1]} : vector<8x384xf32> to vector<8x128xf32>
    %192 = vector.extract_strided_slice %173 {offsets = [0, 256], sizes = [8, 128], strides = [1, 1]} : vector<8x384xf32> to vector<8x128xf32>
    %193 = arith.mulf %182, %192 : vector<8x128xf32>
    %194 = arith.addf %191, %193 : vector<8x128xf32>
    %195 = math.tanh %194 : vector<8x128xf32>
    %cst_35 = arith.constant 1.000000e+00 : f32
    %196 = vector.broadcast %cst_35 : f32 to vector<8x128xf32>
    %197 = arith.subf %196, %190 : vector<8x128xf32>
    %198 = arith.mulf %197, %195 : vector<8x128xf32>
    %199 = arith.mulf %190, %174 : vector<8x128xf32>
    %200 = arith.addf %198, %199 : vector<8x128xf32>
    %201 = tpu.concatenate %171, %200 in 0 : vector<8x128xf32>, vector<8x128xf32> -> vector<16x128xf32>
    %cst_36 = arith.constant dense<0.000000e+00> : vector<16x768xf32>
    %202 = tpu.matmul %201, %14, %cst_36 {dimension_numbers = #tpu.dot_dimension_numbers<[1], [0], [0], [1], [0, 0, 1, 1], [], []>} : vector<16x128xf32>, vector<128x768xf32>, vector<16x768xf32> -> vector<16x768xf32>
    %203 = arith.addf %202, %17 : vector<16x768xf32>
    %204 = vector.extract_strided_slice %13 {offsets = [24, 0], sizes = [8, 384], strides = [1, 1]} : vector<64x768xf32> to vector<8x384xf32>
    %205 = vector.extract_strided_slice %203 {offsets = [0, 0], sizes = [8, 384], strides = [1, 1]} : vector<16x768xf32> to vector<8x384xf32>
    %206 = vector.extract_strided_slice %201 {offsets = [0, 0], sizes = [8, 128], strides = [1, 1]} : vector<16x128xf32> to vector<8x128xf32>
    %207 = vector.extract_strided_slice %204 {offsets = [0, 0], sizes = [8, 128], strides = [1, 1]} : vector<8x384xf32> to vector<8x128xf32>
    %208 = vector.extract_strided_slice %205 {offsets = [0, 0], sizes = [8, 128], strides = [1, 1]} : vector<8x384xf32> to vector<8x128xf32>
    %209 = arith.addf %207, %208 : vector<8x128xf32>
    %210 = arith.negf %209 : vector<8x128xf32>
    %211 = math.exp %210 : vector<8x128xf32>
    %cst_37 = arith.constant 1.000000e+00 : f32
    %212 = vector.broadcast %cst_37 : f32 to vector<8x128xf32>
    %213 = arith.addf %212, %211 : vector<8x128xf32>
    %214 = arith.divf %212, %213 : vector<8x128xf32>
    %215 = vector.extract_strided_slice %204 {offsets = [0, 128], sizes = [8, 128], strides = [1, 1]} : vector<8x384xf32> to vector<8x128xf32>
    %216 = vector.extract_strided_slice %205 {offsets = [0, 128], sizes = [8, 128], strides = [1, 1]} : vector<8x384xf32> to vector<8x128xf32>
    %217 = arith.addf %215, %216 : vector<8x128xf32>
    %218 = arith.negf %217 : vector<8x128xf32>
    %219 = math.exp %218 : vector<8x128xf32>
    %cst_38 = arith.constant 1.000000e+00 : f32
    %220 = vector.broadcast %cst_38 : f32 to vector<8x128xf32>
    %221 = arith.addf %220, %219 : vector<8x128xf32>
    %222 = arith.divf %220, %221 : vector<8x128xf32>
    %223 = vector.extract_strided_slice %204 {offsets = [0, 256], sizes = [8, 128], strides = [1, 1]} : vector<8x384xf32> to vector<8x128xf32>
    %224 = vector.extract_strided_slice %205 {offsets = [0, 256], sizes = [8, 128], strides = [1, 1]} : vector<8x384xf32> to vector<8x128xf32>
    %225 = arith.mulf %214, %224 : vector<8x128xf32>
    %226 = arith.addf %223, %225 : vector<8x128xf32>
    %227 = math.tanh %226 : vector<8x128xf32>
    %cst_39 = arith.constant 1.000000e+00 : f32
    %228 = vector.broadcast %cst_39 : f32 to vector<8x128xf32>
    %229 = arith.subf %228, %222 : vector<8x128xf32>
    %230 = arith.mulf %229, %227 : vector<8x128xf32>
    %231 = arith.mulf %222, %206 : vector<8x128xf32>
    %232 = arith.addf %230, %231 : vector<8x128xf32>
    %233 = vector.extract_strided_slice %13 {offsets = [32, 384], sizes = [8, 384], strides = [1, 1]} : vector<64x768xf32> to vector<8x384xf32>
    %234 = vector.extract_strided_slice %203 {offsets = [8, 384], sizes = [8, 384], strides = [1, 1]} : vector<16x768xf32> to vector<8x384xf32>
    %235 = vector.extract_strided_slice %201 {offsets = [8, 0], sizes = [8, 128], strides = [1, 1]} : vector<16x128xf32> to vector<8x128xf32>
    %236 = vector.extract_strided_slice %233 {offsets = [0, 0], sizes = [8, 128], strides = [1, 1]} : vector<8x384xf32> to vector<8x128xf32>
    %237 = vector.extract_strided_slice %234 {offsets = [0, 0], sizes = [8, 128], strides = [1, 1]} : vector<8x384xf32> to vector<8x128xf32>
    %238 = arith.addf %236, %237 : vector<8x128xf32>
    %239 = arith.negf %238 : vector<8x128xf32>
    %240 = math.exp %239 : vector<8x128xf32>
    %cst_40 = arith.constant 1.000000e+00 : f32
    %241 = vector.broadcast %cst_40 : f32 to vector<8x128xf32>
    %242 = arith.addf %241, %240 : vector<8x128xf32>
    %243 = arith.divf %241, %242 : vector<8x128xf32>
    %244 = vector.extract_strided_slice %233 {offsets = [0, 128], sizes = [8, 128], strides = [1, 1]} : vector<8x384xf32> to vector<8x128xf32>
    %245 = vector.extract_strided_slice %234 {offsets = [0, 128], sizes = [8, 128], strides = [1, 1]} : vector<8x384xf32> to vector<8x128xf32>
    %246 = arith.addf %244, %245 : vector<8x128xf32>
    %247 = arith.negf %246 : vector<8x128xf32>
    %248 = math.exp %247 : vector<8x128xf32>
    %cst_41 = arith.constant 1.000000e+00 : f32
    %249 = vector.broadcast %cst_41 : f32 to vector<8x128xf32>
    %250 = arith.addf %249, %248 : vector<8x128xf32>
    %251 = arith.divf %249, %250 : vector<8x128xf32>
    %252 = vector.extract_strided_slice %233 {offsets = [0, 256], sizes = [8, 128], strides = [1, 1]} : vector<8x384xf32> to vector<8x128xf32>
    %253 = vector.extract_strided_slice %234 {offsets = [0, 256], sizes = [8, 128], strides = [1, 1]} : vector<8x384xf32> to vector<8x128xf32>
    %254 = arith.mulf %243, %253 : vector<8x128xf32>
    %255 = arith.addf %252, %254 : vector<8x128xf32>
    %256 = math.tanh %255 : vector<8x128xf32>
    %cst_42 = arith.constant 1.000000e+00 : f32
    %257 = vector.broadcast %cst_42 : f32 to vector<8x128xf32>
    %258 = arith.subf %257, %251 : vector<8x128xf32>
    %259 = arith.mulf %258, %256 : vector<8x128xf32>
    %260 = arith.mulf %251, %235 : vector<8x128xf32>
    %261 = arith.addf %259, %260 : vector<8x128xf32>
    %262 = tpu.concatenate %232, %261 in 0 : vector<8x128xf32>, vector<8x128xf32> -> vector<16x128xf32>
    %cst_43 = arith.constant dense<0.000000e+00> : vector<16x768xf32>
    %263 = tpu.matmul %262, %14, %cst_43 {dimension_numbers = #tpu.dot_dimension_numbers<[1], [0], [0], [1], [0, 0, 1, 1], [], []>} : vector<16x128xf32>, vector<128x768xf32>, vector<16x768xf32> -> vector<16x768xf32>
    %264 = arith.addf %263, %17 : vector<16x768xf32>
    %265 = vector.extract_strided_slice %13 {offsets = [32, 0], sizes = [8, 384], strides = [1, 1]} : vector<64x768xf32> to vector<8x384xf32>
    %266 = vector.extract_strided_slice %264 {offsets = [0, 0], sizes = [8, 384], strides = [1, 1]} : vector<16x768xf32> to vector<8x384xf32>
    %267 = vector.extract_strided_slice %262 {offsets = [0, 0], sizes = [8, 128], strides = [1, 1]} : vector<16x128xf32> to vector<8x128xf32>
    %268 = vector.extract_strided_slice %265 {offsets = [0, 0], sizes = [8, 128], strides = [1, 1]} : vector<8x384xf32> to vector<8x128xf32>
    %269 = vector.extract_strided_slice %266 {offsets = [0, 0], sizes = [8, 128], strides = [1, 1]} : vector<8x384xf32> to vector<8x128xf32>
    %270 = arith.addf %268, %269 : vector<8x128xf32>
    %271 = arith.negf %270 : vector<8x128xf32>
    %272 = math.exp %271 : vector<8x128xf32>
    %cst_44 = arith.constant 1.000000e+00 : f32
    %273 = vector.broadcast %cst_44 : f32 to vector<8x128xf32>
    %274 = arith.addf %273, %272 : vector<8x128xf32>
    %275 = arith.divf %273, %274 : vector<8x128xf32>
    %276 = vector.extract_strided_slice %265 {offsets = [0, 128], sizes = [8, 128], strides = [1, 1]} : vector<8x384xf32> to vector<8x128xf32>
    %277 = vector.extract_strided_slice %266 {offsets = [0, 128], sizes = [8, 128], strides = [1, 1]} : vector<8x384xf32> to vector<8x128xf32>
    %278 = arith.addf %276, %277 : vector<8x128xf32>
    %279 = arith.negf %278 : vector<8x128xf32>
    %280 = math.exp %279 : vector<8x128xf32>
    %cst_45 = arith.constant 1.000000e+00 : f32
    %281 = vector.broadcast %cst_45 : f32 to vector<8x128xf32>
    %282 = arith.addf %281, %280 : vector<8x128xf32>
    %283 = arith.divf %281, %282 : vector<8x128xf32>
    %284 = vector.extract_strided_slice %265 {offsets = [0, 256], sizes = [8, 128], strides = [1, 1]} : vector<8x384xf32> to vector<8x128xf32>
    %285 = vector.extract_strided_slice %266 {offsets = [0, 256], sizes = [8, 128], strides = [1, 1]} : vector<8x384xf32> to vector<8x128xf32>
    %286 = arith.mulf %275, %285 : vector<8x128xf32>
    %287 = arith.addf %284, %286 : vector<8x128xf32>
    %288 = math.tanh %287 : vector<8x128xf32>
    %cst_46 = arith.constant 1.000000e+00 : f32
    %289 = vector.broadcast %cst_46 : f32 to vector<8x128xf32>
    %290 = arith.subf %289, %283 : vector<8x128xf32>
    %291 = arith.mulf %290, %288 : vector<8x128xf32>
    %292 = arith.mulf %283, %267 : vector<8x128xf32>
    %293 = arith.addf %291, %292 : vector<8x128xf32>
    %294 = vector.extract_strided_slice %13 {offsets = [24, 384], sizes = [8, 384], strides = [1, 1]} : vector<64x768xf32> to vector<8x384xf32>
    %295 = vector.extract_strided_slice %264 {offsets = [8, 384], sizes = [8, 384], strides = [1, 1]} : vector<16x768xf32> to vector<8x384xf32>
    %296 = vector.extract_strided_slice %262 {offsets = [8, 0], sizes = [8, 128], strides = [1, 1]} : vector<16x128xf32> to vector<8x128xf32>
    %297 = vector.extract_strided_slice %294 {offsets = [0, 0], sizes = [8, 128], strides = [1, 1]} : vector<8x384xf32> to vector<8x128xf32>
    %298 = vector.extract_strided_slice %295 {offsets = [0, 0], sizes = [8, 128], strides = [1, 1]} : vector<8x384xf32> to vector<8x128xf32>
    %299 = arith.addf %297, %298 : vector<8x128xf32>
    %300 = arith.negf %299 : vector<8x128xf32>
    %301 = math.exp %300 : vector<8x128xf32>
    %cst_47 = arith.constant 1.000000e+00 : f32
    %302 = vector.broadcast %cst_47 : f32 to vector<8x128xf32>
    %303 = arith.addf %302, %301 : vector<8x128xf32>
    %304 = arith.divf %302, %303 : vector<8x128xf32>
    %305 = vector.extract_strided_slice %294 {offsets = [0, 128], sizes = [8, 128], strides = [1, 1]} : vector<8x384xf32> to vector<8x128xf32>
    %306 = vector.extract_strided_slice %295 {offsets = [0, 128], sizes = [8, 128], strides = [1, 1]} : vector<8x384xf32> to vector<8x128xf32>
    %307 = arith.addf %305, %306 : vector<8x128xf32>
    %308 = arith.negf %307 : vector<8x128xf32>
    %309 = math.exp %308 : vector<8x128xf32>
    %cst_48 = arith.constant 1.000000e+00 : f32
    %310 = vector.broadcast %cst_48 : f32 to vector<8x128xf32>
    %311 = arith.addf %310, %309 : vector<8x128xf32>
    %312 = arith.divf %310, %311 : vector<8x128xf32>
    %313 = vector.extract_strided_slice %294 {offsets = [0, 256], sizes = [8, 128], strides = [1, 1]} : vector<8x384xf32> to vector<8x128xf32>
    %314 = vector.extract_strided_slice %295 {offsets = [0, 256], sizes = [8, 128], strides = [1, 1]} : vector<8x384xf32> to vector<8x128xf32>
    %315 = arith.mulf %304, %314 : vector<8x128xf32>
    %316 = arith.addf %313, %315 : vector<8x128xf32>
    %317 = math.tanh %316 : vector<8x128xf32>
    %cst_49 = arith.constant 1.000000e+00 : f32
    %318 = vector.broadcast %cst_49 : f32 to vector<8x128xf32>
    %319 = arith.subf %318, %312 : vector<8x128xf32>
    %320 = arith.mulf %319, %317 : vector<8x128xf32>
    %321 = arith.mulf %312, %296 : vector<8x128xf32>
    %322 = arith.addf %320, %321 : vector<8x128xf32>
    %323 = tpu.concatenate %293, %322 in 0 : vector<8x128xf32>, vector<8x128xf32> -> vector<16x128xf32>
    %cst_50 = arith.constant dense<0.000000e+00> : vector<16x768xf32>
    %324 = tpu.matmul %323, %14, %cst_50 {dimension_numbers = #tpu.dot_dimension_numbers<[1], [0], [0], [1], [0, 0, 1, 1], [], []>} : vector<16x128xf32>, vector<128x768xf32>, vector<16x768xf32> -> vector<16x768xf32>
    %325 = arith.addf %324, %17 : vector<16x768xf32>
    %326 = vector.extract_strided_slice %13 {offsets = [40, 0], sizes = [8, 384], strides = [1, 1]} : vector<64x768xf32> to vector<8x384xf32>
    %327 = vector.extract_strided_slice %325 {offsets = [0, 0], sizes = [8, 384], strides = [1, 1]} : vector<16x768xf32> to vector<8x384xf32>
    %328 = vector.extract_strided_slice %323 {offsets = [0, 0], sizes = [8, 128], strides = [1, 1]} : vector<16x128xf32> to vector<8x128xf32>
    %329 = vector.extract_strided_slice %326 {offsets = [0, 0], sizes = [8, 128], strides = [1, 1]} : vector<8x384xf32> to vector<8x128xf32>
    %330 = vector.extract_strided_slice %327 {offsets = [0, 0], sizes = [8, 128], strides = [1, 1]} : vector<8x384xf32> to vector<8x128xf32>
    %331 = arith.addf %329, %330 : vector<8x128xf32>
    %332 = arith.negf %331 : vector<8x128xf32>
    %333 = math.exp %332 : vector<8x128xf32>
    %cst_51 = arith.constant 1.000000e+00 : f32
    %334 = vector.broadcast %cst_51 : f32 to vector<8x128xf32>
    %335 = arith.addf %334, %333 : vector<8x128xf32>
    %336 = arith.divf %334, %335 : vector<8x128xf32>
    %337 = vector.extract_strided_slice %326 {offsets = [0, 128], sizes = [8, 128], strides = [1, 1]} : vector<8x384xf32> to vector<8x128xf32>
    %338 = vector.extract_strided_slice %327 {offsets = [0, 128], sizes = [8, 128], strides = [1, 1]} : vector<8x384xf32> to vector<8x128xf32>
    %339 = arith.addf %337, %338 : vector<8x128xf32>
    %340 = arith.negf %339 : vector<8x128xf32>
    %341 = math.exp %340 : vector<8x128xf32>
    %cst_52 = arith.constant 1.000000e+00 : f32
    %342 = vector.broadcast %cst_52 : f32 to vector<8x128xf32>
    %343 = arith.addf %342, %341 : vector<8x128xf32>
    %344 = arith.divf %342, %343 : vector<8x128xf32>
    %345 = vector.extract_strided_slice %326 {offsets = [0, 256], sizes = [8, 128], strides = [1, 1]} : vector<8x384xf32> to vector<8x128xf32>
    %346 = vector.extract_strided_slice %327 {offsets = [0, 256], sizes = [8, 128], strides = [1, 1]} : vector<8x384xf32> to vector<8x128xf32>
    %347 = arith.mulf %336, %346 : vector<8x128xf32>
    %348 = arith.addf %345, %347 : vector<8x128xf32>
    %349 = math.tanh %348 : vector<8x128xf32>
    %cst_53 = arith.constant 1.000000e+00 : f32
    %350 = vector.broadcast %cst_53 : f32 to vector<8x128xf32>
    %351 = arith.subf %350, %344 : vector<8x128xf32>
    %352 = arith.mulf %351, %349 : vector<8x128xf32>
    %353 = arith.mulf %344, %328 : vector<8x128xf32>
    %354 = arith.addf %352, %353 : vector<8x128xf32>
    %355 = vector.extract_strided_slice %13 {offsets = [16, 384], sizes = [8, 384], strides = [1, 1]} : vector<64x768xf32> to vector<8x384xf32>
    %356 = vector.extract_strided_slice %325 {offsets = [8, 384], sizes = [8, 384], strides = [1, 1]} : vector<16x768xf32> to vector<8x384xf32>
    %357 = vector.extract_strided_slice %323 {offsets = [8, 0], sizes = [8, 128], strides = [1, 1]} : vector<16x128xf32> to vector<8x128xf32>
    %358 = vector.extract_strided_slice %355 {offsets = [0, 0], sizes = [8, 128], strides = [1, 1]} : vector<8x384xf32> to vector<8x128xf32>
    %359 = vector.extract_strided_slice %356 {offsets = [0, 0], sizes = [8, 128], strides = [1, 1]} : vector<8x384xf32> to vector<8x128xf32>
    %360 = arith.addf %358, %359 : vector<8x128xf32>
    %361 = arith.negf %360 : vector<8x128xf32>
    %362 = math.exp %361 : vector<8x128xf32>
    %cst_54 = arith.constant 1.000000e+00 : f32
    %363 = vector.broadcast %cst_54 : f32 to vector<8x128xf32>
    %364 = arith.addf %363, %362 : vector<8x128xf32>
    %365 = arith.divf %363, %364 : vector<8x128xf32>
    %366 = vector.extract_strided_slice %355 {offsets = [0, 128], sizes = [8, 128], strides = [1, 1]} : vector<8x384xf32> to vector<8x128xf32>
    %367 = vector.extract_strided_slice %356 {offsets = [0, 128], sizes = [8, 128], strides = [1, 1]} : vector<8x384xf32> to vector<8x128xf32>
    %368 = arith.addf %366, %367 : vector<8x128xf32>
    %369 = arith.negf %368 : vector<8x128xf32>
    %370 = math.exp %369 : vector<8x128xf32>
    %cst_55 = arith.constant 1.000000e+00 : f32
    %371 = vector.broadcast %cst_55 : f32 to vector<8x128xf32>
    %372 = arith.addf %371, %370 : vector<8x128xf32>
    %373 = arith.divf %371, %372 : vector<8x128xf32>
    %374 = vector.extract_strided_slice %355 {offsets = [0, 256], sizes = [8, 128], strides = [1, 1]} : vector<8x384xf32> to vector<8x128xf32>
    %375 = vector.extract_strided_slice %356 {offsets = [0, 256], sizes = [8, 128], strides = [1, 1]} : vector<8x384xf32> to vector<8x128xf32>
    %376 = arith.mulf %365, %375 : vector<8x128xf32>
    %377 = arith.addf %374, %376 : vector<8x128xf32>
    %378 = math.tanh %377 : vector<8x128xf32>
    %cst_56 = arith.constant 1.000000e+00 : f32
    %379 = vector.broadcast %cst_56 : f32 to vector<8x128xf32>
    %380 = arith.subf %379, %373 : vector<8x128xf32>
    %381 = arith.mulf %380, %378 : vector<8x128xf32>
    %382 = arith.mulf %373, %357 : vector<8x128xf32>
    %383 = arith.addf %381, %382 : vector<8x128xf32>
    %384 = tpu.concatenate %354, %383 in 0 : vector<8x128xf32>, vector<8x128xf32> -> vector<16x128xf32>
    %cst_57 = arith.constant dense<0.000000e+00> : vector<16x768xf32>
    %385 = tpu.matmul %384, %14, %cst_57 {dimension_numbers = #tpu.dot_dimension_numbers<[1], [0], [0], [1], [0, 0, 1, 1], [], []>} : vector<16x128xf32>, vector<128x768xf32>, vector<16x768xf32> -> vector<16x768xf32>
    %386 = arith.addf %385, %17 : vector<16x768xf32>
    %387 = vector.extract_strided_slice %13 {offsets = [48, 0], sizes = [8, 384], strides = [1, 1]} : vector<64x768xf32> to vector<8x384xf32>
    %388 = vector.extract_strided_slice %386 {offsets = [0, 0], sizes = [8, 384], strides = [1, 1]} : vector<16x768xf32> to vector<8x384xf32>
    %389 = vector.extract_strided_slice %384 {offsets = [0, 0], sizes = [8, 128], strides = [1, 1]} : vector<16x128xf32> to vector<8x128xf32>
    %390 = vector.extract_strided_slice %387 {offsets = [0, 0], sizes = [8, 128], strides = [1, 1]} : vector<8x384xf32> to vector<8x128xf32>
    %391 = vector.extract_strided_slice %388 {offsets = [0, 0], sizes = [8, 128], strides = [1, 1]} : vector<8x384xf32> to vector<8x128xf32>
    %392 = arith.addf %390, %391 : vector<8x128xf32>
    %393 = arith.negf %392 : vector<8x128xf32>
    %394 = math.exp %393 : vector<8x128xf32>
    %cst_58 = arith.constant 1.000000e+00 : f32
    %395 = vector.broadcast %cst_58 : f32 to vector<8x128xf32>
    %396 = arith.addf %395, %394 : vector<8x128xf32>
    %397 = arith.divf %395, %396 : vector<8x128xf32>
    %398 = vector.extract_strided_slice %387 {offsets = [0, 128], sizes = [8, 128], strides = [1, 1]} : vector<8x384xf32> to vector<8x128xf32>
    %399 = vector.extract_strided_slice %388 {offsets = [0, 128], sizes = [8, 128], strides = [1, 1]} : vector<8x384xf32> to vector<8x128xf32>
    %400 = arith.addf %398, %399 : vector<8x128xf32>
    %401 = arith.negf %400 : vector<8x128xf32>
    %402 = math.exp %401 : vector<8x128xf32>
    %cst_59 = arith.constant 1.000000e+00 : f32
    %403 = vector.broadcast %cst_59 : f32 to vector<8x128xf32>
    %404 = arith.addf %403, %402 : vector<8x128xf32>
    %405 = arith.divf %403, %404 : vector<8x128xf32>
    %406 = vector.extract_strided_slice %387 {offsets = [0, 256], sizes = [8, 128], strides = [1, 1]} : vector<8x384xf32> to vector<8x128xf32>
    %407 = vector.extract_strided_slice %388 {offsets = [0, 256], sizes = [8, 128], strides = [1, 1]} : vector<8x384xf32> to vector<8x128xf32>
    %408 = arith.mulf %397, %407 : vector<8x128xf32>
    %409 = arith.addf %406, %408 : vector<8x128xf32>
    %410 = math.tanh %409 : vector<8x128xf32>
    %cst_60 = arith.constant 1.000000e+00 : f32
    %411 = vector.broadcast %cst_60 : f32 to vector<8x128xf32>
    %412 = arith.subf %411, %405 : vector<8x128xf32>
    %413 = arith.mulf %412, %410 : vector<8x128xf32>
    %414 = arith.mulf %405, %389 : vector<8x128xf32>
    %415 = arith.addf %413, %414 : vector<8x128xf32>
    %416 = vector.extract_strided_slice %13 {offsets = [8, 384], sizes = [8, 384], strides = [1, 1]} : vector<64x768xf32> to vector<8x384xf32>
    %417 = vector.extract_strided_slice %386 {offsets = [8, 384], sizes = [8, 384], strides = [1, 1]} : vector<16x768xf32> to vector<8x384xf32>
    %418 = vector.extract_strided_slice %384 {offsets = [8, 0], sizes = [8, 128], strides = [1, 1]} : vector<16x128xf32> to vector<8x128xf32>
    %419 = vector.extract_strided_slice %416 {offsets = [0, 0], sizes = [8, 128], strides = [1, 1]} : vector<8x384xf32> to vector<8x128xf32>
    %420 = vector.extract_strided_slice %417 {offsets = [0, 0], sizes = [8, 128], strides = [1, 1]} : vector<8x384xf32> to vector<8x128xf32>
    %421 = arith.addf %419, %420 : vector<8x128xf32>
    %422 = arith.negf %421 : vector<8x128xf32>
    %423 = math.exp %422 : vector<8x128xf32>
    %cst_61 = arith.constant 1.000000e+00 : f32
    %424 = vector.broadcast %cst_61 : f32 to vector<8x128xf32>
    %425 = arith.addf %424, %423 : vector<8x128xf32>
    %426 = arith.divf %424, %425 : vector<8x128xf32>
    %427 = vector.extract_strided_slice %416 {offsets = [0, 128], sizes = [8, 128], strides = [1, 1]} : vector<8x384xf32> to vector<8x128xf32>
    %428 = vector.extract_strided_slice %417 {offsets = [0, 128], sizes = [8, 128], strides = [1, 1]} : vector<8x384xf32> to vector<8x128xf32>
    %429 = arith.addf %427, %428 : vector<8x128xf32>
    %430 = arith.negf %429 : vector<8x128xf32>
    %431 = math.exp %430 : vector<8x128xf32>
    %cst_62 = arith.constant 1.000000e+00 : f32
    %432 = vector.broadcast %cst_62 : f32 to vector<8x128xf32>
    %433 = arith.addf %432, %431 : vector<8x128xf32>
    %434 = arith.divf %432, %433 : vector<8x128xf32>
    %435 = vector.extract_strided_slice %416 {offsets = [0, 256], sizes = [8, 128], strides = [1, 1]} : vector<8x384xf32> to vector<8x128xf32>
    %436 = vector.extract_strided_slice %417 {offsets = [0, 256], sizes = [8, 128], strides = [1, 1]} : vector<8x384xf32> to vector<8x128xf32>
    %437 = arith.mulf %426, %436 : vector<8x128xf32>
    %438 = arith.addf %435, %437 : vector<8x128xf32>
    %439 = math.tanh %438 : vector<8x128xf32>
    %cst_63 = arith.constant 1.000000e+00 : f32
    %440 = vector.broadcast %cst_63 : f32 to vector<8x128xf32>
    %441 = arith.subf %440, %434 : vector<8x128xf32>
    %442 = arith.mulf %441, %439 : vector<8x128xf32>
    %443 = arith.mulf %434, %418 : vector<8x128xf32>
    %444 = arith.addf %442, %443 : vector<8x128xf32>
    %445 = tpu.concatenate %415, %444 in 0 : vector<8x128xf32>, vector<8x128xf32> -> vector<16x128xf32>
    %cst_64 = arith.constant dense<0.000000e+00> : vector<16x768xf32>
    %446 = tpu.matmul %445, %14, %cst_64 {dimension_numbers = #tpu.dot_dimension_numbers<[1], [0], [0], [1], [0, 0, 1, 1], [], []>} : vector<16x128xf32>, vector<128x768xf32>, vector<16x768xf32> -> vector<16x768xf32>
    %447 = arith.addf %446, %17 : vector<16x768xf32>
    %448 = vector.extract_strided_slice %13 {offsets = [56, 0], sizes = [8, 384], strides = [1, 1]} : vector<64x768xf32> to vector<8x384xf32>
    %449 = vector.extract_strided_slice %447 {offsets = [0, 0], sizes = [8, 384], strides = [1, 1]} : vector<16x768xf32> to vector<8x384xf32>
    %450 = vector.extract_strided_slice %445 {offsets = [0, 0], sizes = [8, 128], strides = [1, 1]} : vector<16x128xf32> to vector<8x128xf32>
    %451 = vector.extract_strided_slice %448 {offsets = [0, 0], sizes = [8, 128], strides = [1, 1]} : vector<8x384xf32> to vector<8x128xf32>
    %452 = vector.extract_strided_slice %449 {offsets = [0, 0], sizes = [8, 128], strides = [1, 1]} : vector<8x384xf32> to vector<8x128xf32>
    %453 = arith.addf %451, %452 : vector<8x128xf32>
    %454 = arith.negf %453 : vector<8x128xf32>
    %455 = math.exp %454 : vector<8x128xf32>
    %cst_65 = arith.constant 1.000000e+00 : f32
    %456 = vector.broadcast %cst_65 : f32 to vector<8x128xf32>
    %457 = arith.addf %456, %455 : vector<8x128xf32>
    %458 = arith.divf %456, %457 : vector<8x128xf32>
    %459 = vector.extract_strided_slice %448 {offsets = [0, 128], sizes = [8, 128], strides = [1, 1]} : vector<8x384xf32> to vector<8x128xf32>
    %460 = vector.extract_strided_slice %449 {offsets = [0, 128], sizes = [8, 128], strides = [1, 1]} : vector<8x384xf32> to vector<8x128xf32>
    %461 = arith.addf %459, %460 : vector<8x128xf32>
    %462 = arith.negf %461 : vector<8x128xf32>
    %463 = math.exp %462 : vector<8x128xf32>
    %cst_66 = arith.constant 1.000000e+00 : f32
    %464 = vector.broadcast %cst_66 : f32 to vector<8x128xf32>
    %465 = arith.addf %464, %463 : vector<8x128xf32>
    %466 = arith.divf %464, %465 : vector<8x128xf32>
    %467 = vector.extract_strided_slice %448 {offsets = [0, 256], sizes = [8, 128], strides = [1, 1]} : vector<8x384xf32> to vector<8x128xf32>
    %468 = vector.extract_strided_slice %449 {offsets = [0, 256], sizes = [8, 128], strides = [1, 1]} : vector<8x384xf32> to vector<8x128xf32>
    %469 = arith.mulf %458, %468 : vector<8x128xf32>
    %470 = arith.addf %467, %469 : vector<8x128xf32>
    %471 = math.tanh %470 : vector<8x128xf32>
    %cst_67 = arith.constant 1.000000e+00 : f32
    %472 = vector.broadcast %cst_67 : f32 to vector<8x128xf32>
    %473 = arith.subf %472, %466 : vector<8x128xf32>
    %474 = arith.mulf %473, %471 : vector<8x128xf32>
    %475 = arith.mulf %466, %450 : vector<8x128xf32>
    %476 = arith.addf %474, %475 : vector<8x128xf32>
    %477 = vector.extract_strided_slice %13 {offsets = [0, 384], sizes = [8, 384], strides = [1, 1]} : vector<64x768xf32> to vector<8x384xf32>
    %478 = vector.extract_strided_slice %447 {offsets = [8, 384], sizes = [8, 384], strides = [1, 1]} : vector<16x768xf32> to vector<8x384xf32>
    %479 = vector.extract_strided_slice %445 {offsets = [8, 0], sizes = [8, 128], strides = [1, 1]} : vector<16x128xf32> to vector<8x128xf32>
    %480 = vector.extract_strided_slice %477 {offsets = [0, 0], sizes = [8, 128], strides = [1, 1]} : vector<8x384xf32> to vector<8x128xf32>
    %481 = vector.extract_strided_slice %478 {offsets = [0, 0], sizes = [8, 128], strides = [1, 1]} : vector<8x384xf32> to vector<8x128xf32>
    %482 = arith.addf %480, %481 : vector<8x128xf32>
    %483 = arith.negf %482 : vector<8x128xf32>
    %484 = math.exp %483 : vector<8x128xf32>
    %cst_68 = arith.constant 1.000000e+00 : f32
    %485 = vector.broadcast %cst_68 : f32 to vector<8x128xf32>
    %486 = arith.addf %485, %484 : vector<8x128xf32>
    %487 = arith.divf %485, %486 : vector<8x128xf32>
    %488 = vector.extract_strided_slice %477 {offsets = [0, 128], sizes = [8, 128], strides = [1, 1]} : vector<8x384xf32> to vector<8x128xf32>
    %489 = vector.extract_strided_slice %478 {offsets = [0, 128], sizes = [8, 128], strides = [1, 1]} : vector<8x384xf32> to vector<8x128xf32>
    %490 = arith.addf %488, %489 : vector<8x128xf32>
    %491 = arith.negf %490 : vector<8x128xf32>
    %492 = math.exp %491 : vector<8x128xf32>
    %cst_69 = arith.constant 1.000000e+00 : f32
    %493 = vector.broadcast %cst_69 : f32 to vector<8x128xf32>
    %494 = arith.addf %493, %492 : vector<8x128xf32>
    %495 = arith.divf %493, %494 : vector<8x128xf32>
    %496 = vector.extract_strided_slice %477 {offsets = [0, 256], sizes = [8, 128], strides = [1, 1]} : vector<8x384xf32> to vector<8x128xf32>
    %497 = vector.extract_strided_slice %478 {offsets = [0, 256], sizes = [8, 128], strides = [1, 1]} : vector<8x384xf32> to vector<8x128xf32>
    %498 = arith.mulf %487, %497 : vector<8x128xf32>
    %499 = arith.addf %496, %498 : vector<8x128xf32>
    %500 = math.tanh %499 : vector<8x128xf32>
    %cst_70 = arith.constant 1.000000e+00 : f32
    %501 = vector.broadcast %cst_70 : f32 to vector<8x128xf32>
    %502 = arith.subf %501, %495 : vector<8x128xf32>
    %503 = arith.mulf %502, %500 : vector<8x128xf32>
    %504 = arith.mulf %495, %479 : vector<8x128xf32>
    %505 = arith.addf %503, %504 : vector<8x128xf32>
    %506 = tpu.concatenate %49, %110, %171, %232, %293, %354, %415, %476 in 0 : vector<8x128xf32>, vector<8x128xf32>, vector<8x128xf32>, vector<8x128xf32>, vector<8x128xf32>, vector<8x128xf32>, vector<8x128xf32>, vector<8x128xf32> -> vector<64x128xf32>
    %507 = tpu.concatenate %505, %444, %383, %322, %261, %200, %139, %78 in 0 : vector<8x128xf32>, vector<8x128xf32>, vector<8x128xf32>, vector<8x128xf32>, vector<8x128xf32>, vector<8x128xf32>, vector<8x128xf32>, vector<8x128xf32> -> vector<64x128xf32>
    %508 = tpu.concatenate %506, %507 in 1 : vector<64x128xf32>, vector<64x128xf32> -> vector<64x256xf32>
    %c0_71 = arith.constant 0 : index
    %c0_72 = arith.constant 0 : index
    %509 = vector.load %arg7[%c0_71, %c0_72] : memref<64x256xf32, #tpu.memory_space<vmem>>, vector<64x256xf32>
    tpu.vector_store %arg7[%c0_71, %c0_72], %508 {strides = array<i32>} : memref<64x256xf32, #tpu.memory_space<vmem>>, vector<64x256xf32>,
    return
  }
  func.func @transform_0(%arg0: i32) -> (i32, i32) {
    %c0_i32 = arith.constant 0 : i32
    %c0_i32_0 = arith.constant 0 : i32
    %c0_i32_1 = arith.constant 0 : i32
    return %c0_i32, %c0_i32_0 : i32, i32
  }
  func.func @transform_1(%arg0: i32) -> (i32, i32) {
    %c0_i32 = arith.constant 0 : i32
    %c0_i32_0 = arith.constant 0 : i32
    %c0_i32_1 = arith.constant 0 : i32
    return %c0_i32, %c0_i32_0 : i32, i32
  }
  func.func @transform_2(%arg0: i32) -> (i32, i32) {
    %c0_i32 = arith.constant 0 : i32
    %c0_i32_0 = arith.constant 0 : i32
    %c0_i32_1 = arith.constant 0 : i32
    return %c0_i32, %c0_i32_0 : i32, i32
  }
  func.func @transform_3(%arg0: i32) -> (i32, i32) {
    %c0_i32 = arith.constant 0 : i32
    %c0_i32_0 = arith.constant 0 : i32
    %c0_i32_1 = arith.constant 0 : i32
    return %c0_i32, %c0_i32_0 : i32, i32
  }
  func.func @transform_4(%arg0: i32) -> (i32, i32) {
    %c0_i32 = arith.constant 0 : i32
    %c0_i32_0 = arith.constant 0 : i32
    %c0_i32_1 = arith.constant 0 : i32
    return %c0_i32, %c0_i32_0 : i32, i32
  }
  func.func @transform_5(%arg0: i32) -> (i32, i32) {
    %c0_i32 = arith.constant 0 : i32
    %c0_i32_0 = arith.constant 0 : i32
    %c0_i32_1 = arith.constant 0 : i32
    return %c0_i32, %c0_i32_0 : i32, i32
  }
  func.func @transform_6(%arg0: i32) -> (i32, i32) {
    %c0_i32 = arith.constant 0 : i32
    %c0_i32_0 = arith.constant 0 : i32
    %c0_i32_1 = arith.constant 0 : i32
    return %c0_i32, %c0_i32_0 : i32, i32
  }
}

</mosaic_0001>

<bundles_post_ra>
// kernel: encoder_forward.1
= control target key start
LH: loop header
LB: loop body
LE: loop exit
PB: predicated region body
PF: predicated region fallthrough
CT: control target
= control target key end

     0   :  { %11 = vsyncpa [#allocation3], 0  ;;  %s3038_s24 = smov [#allocation2]   ;;  %s3039_s26 = smov 768   ;;  %s5148_s0 = inlined_call_operand.vmem [shape: s32[64,1], index: 0, kind: input, shape index: {}]   ;;  %s5149_s1 = inlined_call_operand.vmem [shape: f32[40,16], index: 1, kind: input, shape index: {}]   ;;  %s5150_s2 = inlined_call_operand.vmem [shape: f32[16,768], index: 2, kind: input, shape index: {}]   ;;  %s5151_s3 = inlined_call_operand.vmem [shape: f32[1,768], index: 3, kind: input, shape index: {}]   ;;  %s5152_s4 = inlined_call_operand.hbm [shape: f32[128,768], index: 4, kind: input, shape index: {}]   ;;  %s5153_s5 = inlined_call_operand.vmem [shape: f32[1,768], index: 5, kind: input, shape index: {}]   ;;  %s5154_s6 = inlined_call_operand.vmem [shape: f32[64,256], index: 6, kind: output, shape index: {}]  }
   0x1   :  { %s24_s23 = sshll.u32 %s5152_s4, 4  ;;  %s26_s25 = sshll.u32 %s3038_s24, 4  ;;  %s25_s23 = int_to_ptr.hbm [resolvable:$true] %s24_s23  ;;  %s27_s25 = int_to_ptr.vmem [resolvable:$true] %s26_s25 }
   0x2   :  { %s3040_s27 = smov 48  }
   0x3   :  { %32 = dma.hbm_to_vmem [thread:$0]  %s25_s23, 12288, %s27_s25, [#allocation3], %s3039_s26, %s3039_s26, %s3040_s27  }
   0x4   :  { %3036 = dma.done.wait [#allocation3], 12288  }
   0x5   :  { %3037 = vsyncadd [#allocation3], 4294955008  ;;  %v50_v0 = vld [vmem:[%s5150_s2 + $0x30] sm:$0xff]  ;;  %v51_v1 = vld [vmem:[%s5150_s2 + $0x38] sm:$0xff]  ;;  %vm70_vm0 = vcmask 130048   ;;  %v3041_v11 = vmov 0   ;;  %v286_v45 = vlaneseq }
   0x6   :  { %v44_v2 = vld [vmem:[%s5150_s2] sm:$0xff]  ;;  %100 = vmatpush.msra.mxu0 %v50_v0  ;;  %132 = vmatpush.msra.mxu1 %v51_v1  ;;  %v45_v3 = vld [vmem:[%s5150_s2 + $0x8] sm:$0xff]  ;;  %v46_v7 = vld [vmem:[%s5150_s2 + $0x10] sm:$0xff]  ;;  %vm328_vm2 = vcmask 326656  }
   0x7   :  { %v52_v4 = vld [vmem:[%s5150_s2 + $0x40] sm:$0xff]  ;;  %v53_v5 = vld [vmem:[%s5150_s2 + $0x48] sm:$0xff]  ;;  %v47_v8 = vld [vmem:[%s5150_s2 + $0x18] sm:$0xff]  ;;  %2657 = vset.pattern.permute.xlu0 %v3041_v11  ;;  %2658 = vset.pattern.permute.xlu1 %v3041_v11  ;;  %v3195_v59 = vand.u32 127, %v286_v45 }
   0x8   :  { %2648 = vmatpush.msra.mxu2 %v52_v4  ;;  %2650 = vmatpush.msra.mxu3 %v53_v5  ;;  %v39_v6 = vld [vmem:[%s5149_s1] sm:$0xff]  ;;  %v40_v9 = vld [vmem:[%s5149_s1 + $0x8] sm:$0xff]  ;;  %v41_v12 = vld [vmem:[%s5149_s1 + $0x10] sm:$0xff] }
   0x9   :  { %101 = vmatpush.msra.mxu0 %v44_v2  ;;  %133 = vmatpush.msra.mxu1 %v45_v3  ;;  %v278_v10 = vld [vmem:[%s5148_s0] sm:$0xff]  ;;  %v54_v13 = vld [vmem:[%s5150_s2 + $0x50] sm:$0xff]  ;;  %v55_v14 = vld [vmem:[%s5150_s2 + $0x58] sm:$0xff] }
   0xa   :  { %2538 = vmatmul.msk.f32.vlgmr.msra.gmra.mxu0 %vm70_vm0, %v39_v6  ;;  %2543 = vmatmul.msk.f32.vlgmr.msra.gmra.mxu1 %vm70_vm0, %v39_v6  ;;  %v48_v15 = vld [vmem:[%s5150_s2 + $0x20] sm:$0xff]  ;;  %v49_v16 = vld [vmem:[%s5150_s2 + $0x28] sm:$0xff]  ;;  %v42_v18 = vld [vmem:[%s5149_s1 + $0x18] sm:$0xff] }
   0xb   :  { %2649 = vmatpush.msra.mxu2 %v46_v7  ;;  %2651 = vmatpush.msra.mxu3 %v47_v8  ;;  %v279_v17 = vld [vmem:[%s5148_s0 + $0x8] sm:$0xff]  ;;  %v280_v19 = vld [vmem:[%s5148_s0 + $0x10] sm:$0xff]  ;;  %v43_v21 = vld [vmem:[%s5149_s1 + $0x20] sm:$0xff] }
   0xc   :  { %2549 = vmatmul.msk.f32.vlgmr.msra.gmra.mxu2 %vm70_vm0, %v40_v9  ;;  %2554 = vmatmul.msk.f32.vlgmr.msra.gmra.mxu3 %vm70_vm0, %v40_v9  ;;  %v284_v20 = vld [vmem:[%s5148_s0 + $0x30] sm:$0xff]  ;;  %v281_v22 = vld [vmem:[%s5148_s0 + $0x18] sm:$0xff]  ;;  %v282_v24 = vld [vmem:[%s5148_s0 + $0x20] sm:$0xff] }
   0xd   :  { %164 = vmatpush.msrb.mxu0 %v52_v4  ;;  %196 = vmatpush.msrb.mxu1 %v53_v5  ;;  %v285_v23 = vld [vmem:[%s5148_s0 + $0x38] sm:$0xff]  ;;  %v283_v25 = vld [vmem:[%s5148_s0 + $0x28] sm:$0xff]  ;;  %v3189_v40 = vld [vmem:[%s5151_s3] sm:$0x3f] }
   0xe   :  { %289 = vperm.xlu0 %2657, %v278_v10   ;;  %2659 = vset.pattern.permute.xlu2 %v3041_v11  ;;  %v60_v41 = vperm.slane %v3189_v40, 2  ;;  %v61_v42 = vperm.slane %v3189_v40, 3  ;;  %v58_v43 = vperm.slane %v3189_v40, 0  ;;  %v59_v44 = vperm.slane %v3189_v40, 1  ;;  %v3303_v45 = vld [vmem:[#allocation2 + $0x128] sm:$0xff] }
   0xf   :  { %165 = vmatpush.msrb.mxu0 %v46_v7  ;;  %197 = vmatpush.msrb.mxu1 %v47_v8  ;;  %v5161_v10 = vmov 0.0  }
  0x10   :  { %295 = vperm.xlu1 %2658, %v280_v19   ;;  %301 = vperm.xlu2 %2659, %v282_v24   ;;  %v3226_v19 = vld [vmem:[#allocation2 + $0x270] sm:$0xff] }
  0x11   :  { %228 = vmatpush.msra.mxu0 %v54_v13  ;;  %260 = vmatpush.msra.mxu1 %v55_v14  ;;  %v3211_v13 = vld [vmem:[#allocation2 + $0x2d8] sm:$0xff]  ;;  %v3213_v14 = vld [vmem:[#allocation2 + $0x2a0] sm:$0xff] }
  0x12   :  { %2539 = vmatmul.msk.f32.gmra.mxu0 %vm70_vm0, %v40_v9  ;;  %2544 = vmatmul.msk.f32.gmra.mxu1 %vm70_vm0, %v40_v9 }
  0x13   :  { %229 = vmatpush.msra.mxu0 %v48_v15  ;;  %261 = vmatpush.msra.mxu1 %v49_v16  ;;  %v3217_v16 = vld [vmem:[#allocation2 + $0x2a8] sm:$0xff] }
  0x14   :  { %2550 = vmatmul.msk.f32.gmra.mxu2 %vm70_vm0, %v41_v12  ;;  %2555 = vmatmul.msk.f32.gmra.mxu3 %vm70_vm0, %v41_v12 }
  0x16   :  { %292 = vperm.xlu0 %2657, %v279_v17  }
  0x18   :  { %298 = vperm.xlu1 %2658, %v281_v22   ;;  %304 = vperm.xlu2 %2659, %v283_v25   ;;  %v3235_v22 = vld [vmem:[#allocation2 + $0x240] sm:$0xff]  ;;  %v3247_v25 = vld [vmem:[#allocation2 + $0x210] sm:$0xff] }
  0x1a   :  { %2540 = vmatmul.msk.f32.gmra.mxu0 %vm70_vm0, %v41_v12  ;;  %2545 = vmatmul.msk.f32.gmra.mxu1 %vm70_vm0, %v41_v12 }
  0x1c   :  { %2551 = vmatmul.msk.f32.gmra.mxu2 %vm70_vm0, %v42_v18  ;;  %2556 = vmatmul.msk.f32.gmra.mxu3 %vm70_vm0, %v42_v18 }
  0x1e   :  { %307 = vperm.xlu0 %2657, %v284_v20   ;;  %v3228_v20 = vld [vmem:[#allocation2 + $0x278] sm:$0xff] }
  0x20   :  { %310 = vperm.xlu1 %2658, %v285_v23   ;;  %v3237_v23 = vld [vmem:[#allocation2 + $0x248] sm:$0xff] }
  0x22   :  { %2541 = vmatmul.msk.f32.gmra.mxu0 %vm70_vm0, %v42_v18  ;;  %2546 = vmatmul.msk.f32.gmra.mxu1 %vm70_vm0, %v42_v18 }
  0x24   :  { %2552 = vmatmul.msk.f32.gmra.mxu2 %vm70_vm0, %v43_v21  ;;  %2557 = vmatmul.msk.f32.gmra.mxu3 %vm70_vm0, %v43_v21 }
  0x2a   :  { %2542 = vmatmul.msk.f32.gmra.mxu0 %vm70_vm0, %v43_v21  ;;  %2547 = vmatmul.msk.f32.gmra.mxu1 %vm70_vm0, %v43_v21 }
  0x32   :  { %2548 = vmatmul.msk.f32.vlgmr.msrb.gmra.mxu0 %vm70_vm0, %v39_v6  ;;  %2553 = vmatmul.msk.f32.vlgmr.msrb.gmra.mxu1 %vm70_vm0, %v39_v6 }
  0x3a   :  { %2558 = vmatmul.msk.f32.vlgmr.msra.gmra.mxu0 %vm70_vm0, %v39_v6  ;;  %2563 = vmatmul.msk.f32.vlgmr.msra.gmra.mxu1 %vm70_vm0, %v39_v6 }
  0x42   :  { %2559 = vmatmul.msk.f32.gmra.mxu0 %vm70_vm0, %v40_v9  ;;  %2564 = vmatmul.msk.f32.gmra.mxu1 %vm70_vm0, %v40_v9 }
  0x4a   :  { %2560 = vmatmul.msk.f32.gmra.mxu0 %vm70_vm0, %v41_v12  ;;  %2565 = vmatmul.msk.f32.gmra.mxu1 %vm70_vm0, %v41_v12  ;;  %v3209_v12 = vld [vmem:[#allocation2 + $0x2d0] sm:$0xff] }
  0x52   :  { %2561 = vmatmul.msk.f32.gmra.mxu0 %vm70_vm0, %v42_v18  ;;  %2566 = vmatmul.msk.f32.gmra.mxu1 %vm70_vm0, %v42_v18 }
  0x5a   :  { %2562 = vmatmul.msk.f32.gmra.mxu0 %vm70_vm0, %v43_v21  ;;  %2567 = vmatmul.msk.f32.gmra.mxu1 %vm70_vm0, %v43_v21 }
  0x80   :  { %v290_v63 = vpop.permute.xlu0 %289 }
  0x81   :  { %vm312_vm1 = vcmp.eq.s32.totalorder %v290_v63, %v3195_v59 }
  0x82   :  { %v3199_v11 = vsel %vm312_vm1, 1.0, %v5161_v10  ;;  %v296_v24 = vpop.permute.xlu1 %295 }
  0x83   :  { %vm314_vm4 = vcmp.eq.s32.totalorder %v296_v24, %v3195_v59 }
  0x87   :  { %v103_v26 = vpop.f32.mrf.mxu0  ;;  %v135_v27 = vpop.f32.mrf.mxu1 }
  0x88   :  { %v104_v6 = vadd.f32 %v103_v26, %v58_v43  ;;  %v136_v9 = vadd.f32 %v135_v27, %v59_v44  ;;  %v293_v15 = vpop.permute.xlu0 %292  ;;  %v3249_v26 = vld [vmem:[#allocation2 + $0x218] sm:$0xff] }
  0x89   :  { %vm313_vm3 = vcmp.eq.s32.totalorder %v293_v15, %v3195_v59 }
  0x8a   :  { %v3233_v21 = vsel %vm313_vm3, 1.0, %v5161_v10 }
  0x8f   :  { %v106_v28 = vpop.f32.mrf.mxu0  ;;  %v138_v29 = vpop.f32.mrf.mxu1 }
  0x90   :  { %v170_v30 = vpop.f32.mrf.mxu2  ;;  %v202_v31 = vpop.f32.mrf.mxu3  ;;  %v107_v2 = vadd.f32 %v106_v28, %v58_v43  ;;  %v139_v3 = vadd.f32 %v138_v29, %v59_v44  ;;  %v3258_v29 = vld [vmem:[#allocation2 + $0x1e0] sm:$0xff] }
  0x91   :  { %v171_v0 = vadd.f32 %v170_v30, %v60_v41  ;;  %v203_v1 = vadd.f32 %v202_v31, %v61_v42  ;;  %v3260_v30 = vld [vmem:[#allocation2 + $0x1e8] sm:$0xff]  ;;  %v3265_v31 = vsel %vm314_vm4, 1.0, %v5161_v10  ;;  %v308_v15 = vpop.permute.xlu0 %307 }
  0x92   :  { %vm318_vm8 = vcmp.eq.s32.totalorder %v308_v15, %v3195_v59  ;;  %v3470_v15 = vld [vmem:[#allocation2 + $0x228] sm:$0xff] }
  0x97   :  { %v109_v32 = vpop.f32.mrf.mxu0  ;;  %v141_v33 = vpop.f32.mrf.mxu1 }
  0x98   :  { %v173_v34 = vpop.f32.mrf.mxu2  ;;  %v205_v35 = vpop.f32.mrf.mxu3  ;;  %v110_v58 = vadd.f32 %v109_v32, %v58_v43  ;;  %v142_v62 = vadd.f32 %v141_v33, %v59_v44  ;;  %v3269_v32 = vld [vmem:[#allocation2 + $0x1b0] sm:$0xff]  ;;  %v3271_v33 = vld [vmem:[#allocation2 + $0x1b8] sm:$0xff] }
  0x99   :  { %v174_v60 = vadd.f32 %v173_v34, %v60_v41  ;;  %v206_v61 = vadd.f32 %v205_v35, %v61_v42  ;;  %v3281_v34 = vld [vmem:[#allocation2 + $0x180] sm:$0xff]  ;;  %v3283_v35 = vld [vmem:[#allocation2 + $0x188] sm:$0xff] }
  0x9a   :  { %5404 = vst [vmem:[#allocation5_spill] sm:$0xff] %v3283_v35 }
  0x9f   :  { %v112_v36 = vpop.f32.mrf.mxu0  ;;  %v144_v37 = vpop.f32.mrf.mxu1 }
  0xa0   :  { %v176_v38 = vpop.f32.mrf.mxu2  ;;  %v208_v39 = vpop.f32.mrf.mxu3  ;;  %v113_v52 = vadd.f32 %v112_v36, %v58_v43  ;;  %v145_v57 = vadd.f32 %v144_v37, %v59_v44 }
  0xa1   :  { %v177_v53 = vadd.f32 %v176_v38, %v60_v41  ;;  %v209_v54 = vadd.f32 %v208_v39, %v61_v42  ;;  %v299_v36 = vpop.permute.xlu1 %298  ;;  %v3289_v39 = vld [vmem:[#allocation2 + $0x150] sm:$0xff] }
  0xa2   :  { %vm315_vm5 = vcmp.eq.s32.totalorder %v299_v36, %v3195_v59 }
  0xa7   :  { %v115_v46 = vpop.f32.mrf.mxu0  ;;  %v147_v47 = vpop.f32.mrf.mxu1 }
  0xa8   :  { %v179_v48 = vpop.f32.mrf.mxu2  ;;  %v211_v49 = vpop.f32.mrf.mxu3  ;;  %v116_v50 = vadd.f32 %v115_v46, %v58_v43  ;;  %v148_v51 = vadd.f32 %v147_v47, %v59_v44  ;;  %v3301_v44 = vld [vmem:[#allocation2 + $0x120] sm:$0xff]  ;;  %v3313_v46 = vld [vmem:[#allocation2 + $0xf0] sm:$0xff]  ;;  %v3315_v47 = vld [vmem:[#allocation2 + $0xf8] sm:$0xff] }
  0xa9   :  { %v180_v55 = vadd.f32 %v179_v48, %v60_v41  ;;  %v212_v56 = vadd.f32 %v211_v49, %v61_v42  ;;  %v302_v43 = vpop.permute.xlu2 %301 }
  0xaa   :  { %364 = vmatpush.msrb.mxu2 %v116_v50  ;;  %405 = vmatpush.msrb.mxu3 %v148_v51  ;;  %vm316_vm6 = vcmp.eq.s32.totalorder %v302_v43, %v3195_v59  ;;  %v3320_v50 = vld [vmem:[#allocation2 + $0xc0] sm:$0xff]  ;;  %v3322_v51 = vld [vmem:[#allocation2 + $0xc8] sm:$0xff]  ;;  %v3408_v43 = vld [vmem:[#allocation2 + $0x290] sm:$0xff] }
  0xab   :  { %446 = vmatpush.msrb.mxu0 %v180_v55  ;;  %487 = vmatpush.msrb.mxu1 %v212_v56  ;;  %5406 = vst [vmem:[#allocation7_spill] sm:$0xff] %v3322_v51  ;;  %v62_v55 = vperm.slane %v3189_v40, 4 }
  0xac   :  { %365 = vmatpush.msrb.mxu2 %v113_v52  ;;  %406 = vmatpush.msrb.mxu3 %v145_v57  ;;  %v3327_v52 = vsel %vm316_vm6, 1.0, %v5161_v10  ;;  %v3344_v57 = vld [vmem:[#allocation2 + $0x60] sm:$0xff] }
  0xad   :  { %447 = vmatpush.msrb.mxu0 %v177_v53  ;;  %488 = vmatpush.msrb.mxu1 %v209_v54  ;;  %v3331_v53 = vld [vmem:[#allocation2 + $0x90] sm:$0xff]  ;;  %v3333_v54 = vld [vmem:[#allocation2 + $0x98] sm:$0xff] }
  0xae   :  { %366 = vmatpush.msrb.mxu2 %v110_v58  ;;  %407 = vmatpush.msrb.mxu3 %v142_v62  ;;  %v3346_v58 = vld [vmem:[#allocation2 + $0x68] sm:$0xff] }
  0xaf   :  { %448 = vmatpush.msrb.mxu0 %v174_v60  ;;  %489 = vmatpush.msrb.mxu1 %v206_v61  ;;  %v167_v4 = vpop.f32.mrf.mxu0  ;;  %v199_v5 = vpop.f32.mrf.mxu1  ;;  %v63_v60 = vperm.slane %v3189_v40, 5 }
  0xb0   :  { %v168_v7 = vadd.f32 %v167_v4, %v60_v41  ;;  %v200_v8 = vadd.f32 %v199_v5, %v61_v42  ;;  %367 = vmatpush.msrb.mxu2 %v107_v2  ;;  %408 = vmatpush.msrb.mxu3 %v139_v3  ;;  %v3291_v41 = vld [vmem:[#allocation2 + $0x158] sm:$0xff]  ;;  %v3299_v42 = vsel %vm315_vm5, 1.0, %v5161_v10 }
  0xb1   :  { %449 = vmatpush.msrb.mxu0 %v171_v0  ;;  %490 = vmatpush.msrb.mxu1 %v203_v1  ;;  %5405 = vst [vmem:[#allocation6_spill] sm:$0xff] %v3291_v41  ;;  %v305_v56 = vpop.permute.xlu2 %304  ;;  %v3354_v1 = vld [vmem:[#allocation2 + $0x30] sm:$0xff]  ;;  %v3356_v2 = vld [vmem:[#allocation2 + $0x38] sm:$0xff] }
  0xb2   :  { %368 = vmatpush.msrb.mxu2 %v104_v6  ;;  %409 = vmatpush.msrb.mxu3 %v136_v9  ;;  %vm317_vm7 = vcmp.eq.s32.totalorder %v305_v56, %v3195_v59  ;;  %v3367_v6 = vld [vmem:[#allocation2] sm:$0xff]  ;;  %v3429_v56 = vld [vmem:[#allocation2 + $0x2e8] sm:$0xff] }
  0xb3   :  { %450 = vmatpush.msrb.mxu0 %v168_v7  ;;  %491 = vmatpush.msrb.mxu1 %v200_v8  ;;  %v3359_v4 = vsel %vm317_vm7, 1.0, %v5161_v10  ;;  %v3369_v7 = vld [vmem:[#allocation2 + $0x8] sm:$0xff] }
  0xb4   :  { %2568 = vmatmul.msk.f32.vlgmr.msrb.gmra.mxu2 %vm328_vm2, %v3199_v11  ;;  %2576 = vmatmul.msk.f32.vlgmr.msrb.gmra.mxu3 %vm328_vm2, %v3199_v11 }
  0xb5   :  { %2584 = vmatmul.msk.f32.vlgmr.msrb.gmra.mxu0 %vm328_vm2, %v3199_v11  ;;  %2592 = vmatmul.msk.f32.vlgmr.msrb.gmra.mxu1 %vm328_vm2, %v3199_v11 }
  0xb6   :  { %709 = vmatpush.msra.mxu0 %v3209_v12  ;;  %731 = vmatpush.msra.mxu1 %v3211_v13 }
  0xb7   :  { %v3219_v17 = vpop.f32.mrf.mxu0  ;;  %v3221_v18 = vpop.f32.mrf.mxu1 }
  0xb8   :  { %710 = vmatpush.msra.mxu0 %v3213_v14  ;;  %732 = vmatpush.msra.mxu1 %v3217_v16  ;;  %v232_v24 = vadd.f32 %v3219_v17, %v62_v55  ;;  %v3390_v17 = vld [vmem:[#allocation2 + $0x2f0] sm:$0xff] }
  0xba   :  { %711 = vmatpush.msra.mxu0 %v3226_v19  ;;  %733 = vmatpush.msra.mxu1 %v3228_v20 }
  0xbc   :  { %2569 = vmatmul.msk.f32.gmra.mxu2 %vm328_vm2, %v3233_v21  ;;  %2577 = vmatmul.msk.f32.gmra.mxu3 %vm328_vm2, %v3233_v21 }
  0xbd   :  { %2585 = vmatmul.msk.f32.gmra.mxu0 %vm328_vm2, %v3233_v21  ;;  %2593 = vmatmul.msk.f32.gmra.mxu1 %vm328_vm2, %v3233_v21 }
  0xbe   :  { %712 = vmatpush.msra.mxu0 %v3235_v22  ;;  %734 = vmatpush.msra.mxu1 %v3237_v23 }
  0xbf   :  { %v3254_v27 = vpop.f32.mrf.mxu0  ;;  %v3256_v28 = vpop.f32.mrf.mxu1 }
  0xc0   :  { %713 = vmatpush.msra.mxu0 %v3247_v25  ;;  %735 = vmatpush.msra.mxu1 %v3249_v26  ;;  %v235_v8 = vadd.f32 %v3254_v27, %v62_v55  ;;  %v267_v36 = vadd.f32 %v3256_v28, %v63_v60  ;;  %v3384_v27 = vsel %vm318_vm8, 1.0, %v5161_v10  ;;  %v3396_v28 = vld [vmem:[#allocation2 + $0x2c0] sm:$0xff] }
  0xc2   :  { %714 = vmatpush.msra.mxu0 %v3258_v29  ;;  %736 = vmatpush.msra.mxu1 %v3260_v30 }
  0xc4   :  { %2570 = vmatmul.msk.f32.gmra.mxu2 %vm328_vm2, %v3265_v31  ;;  %2578 = vmatmul.msk.f32.gmra.mxu3 %vm328_vm2, %v3265_v31 }
  0xc5   :  { %2586 = vmatmul.msk.f32.gmra.mxu0 %vm328_vm2, %v3265_v31  ;;  %2594 = vmatmul.msk.f32.gmra.mxu1 %vm328_vm2, %v3265_v31 }
  0xc6   :  { %715 = vmatpush.msra.mxu0 %v3269_v32  ;;  %737 = vmatpush.msra.mxu1 %v3271_v33 }
  0xc7   :  { %v237_v37 = vpop.f32.mrf.mxu0  ;;  %v3287_v38 = vpop.f32.mrf.mxu1 }
  0xc8   :  { %716 = vmatpush.msra.mxu0 %v3281_v34  ;;  %738 = vmatpush.msra.mxu1 %v3283_v35  ;;  %v238_v5 = vadd.f32 %v237_v37, %v62_v55  ;;  %v270_v9 = vadd.f32 %v3287_v38, %v63_v60  ;;  %v264_v37 = vadd.f32 %v3221_v18, %v63_v60  ;;  %v311_v18 = vpop.permute.xlu1 %310 }
  0xc9   :  { %vm319_vm9 = vcmp.eq.s32.totalorder %v311_v18, %v3195_v59  ;;  %v3414_v59 = vld [vmem:[#allocation2 + $0x260] sm:$0xff] }
  0xca   :  { %717 = vmatpush.msra.mxu0 %v3289_v39  ;;  %739 = vmatpush.msra.mxu1 %v3291_v41  ;;  %v3402_v38 = vsel %vm319_vm9, 1.0, %v5161_v10  ;;  %v3485_v18 = vld [vmem:[#allocation2 + $0x1c0] sm:$0xff] }
  0xcb   :  { %5422 = vst [vmem:[#allocation23_spill] sm:$0xff] %v3485_v18 }
  0xcc   :  { %2571 = vmatmul.msk.f32.gmra.mxu2 %vm328_vm2, %v3299_v42  ;;  %2579 = vmatmul.msk.f32.gmra.mxu3 %vm328_vm2, %v3299_v42 }
  0xcd   :  { %2587 = vmatmul.msk.f32.gmra.mxu0 %vm328_vm2, %v3299_v42  ;;  %2595 = vmatmul.msk.f32.gmra.mxu1 %vm328_vm2, %v3299_v42 }
  0xce   :  { %718 = vmatpush.msra.mxu0 %v3301_v44  ;;  %740 = vmatpush.msra.mxu1 %v3303_v45 }
  0xcf   :  { %v240_v48 = vpop.f32.mrf.mxu0  ;;  %v272_v49 = vpop.f32.mrf.mxu1 }
  0xd0   :  { %719 = vmatpush.msra.mxu0 %v3313_v46  ;;  %741 = vmatpush.msra.mxu1 %v3315_v47  ;;  %v241_v3 = vadd.f32 %v240_v48, %v62_v55  ;;  %v273_v40 = vadd.f32 %v272_v49, %v63_v60  ;;  %v3417_v48 = vld [vmem:[#allocation2 + $0x230] sm:$0xff]  ;;  %v3421_v49 = vld [vmem:[#allocation2 + $0x200] sm:$0xff] }
  0xd1   :  { %5407 = vst [vmem:[#allocation8_spill] sm:$0xff] %v3417_v48 }
  0xd2   :  { %720 = vmatpush.msra.mxu0 %v3320_v50  ;;  %742 = vmatpush.msra.mxu1 %v3322_v51  ;;  %5408 = vst [vmem:[#allocation9_spill] sm:$0xff] %v3421_v49 }
  0xd4   :  { %2572 = vmatmul.msk.f32.gmra.mxu2 %vm328_vm2, %v3327_v52  ;;  %2580 = vmatmul.msk.f32.gmra.mxu3 %vm328_vm2, %v3327_v52 }
  0xd5   :  { %2588 = vmatmul.msk.f32.gmra.mxu0 %vm328_vm2, %v3327_v52  ;;  %2596 = vmatmul.msk.f32.gmra.mxu1 %vm328_vm2, %v3327_v52 }
  0xd6   :  { %721 = vmatpush.msra.mxu0 %v3331_v53  ;;  %743 = vmatpush.msra.mxu1 %v3333_v54 }
  0xd7   :  { %v243_v61 = vpop.f32.mrf.mxu0  ;;  %v275_v62 = vpop.f32.mrf.mxu1 }
  0xd8   :  { %v244_v63 = vadd.f32 %v243_v61, %v62_v55  ;;  %v276_v0 = vadd.f32 %v275_v62, %v63_v60  ;;  %722 = vmatpush.msra.mxu0 %v3344_v57  ;;  %744 = vmatpush.msra.mxu1 %v3346_v58  ;;  %v3427_v55 = vld [vmem:[#allocation2 + $0x2e0] sm:$0xff]  ;;  %v3433_v60 = vld [vmem:[#allocation2 + $0x1d0] sm:$0xff]  ;;  %v3439_v62 = vld [vmem:[#allocation2 + $0x2b8] sm:$0xff] }
  0xd9   :  { %5409 = vst [vmem:[#allocation10_spill] sm:$0xff] %v3427_v55  ;;  %v3435_v61 = vld [vmem:[#allocation2 + $0x2b0] sm:$0xff] }
  0xda   :  { %528 = vmatpush.msra.mxu2 %v244_v63  ;;  %569 = vmatpush.msra.mxu3 %v276_v0  ;;  %5410 = vst [vmem:[#allocation11_spill] sm:$0xff] %v3433_v60  ;;  %v3444_v63 = vld [vmem:[#allocation2 + $0x280] sm:$0xff]  ;;  %v3448_v0 = vld [vmem:[#allocation2 + $0x288] sm:$0xff] }
  0xdb   :  { %723 = vmatpush.msra.mxu0 %v3354_v1  ;;  %745 = vmatpush.msra.mxu1 %v3356_v2  ;;  %5411 = vst [vmem:[#allocation12_spill] sm:$0xff] %v3435_v61 }
  0xdc   :  { %2573 = vmatmul.msk.f32.gmra.mxu2 %vm328_vm2, %v3359_v4  ;;  %2581 = vmatmul.msk.f32.gmra.mxu3 %vm328_vm2, %v3359_v4  ;;  %5413 = vst [vmem:[#allocation14_spill] sm:$0xff] %v3444_v63 }
  0xdd   :  { %2589 = vmatmul.msk.f32.gmra.mxu0 %vm328_vm2, %v3359_v4  ;;  %2597 = vmatmul.msk.f32.gmra.mxu1 %vm328_vm2, %v3359_v4 }
  0xde   :  { %529 = vmatpush.msra.mxu2 %v241_v3  ;;  %570 = vmatpush.msra.mxu3 %v273_v40  ;;  %v3453_v3 = vld [vmem:[#allocation2 + $0x170] sm:$0xff] }
  0xdf   :  { %724 = vmatpush.msra.mxu0 %v3367_v6  ;;  %746 = vmatpush.msra.mxu1 %v3369_v7  ;;  %5414 = vst [vmem:[#allocation15_spill] sm:$0xff] %v3453_v3  ;;  %v3455_v40 = vld [vmem:[#allocation2 + $0x250] sm:$0xff] }
  0xe0   :  { %530 = vmatpush.msra.mxu2 %v238_v5  ;;  %571 = vmatpush.msra.mxu3 %v270_v9  ;;  %5415 = vst [vmem:[#allocation16_spill] sm:$0xff] %v3455_v40  ;;  %v3458_v5 = vld [vmem:[#allocation2 + $0x258] sm:$0xff]  ;;  %v3466_v9 = vld [vmem:[#allocation2 + $0x220] sm:$0xff] }
  0xe1   :  { %797 = vmatpush.msrb.mxu0 %v3390_v17  ;;  %5417 = vst [vmem:[#allocation18_spill] sm:$0xff] %v3466_v9 }
  0xe2   :  { %531 = vmatpush.msra.mxu2 %v235_v8  ;;  %572 = vmatpush.msra.mxu3 %v267_v36  ;;  %v3464_v8 = vld [vmem:[#allocation2 + $0x140] sm:$0xff]  ;;  %v3475_v36 = vld [vmem:[#allocation2 + $0x1f0] sm:$0xff] }
  0xe3   :  { %798 = vmatpush.msrb.mxu0 %v3396_v28  ;;  %5416 = vst [vmem:[#allocation17_spill] sm:$0xff] %v3464_v8 }
  0xe4   :  { %532 = vmatpush.msra.mxu2 %v232_v24  ;;  %573 = vmatpush.msra.mxu3 %v264_v37  ;;  %v3473_v24 = vld [vmem:[#allocation2 + $0x110] sm:$0xff]  ;;  %5419 = vst [vmem:[#allocation20_spill] sm:$0xff] %v3475_v36  ;;  %v3483_v37 = vld [vmem:[#allocation2 + $0xe0] sm:$0xff] }
  0xe5   :  { %2574 = vmatmul.msk.f32.gmra.mxu2 %vm328_vm2, %v3384_v27  ;;  %2582 = vmatmul.msk.f32.gmra.mxu3 %vm328_vm2, %v3384_v27  ;;  %5418 = vst [vmem:[#allocation19_spill] sm:$0xff] %v3473_v24 }
  0xe6   :  { %2590 = vmatmul.msk.f32.gmra.mxu0 %vm328_vm2, %v3384_v27  ;;  %2598 = vmatmul.msk.f32.gmra.mxu1 %vm328_vm2, %v3384_v27  ;;  %5421 = vst [vmem:[#allocation22_spill] sm:$0xff] %v3483_v37 }
  0xe7   :  { %799 = vmatpush.msrb.mxu0 %v3408_v43  ;;  %753 = vmatpush.msrb.mxu2 %v3427_v55 }
  0xe8   :  { %775 = vmatpush.msrb.mxu3 %v3429_v56 }
  0xe9   :  { %800 = vmatpush.msrb.mxu0 %v3414_v59  ;;  %754 = vmatpush.msrb.mxu2 %v3435_v61 }
  0xea   :  { %776 = vmatpush.msrb.mxu3 %v3439_v62 }
  0xeb   :  { %801 = vmatpush.msrb.mxu0 %v3417_v48  ;;  %755 = vmatpush.msrb.mxu2 %v3444_v63  ;;  %v3521_v48 = vld [vmem:[#allocation2 + $0x138] sm:$0xff] }
  0xec   :  { %777 = vmatpush.msrb.mxu3 %v3448_v0  ;;  %5432 = vst [vmem:[#allocation33_spill] sm:$0xff] %v3521_v48 }
  0xed   :  { %2575 = vmatmul.msk.f32.gmra.mxu2 %vm328_vm2, %v3402_v38  ;;  %2583 = vmatmul.msk.f32.gmra.mxu3 %vm328_vm2, %v3402_v38 }
  0xee   :  { %2591 = vmatmul.msk.f32.gmra.mxu0 %vm328_vm2, %v3402_v38  ;;  %2599 = vmatmul.msk.f32.gmra.mxu1 %vm328_vm2, %v3402_v38 }
  0xef   :  { %802 = vmatpush.msrb.mxu0 %v3421_v49  ;;  %756 = vmatpush.msrb.mxu2 %v3455_v40  ;;  %v3514_v49 = vld [vmem:[#allocation2 + $0x50] sm:$0xff] }
  0xf0   :  { %778 = vmatpush.msrb.mxu3 %v3458_v5  ;;  %5430 = vst [vmem:[#allocation31_spill] sm:$0xff] %v3514_v49 }
  0xf1   :  { %803 = vmatpush.msrb.mxu0 %v3433_v60  ;;  %757 = vmatpush.msrb.mxu2 %v3466_v9  ;;  %v3509_v60 = vld [vmem:[#allocation2 + $0x160] sm:$0xff] }
  0xf2   :  { %779 = vmatpush.msrb.mxu3 %v3470_v15  ;;  %5428 = vst [vmem:[#allocation29_spill] sm:$0xff] %v3509_v60 }
  0xf3   :  { %758 = vmatpush.msrb.mxu2 %v3475_v36 }
  0xf5   :  { %2600 = vmatmul.msk.f32.vlgmr.msra.gmra.mxu2 %vm328_vm2, %v3199_v11  ;;  %2608 = vmatmul.msk.f32.vlgmr.msra.gmra.mxu3 %vm328_vm2, %v3199_v11  ;;  %v3442_v11 = vld [vmem:[#allocation2 + $0x1a0] sm:$0xff] }
  0xf6   :  { %725 = vmatmul.f32.vlgmr.msra.gmra.mxu0 %v5161_v10  ;;  %747 = vmatmul.f32.vlgmr.msra.gmra.mxu1 %v5161_v10  ;;  %5412 = vst [vmem:[#allocation13_spill] sm:$0xff] %v3442_v11 }
  0xf7   :  { %804 = vmatpush.msrb.mxu0 %v3442_v11  ;;  %759 = vmatpush.msrb.mxu2 %v3485_v18  ;;  %v3497_v11 = vld [vmem:[#allocation2 + $0x190] sm:$0xff] }
  0xf8   :  { %5425 = vst [vmem:[#allocation26_spill] sm:$0xff] %v3497_v11 }
  0xf9   :  { %805 = vmatpush.msrb.mxu0 %v3453_v3  ;;  %v3491_v3 = vld [vmem:[#allocation2 + $0x1c8] sm:$0xff]  ;;  %760 = vmatpush.msrb.mxu2 %v3497_v11 }
  0xfa   :  { %5423 = vst [vmem:[#allocation24_spill] sm:$0xff] %v3491_v3 }
  0xfb   :  { %806 = vmatpush.msrb.mxu0 %v3464_v8  ;;  %v3493_v8 = vld [vmem:[#allocation2 + $0xb0] sm:$0xff]  ;;  %761 = vmatpush.msrb.mxu2 %v3509_v60 }
  0xfc   :  { %5424 = vst [vmem:[#allocation25_spill] sm:$0xff] %v3493_v8 }
  0xfd   :  { %2601 = vmatmul.msk.f32.gmra.mxu2 %vm328_vm2, %v3233_v21  ;;  %2609 = vmatmul.msk.f32.gmra.mxu3 %vm328_vm2, %v3233_v21  ;;  %v3480_v21 = vld [vmem:[#allocation2 + $0x1f8] sm:$0xff] }
  0xfe   :  { %728 = vmatmul.f32.gmra.mxu0 %v5161_v10  ;;  %5420 = vst [vmem:[#allocation21_spill] sm:$0xff] %v3480_v21  ;;  %750 = vmatmul.f32.gmra.mxu1 %v5161_v10  ;;  %v3503_v10 = vld [vmem:[#allocation2 + $0x198] sm:$0xff] }
  0xff   :  { %807 = vmatpush.msrb.mxu0 %v3473_v24  ;;  %780 = vmatpush.msrb.mxu3 %v3480_v21  ;;  %5426 = vst [vmem:[#allocation27_spill] sm:$0xff] %v3503_v10  ;;  %v3505_v24 = vld [vmem:[#allocation2 + $0x80] sm:$0xff]  ;;  %v3557_v21 = vld [vmem:[#allocation2 + $0x78] sm:$0xff] }
 0x100   :  { %5427 = vst [vmem:[#allocation28_spill] sm:$0xff] %v3505_v24 }
 0x101   :  { %808 = vmatpush.msrb.mxu0 %v3483_v37  ;;  %781 = vmatpush.msrb.mxu3 %v3491_v3  ;;  %v3512_v37 = vld [vmem:[#allocation2 + $0x168] sm:$0xff]  ;;  %v3523_v3 = vld [vmem:[#allocation2 + $0x20] sm:$0xff]  ;;  %5440 = vst [vmem:[#allocation40_spill] sm:$0xff] %v3557_v21 }
 0x102   :  { %5429 = vst [vmem:[#allocation30_spill] sm:$0xff] %v3512_v37 }
 0x103   :  { %809 = vmatpush.msrb.mxu0 %v3493_v8  ;;  %782 = vmatpush.msrb.mxu3 %v3503_v10  ;;  %5433 = vst [vmem:[#allocation34_spill] sm:$0xff] %v3523_v3  ;;  %v3528_v8 = vld [vmem:[#allocation2 + $0x100] sm:$0xff]  ;;  %v3538_v10 = vld [vmem:[#allocation2 + $0xd0] sm:$0xff] }
 0x104   :  { %5434 = vst [vmem:[#allocation35_spill] sm:$0xff] %v3528_v8 }
 0x105   :  { %2602 = vmatmul.msk.f32.gmra.mxu2 %vm328_vm2, %v3265_v31  ;;  %2610 = vmatmul.msk.f32.gmra.mxu3 %vm328_vm2, %v3265_v31  ;;  %v3518_v31 = vld [vmem:[#allocation2 + $0x130] sm:$0xff]  ;;  %5435 = vst [vmem:[#allocation36_spill] sm:$0xff] %v3538_v10 }
 0x106   :  { %810 = vmatpush.msrb.mxu0 %v3505_v24  ;;  %5431 = vst [vmem:[#allocation32_spill] sm:$0xff] %v3518_v31  ;;  %783 = vmatpush.msrb.mxu3 %v3512_v37  ;;  %v3532_v24 = vld [vmem:[#allocation2 + $0x108] sm:$0xff]  ;;  %v5436_v37 = vmov 0.0  }
 0x107   :  { %762 = vmatpush.msrb.mxu2 %v3518_v31 }
 0x108   :  { %811 = vmatpush.msrb.mxu0 %v3514_v49  ;;  %784 = vmatpush.msrb.mxu3 %v3521_v48  ;;  %v3542_v49 = vld [vmem:[#allocation2 + $0xd8] sm:$0xff]  ;;  %v3545_v48 = vld [vmem:[#allocation2 + $0xa0] sm:$0xff] }
 0x109   :  { %763 = vmatpush.msrb.mxu2 %v3528_v8  ;;  %5437 = vst [vmem:[#allocation37_spill] sm:$0xff] %v3542_v49 }
 0x10a   :  { %812 = vmatpush.msrb.mxu0 %v3523_v3  ;;  %785 = vmatpush.msrb.mxu3 %v3532_v24  ;;  %5438 = vst [vmem:[#allocation38_spill] sm:$0xff] %v3545_v48  ;;  %v3549_v3 = vld [vmem:[#allocation2 + $0xa8] sm:$0xff] }
 0x10b   :  { %813 = vmatmul.f32.vlgmr.msrb.gmra.mxu0 %v5436_v37  ;;  %764 = vmatpush.msrb.mxu2 %v3538_v10 }
 0x10c   :  { %979 = vmatpush.msra.mxu0 %v3427_v55  ;;  %786 = vmatpush.msrb.mxu3 %v3542_v49  ;;  %v3561_v55 = vld [vmem:[#allocation2 + $0x40] sm:$0xff]  ;;  %v3567_v49 = vld [vmem:[#allocation2 + $0x48] sm:$0xff] }
 0x10d   :  { %2603 = vmatmul.msk.f32.gmra.mxu2 %vm328_vm2, %v3299_v42  ;;  %2611 = vmatmul.msk.f32.gmra.mxu3 %vm328_vm2, %v3299_v42  ;;  %v3552_v42 = vld [vmem:[#allocation2 + $0x70] sm:$0xff]  ;;  %5441 = vst [vmem:[#allocation41_spill] sm:$0xff] %v3561_v55 }
 0x10e   :  { %5439 = vst [vmem:[#allocation39_spill] sm:$0xff] %v3552_v42  ;;  %980 = vmatpush.msra.mxu0 %v3435_v61  ;;  %765 = vmatpush.msrb.mxu2 %v3545_v48  ;;  %v3571_v61 = vld [vmem:[#allocation2 + $0x10] sm:$0xff] }
 0x10f   :  { %787 = vmatpush.msrb.mxu3 %v3549_v3  ;;  %5442 = vst [vmem:[#allocation42_spill] sm:$0xff] %v3567_v49 }
 0x110   :  { %981 = vmatpush.msra.mxu0 %v3444_v63  ;;  %766 = vmatpush.msrb.mxu2 %v3552_v42  ;;  %5443 = vst [vmem:[#allocation43_spill] sm:$0xff] %v3571_v61  ;;  %v3574_v63 = vld [vmem:[#allocation2 + $0x18] sm:$0xff] }
 0x111   :  { %788 = vmatpush.msrb.mxu3 %v3557_v21  ;;  %5444 = vst [vmem:[#allocation44_spill] sm:$0xff] %v3574_v63  ;;  %v3585_v21 = vld [vmem:[#allocation2 + $0x2c8] sm:$0xff] }
 0x112   :  { %767 = vmatpush.msrb.mxu2 %v3561_v55  ;;  %982 = vmatpush.msra.mxu0 %v3455_v40  ;;  %v3598_v40 = vld [vmem:[#allocation2 + $0x268] sm:$0xff] }
 0x113   :  { %815 = vmatmul.f32.gmra.mxu0 %v5436_v37  ;;  %789 = vmatpush.msrb.mxu3 %v3567_v49 }
 0x114   :  { %768 = vmatpush.msrb.mxu2 %v3571_v61  ;;  %983 = vmatpush.msra.mxu0 %v3466_v9  ;;  %v3594_v9 = vld [vmem:[#allocation2 + $0x298] sm:$0xff] }
 0x115   :  { %2604 = vmatmul.msk.f32.gmra.mxu2 %vm328_vm2, %v3327_v52  ;;  %2612 = vmatmul.msk.f32.gmra.mxu3 %vm328_vm2, %v3327_v52  ;;  %v3581_v52 = vld [vmem:[#allocation2 + $0x2f8] sm:$0xff] }
 0x116   :  { %790 = vmatpush.msrb.mxu3 %v3574_v63  ;;  %935 = vmatpush.msra.mxu2 %v3209_v12 }
 0x117   :  { %819 = vmatpush.msrb.mxu1 %v3581_v52  ;;  %984 = vmatpush.msra.mxu0 %v3475_v36  ;;  %v3610_v36 = vld [vmem:[#allocation2 + $0x208] sm:$0xff] }
 0x118   :  { %957 = vmatpush.msra.mxu3 %v3211_v13  ;;  %936 = vmatpush.msra.mxu2 %v3213_v14 }
 0x119   :  { %820 = vmatpush.msrb.mxu1 %v3585_v21  ;;  %985 = vmatpush.msra.mxu0 %v3485_v18  ;;  %v3624_v18 = vld [vmem:[#allocation2 + $0x1a8] sm:$0xff] }
 0x11a   :  { %958 = vmatpush.msra.mxu3 %v3217_v16  ;;  %937 = vmatpush.msra.mxu2 %v3226_v19 }
 0x11b   :  { %821 = vmatpush.msrb.mxu1 %v3594_v9  ;;  %986 = vmatpush.msra.mxu0 %v3497_v11  ;;  %v3620_v11 = vld [vmem:[#allocation2 + $0x1d8] sm:$0xff] }
 0x11c   :  { %959 = vmatpush.msra.mxu3 %v3228_v20  ;;  %938 = vmatpush.msra.mxu2 %v3235_v22 }
 0x11d   :  { %2605 = vmatmul.msk.f32.gmra.mxu2 %vm328_vm2, %v3359_v4  ;;  %2613 = vmatmul.msk.f32.gmra.mxu3 %vm328_vm2, %v3359_v4  ;;  %v3607_v4 = vld [vmem:[#allocation2 + $0x238] sm:$0xff] }
 0x11e   :  { %822 = vmatpush.msrb.mxu1 %v3598_v40  ;;  %960 = vmatpush.msra.mxu3 %v3237_v23 }
 0x11f   :  { %939 = vmatpush.msra.mxu2 %v3247_v25  ;;  %987 = vmatpush.msra.mxu0 %v3509_v60  ;;  %v3636_v60 = vld [vmem:[#allocation2 + $0x148] sm:$0xff] }
 0x120   :  { %823 = vmatpush.msrb.mxu1 %v3607_v4  ;;  %961 = vmatpush.msra.mxu3 %v3249_v26 }
 0x121   :  { %940 = vmatpush.msra.mxu2 %v3258_v29  ;;  %988 = vmatpush.msra.mxu0 %v3518_v31  ;;  %v3650_v31 = vld [vmem:[#allocation2 + $0xe8] sm:$0xff] }
 0x122   :  { %824 = vmatpush.msrb.mxu1 %v3610_v36  ;;  %962 = vmatpush.msra.mxu3 %v3260_v30 }
 0x123   :  { %941 = vmatpush.msra.mxu2 %v3269_v32  ;;  %989 = vmatpush.msra.mxu0 %v3528_v8  ;;  %v3646_v8 = vld [vmem:[#allocation2 + $0x118] sm:$0xff] }
 0x124   :  { %825 = vmatpush.msrb.mxu1 %v3620_v11  ;;  %963 = vmatpush.msra.mxu3 %v3271_v33 }
 0x125   :  { %2606 = vmatmul.msk.f32.gmra.mxu2 %vm328_vm2, %v3384_v27  ;;  %2614 = vmatmul.msk.f32.gmra.mxu3 %vm328_vm2, %v3384_v27  ;;  %v3633_v27 = vld [vmem:[#allocation2 + $0x178] sm:$0xff] }
 0x126   :  { %826 = vmatpush.msrb.mxu1 %v3624_v18  ;;  %942 = vmatpush.msra.mxu2 %v3281_v34 }
 0x127   :  { %964 = vmatpush.msra.mxu3 %v3283_v35  ;;  %990 = vmatpush.msra.mxu0 %v3538_v10  ;;  %v3666_v35 = vld [vmem:[#allocation2 + $0x88] sm:$0xff] }
 0x128   :  { %827 = vmatpush.msrb.mxu1 %v3633_v27  ;;  %943 = vmatpush.msra.mxu2 %v3289_v39  ;;  %5447 = vst [vmem:[#allocation47_spill] sm:$0xff] %v3666_v35 }
 0x129   :  { %965 = vmatpush.msra.mxu3 %v3291_v41  ;;  %991 = vmatpush.msra.mxu0 %v3545_v48  ;;  %v3663_v41 = vld [vmem:[#allocation2 + $0xb8] sm:$0xff] }
 0x12a   :  { %828 = vmatpush.msrb.mxu1 %v3636_v60  ;;  %944 = vmatpush.msra.mxu2 %v3301_v44 }
 0x12b   :  { %966 = vmatpush.msra.mxu3 %v3303_v45  ;;  %992 = vmatpush.msra.mxu0 %v3552_v42 }
 0x12c   :  { %829 = vmatpush.msrb.mxu1 %v3646_v8  ;;  %945 = vmatpush.msra.mxu2 %v3313_v46 }
 0x12d   :  { %2607 = vmatmul.msk.f32.gmra.mxu2 %vm328_vm2, %v3402_v38  ;;  %2615 = vmatmul.msk.f32.gmra.mxu3 %vm328_vm2, %v3402_v38 }
 0x12e   :  { %830 = vmatpush.msrb.mxu1 %v3650_v31  ;;  %967 = vmatpush.msra.mxu3 %v3315_v47 }
 0x12f   :  { %946 = vmatpush.msra.mxu2 %v3320_v50  ;;  %993 = vmatpush.msra.mxu0 %v3561_v55 }
 0x130   :  { %831 = vmatpush.msrb.mxu1 %v3663_v41  ;;  %968 = vmatpush.msra.mxu3 %v3322_v51 }
 0x131   :  { %947 = vmatpush.msra.mxu2 %v3331_v53  ;;  %994 = vmatpush.msra.mxu0 %v3571_v61 }
 0x132   :  { %v3658_v38 = vpop.f32.mrf.mxu0  ;;  %v3660_v10 = vpop.f32.mrf.mxu1  ;;  %832 = vmatpush.msrb.mxu1 %v3666_v35  ;;  %969 = vmatpush.msra.mxu3 %v3333_v54 }
 0x133   :  { %5445 = vst [vmem:[#allocation45_spill] sm:$0xff] %v3658_v38  ;;  %v3682_v38 = vld [vmem:[#allocation2 + $0x28] sm:$0xff]  ;;  %948 = vmatpush.msra.mxu2 %v3344_v57  ;;  %1161 = vmatpush.msrb.mxu0 %v3209_v12 }
 0x134   :  { %5446 = vst [vmem:[#allocation46_spill] sm:$0xff] %v3660_v10  ;;  %v3674_v10 = vld [vmem:[#allocation2 + $0x58] sm:$0xff]  ;;  %970 = vmatpush.msra.mxu3 %v3346_v58 }
 0x135   :  { %769 = vmatmul.f32.vlgmr.msrb.gmra.mxu2 %v5436_v37  ;;  %791 = vmatmul.f32.vlgmr.msrb.gmra.mxu3 %v5436_v37  ;;  %5448 = vst [vmem:[#allocation48_spill] sm:$0xff] %v3674_v10 }
 0x136   :  { %5449 = vst [vmem:[#allocation49_spill] sm:$0xff] %v3682_v38  ;;  %833 = vmatpush.msrb.mxu1 %v3674_v10  ;;  %949 = vmatpush.msra.mxu2 %v3354_v1 }
 0x137   :  { %v3678_v42 = vpop.f32.mrf.mxu2  ;;  %v3680_v48 = vpop.f32.mrf.mxu3  ;;  %971 = vmatpush.msra.mxu3 %v3356_v2  ;;  %1162 = vmatpush.msrb.mxu0 %v3213_v14  ;;  %v5456_v14 = vld [vmem:[#allocation21_spill] sm:$0xff] }
 0x138   :  { %834 = vmatpush.msrb.mxu1 %v3682_v38  ;;  %950 = vmatpush.msra.mxu2 %v3367_v6 }
 0x139   :  { %835 = vmatmul.f32.vlgmr.msrb.gmra.mxu1 %v5436_v37  ;;  %972 = vmatpush.msra.mxu3 %v3369_v7 }
 0x13a   :  { %v3690_v55 = vpop.f32.mrf.mxu0  ;;  %v3692_v51 = vpop.f32.mrf.mxu1  ;;  %1001 = vmatpush.msra.mxu1 %v3429_v56  ;;  %1023 = vmatpush.msrb.mxu2 %v3390_v17 }
 0x13b   :  { %5450 = vst [vmem:[#allocation50_spill] sm:$0xff] %v3690_v55  ;;  %1045 = vmatpush.msrb.mxu3 %v3581_v52  ;;  %1163 = vmatpush.msrb.mxu0 %v3226_v19  ;;  %v5459_v19 = vld [vmem:[#allocation8_spill] sm:$0xff] }
 0x13c   :  { %5451 = vst [vmem:[#allocation51_spill] sm:$0xff] %v3692_v51  ;;  %1002 = vmatpush.msra.mxu1 %v3439_v62  ;;  %1024 = vmatpush.msrb.mxu2 %v3396_v28 }
 0x13d   :  { %793 = vmatmul.f32.gmra.mxu3 %v5436_v37  ;;  %772 = vmatmul.f32.gmra.mxu2 %v5436_v37 }
 0x13e   :  { %1003 = vmatpush.msra.mxu1 %v3448_v0  ;;  %1046 = vmatpush.msrb.mxu3 %v3585_v21 }
 0x13f   :  { %v3704_v12 = vpop.f32.mrf.mxu2  ;;  %v3706_v51 = vpop.f32.mrf.mxu3  ;;  %1025 = vmatpush.msrb.mxu2 %v3408_v43  ;;  %1164 = vmatpush.msrb.mxu0 %v3235_v22 }
 0x140   :  { %5452 = vst [vmem:[#allocation52_spill] sm:$0xff] %v3704_v12  ;;  %1004 = vmatpush.msra.mxu1 %v3458_v5  ;;  %1047 = vmatpush.msrb.mxu3 %v3594_v9 }
 0x141   :  { %5453 = vst [vmem:[#allocation53_spill] sm:$0xff] %v3706_v51  ;;  %837 = vmatmul.f32.gmra.mxu1 %v5436_v37  ;;  %1026 = vmatpush.msrb.mxu2 %v3414_v59  ;;  %v5460_v37 = vld [vmem:[#allocation24_spill] sm:$0xff]  ;;  %v5461_v51 = vld [vmem:[#allocation9_spill] sm:$0xff] }
 0x142   :  { %v3714_v55 = vpop.f32.mrf.mxu0  ;;  %v3716_v61 = vpop.f32.mrf.mxu1  ;;  %1005 = vmatpush.msra.mxu1 %v3470_v15  ;;  %1048 = vmatpush.msrb.mxu3 %v3598_v40 }
 0x143   :  { %5454 = vst [vmem:[#allocation54_spill] sm:$0xff] %v3714_v55  ;;  %1027 = vmatpush.msrb.mxu2 %v5459_v19  ;;  %1165 = vmatpush.msrb.mxu0 %v3247_v25  ;;  %v5466_v25 = vld [vmem:[#allocation30_spill] sm:$0xff] }
 0x144   :  { %5455 = vst [vmem:[#allocation55_spill] sm:$0xff] %v3716_v61  ;;  %1006 = vmatpush.msra.mxu1 %v5456_v14  ;;  %1049 = vmatpush.msrb.mxu3 %v3607_v4  ;;  %v5464_v14 = vld [vmem:[#allocation27_spill] sm:$0xff] }
 0x145   :  { %1028 = vmatpush.msrb.mxu2 %v5461_v51  ;;  %1166 = vmatpush.msrb.mxu0 %v3258_v29  ;;  %v5468_v29 = vld [vmem:[#allocation33_spill] sm:$0xff] }
 0x146   :  { %1007 = vmatpush.msra.mxu1 %v5460_v37  ;;  %1050 = vmatpush.msrb.mxu3 %v3610_v36 }
 0x147   :  { %v3728_v61 = vpop.f32.mrf.mxu2  ;;  %v3730_v55 = vpop.f32.mrf.mxu3  ;;  %1167 = vmatpush.msrb.mxu0 %v3269_v32  ;;  %v5472_v32 = vld [vmem:[#allocation17_spill] sm:$0xff] }
 0x148   :  { %5457 = vst [vmem:[#allocation56_spill] sm:$0xff] %v3728_v61  ;;  %1008 = vmatpush.msra.mxu1 %v5464_v14  ;;  %1051 = vmatpush.msrb.mxu3 %v3620_v11  ;;  %v5467_v61 = vld [vmem:[#allocation13_spill] sm:$0xff]  ;;  %v5471_v14 = vld [vmem:[#allocation15_spill] sm:$0xff] }
 0x149   :  { %5458 = vst [vmem:[#allocation57_spill] sm:$0xff] %v3730_v55  ;;  %v5465_v55 = vld [vmem:[#allocation11_spill] sm:$0xff]  ;;  %1168 = vmatpush.msrb.mxu0 %v3281_v34 }
 0x14a   :  { %v3738_v22 = vpop.f32.mrf.mxu0  ;;  %v3740_v12 = vpop.f32.mrf.mxu1  ;;  %1029 = vmatpush.msrb.mxu2 %v5465_v55  ;;  %1009 = vmatpush.msra.mxu1 %v5466_v25  ;;  %v5475_v25 = vld [vmem:[#allocation37_spill] sm:$0xff] }
 0x14b   :  { %5462 = vst [vmem:[#allocation8_spill] sm:$0xff] %v3738_v22  ;;  %1052 = vmatpush.msrb.mxu3 %v3624_v18  ;;  %1169 = vmatpush.msrb.mxu0 %v3289_v39  ;;  %v5477_v39 = vld [vmem:[#allocation22_spill] sm:$0xff] }
 0x14c   :  { %5463 = vst [vmem:[#allocation24_spill] sm:$0xff] %v3740_v12  ;;  %1030 = vmatpush.msrb.mxu2 %v5467_v61  ;;  %1010 = vmatpush.msra.mxu1 %v5468_v29 }
 0x14d   :  { %1053 = vmatpush.msrb.mxu3 %v3633_v27  ;;  %1170 = vmatpush.msrb.mxu0 %v3301_v44  ;;  %v5478_v44 = vld [vmem:[#allocation40_spill] sm:$0xff] }
 0x14e   :  { %1031 = vmatpush.msrb.mxu2 %v5471_v14  ;;  %1011 = vmatpush.msra.mxu1 %v3532_v24 }
 0x14f   :  { %v3752_v12 = vpop.f32.mrf.mxu2  ;;  %v3754_v22 = vpop.f32.mrf.mxu3  ;;  %1054 = vmatpush.msrb.mxu3 %v3636_v60  ;;  %1171 = vmatpush.msrb.mxu0 %v3313_v46  ;;  %v5482_v46 = vld [vmem:[#allocation28_spill] sm:$0xff] }
 0x150   :  { %5469 = vst [vmem:[#allocation9_spill] sm:$0xff] %v3752_v12  ;;  %1032 = vmatpush.msrb.mxu2 %v5472_v32  ;;  %1012 = vmatpush.msra.mxu1 %v5475_v25  ;;  %v5481_v12 = vld [vmem:[#allocation25_spill] sm:$0xff] }
 0x151   :  { %5470 = vst [vmem:[#allocation11_spill] sm:$0xff] %v3754_v22  ;;  %v5476_v22 = vld [vmem:[#allocation19_spill] sm:$0xff]  ;;  %1055 = vmatpush.msrb.mxu3 %v3646_v8  ;;  %1172 = vmatpush.msrb.mxu0 %v3320_v50 }
 0x152   :  { %v3762_v34 = vpop.f32.mrf.mxu0  ;;  %v3764_v29 = vpop.f32.mrf.mxu1  ;;  %1033 = vmatpush.msrb.mxu2 %v5476_v22  ;;  %1013 = vmatpush.msra.mxu1 %v3549_v3 }
 0x153   :  { %5473 = vst [vmem:[#allocation13_spill] sm:$0xff] %v3762_v34  ;;  %1056 = vmatpush.msrb.mxu3 %v3650_v31  ;;  %1173 = vmatpush.msrb.mxu0 %v3331_v53  ;;  %v5486_v53 = vld [vmem:[#allocation34_spill] sm:$0xff] }
 0x154   :  { %5474 = vst [vmem:[#allocation15_spill] sm:$0xff] %v3764_v29  ;;  %1034 = vmatpush.msrb.mxu2 %v5477_v39  ;;  %1014 = vmatpush.msra.mxu1 %v5478_v44 }
 0x155   :  { %1057 = vmatpush.msrb.mxu3 %v3663_v41  ;;  %1174 = vmatpush.msrb.mxu0 %v3344_v57 }
 0x156   :  { %1035 = vmatpush.msrb.mxu2 %v5481_v12  ;;  %1015 = vmatpush.msra.mxu1 %v3567_v49 }
 0x157   :  { %v3776_v34 = vpop.f32.mrf.mxu2  ;;  %v3778_v29 = vpop.f32.mrf.mxu3  ;;  %1058 = vmatpush.msrb.mxu3 %v3666_v35  ;;  %1175 = vmatpush.msrb.mxu0 %v3354_v1 }
 0x158   :  { %5479 = vst [vmem:[#allocation17_spill] sm:$0xff] %v3776_v34  ;;  %1036 = vmatpush.msrb.mxu2 %v5482_v46  ;;  %1016 = vmatpush.msra.mxu1 %v3574_v63 }
 0x159   :  { %5480 = vst [vmem:[#allocation37_spill] sm:$0xff] %v3778_v29  ;;  %v5485_v29 = vld [vmem:[#allocation31_spill] sm:$0xff]  ;;  %1059 = vmatpush.msrb.mxu3 %v3674_v10  ;;  %1176 = vmatpush.msrb.mxu0 %v3367_v6  ;;  %v5493_v6 = vld [vmem:[#allocation5_spill] sm:$0xff] }
 0x15a   :  { %v3786_v50 = vpop.f32.mrf.mxu0  ;;  %v3788_v44 = vpop.f32.mrf.mxu1  ;;  %1037 = vmatpush.msrb.mxu2 %v5485_v29  ;;  %1183 = vmatpush.msrb.mxu1 %v3211_v13 }
 0x15b   :  { %5483 = vst [vmem:[#allocation19_spill] sm:$0xff] %v3786_v50  ;;  %1060 = vmatpush.msrb.mxu3 %v3682_v38 }
 0x15c   :  { %5484 = vst [vmem:[#allocation22_spill] sm:$0xff] %v3788_v44  ;;  %1038 = vmatpush.msrb.mxu2 %v5486_v53  ;;  %1184 = vmatpush.msrb.mxu1 %v3217_v16 }
 0x15e   :  { %1185 = vmatpush.msrb.mxu1 %v3228_v20  ;;  %v5495_v20 = vld [vmem:[#allocation6_spill] sm:$0xff] }
 0x15f   :  { %v3800_v57 = vpop.f32.mrf.mxu2  ;;  %v3802_v50 = vpop.f32.mrf.mxu3 }
 0x160   :  { %5487 = vst [vmem:[#allocation25_spill] sm:$0xff] %v3800_v57  ;;  %1186 = vmatpush.msrb.mxu1 %v3237_v23 }
 0x161   :  { %5488 = vst [vmem:[#allocation28_spill] sm:$0xff] %v3802_v50 }
 0x162   :  { %1187 = vmatpush.msrb.mxu1 %v3249_v26 }
 0x163   :  { %v3806_v13 = vpop.f32.mrf.mxu0  ;;  %v3808_v34 = vpop.f32.mrf.mxu1 }
 0x164   :  { %5489 = vst [vmem:[#allocation58_spill] sm:$0xff] %v3806_v13  ;;  %1188 = vmatpush.msrb.mxu1 %v3260_v30 }
 0x165   :  { %5490 = vst [vmem:[#allocation59_spill] sm:$0xff] %v3808_v34 }
 0x166   :  { %1189 = vmatpush.msrb.mxu1 %v3271_v33  ;;  %v5498_v33 = vld [vmem:[#allocation7_spill] sm:$0xff] }
 0x168   :  { %v3813_v16 = vpop.f32.mrf.mxu2  ;;  %v3815_v1 = vpop.f32.mrf.mxu3  ;;  %1190 = vmatpush.msrb.mxu1 %v5493_v6 }
 0x169   :  { %5491 = vst [vmem:[#allocation60_spill] sm:$0xff] %v3813_v16 }
 0x16a   :  { %5492 = vst [vmem:[#allocation61_spill] sm:$0xff] %v3815_v1  ;;  %1191 = vmatpush.msrb.mxu1 %v5495_v20 }
 0x16b   :  { %v3818_v50 = vpop.f32.mrf.mxu0  ;;  %v3821_v23 = vpop.f32.mrf.mxu1 }
 0x16c   :  { %5494 = vst [vmem:[#allocation5_spill] sm:$0xff] %v3818_v50  ;;  %1192 = vmatpush.msrb.mxu1 %v3303_v45 }
 0x16e   :  { %1193 = vmatpush.msrb.mxu1 %v3315_v47  ;;  %v3841_v47 = vld [vmem:[%s5153_s5] sm:$0x3f] }
 0x170   :  { %v3825_v26 = vpop.f32.mrf.mxu2  ;;  %v3827_v30 = vpop.f32.mrf.mxu3  ;;  %1194 = vmatpush.msrb.mxu1 %v5498_v33 }
 0x171   :  { %5496 = vst [vmem:[#allocation6_spill] sm:$0xff] %v3825_v26 }
 0x172   :  { %5497 = vst [vmem:[#allocation62_spill] sm:$0xff] %v3827_v30  ;;  %1195 = vmatpush.msrb.mxu1 %v3333_v54 }
 0x173   :  { %v726_v13 = vpop.f32.mrf.mxu0  ;;  %v748_v6 = vpop.f32.mrf.mxu1 }
 0x174   :  { %1196 = vmatpush.msrb.mxu1 %v3346_v58  ;;  %v3848_v58 = vperm.slane %v3841_v47, 0 }
 0x176   :  { %1197 = vmatpush.msrb.mxu1 %v3356_v2  ;;  %5503 = vst [vmem:[#allocation66_spill] sm:$0xff] %v3848_v58  ;;  %v727_v2 = vadd.f32 %v726_v13, %v3848_v58 }
 0x178   :  { %v3833_v20 = vpop.f32.mrf.mxu2  ;;  %v3835_v50 = vpop.f32.mrf.mxu3  ;;  %1198 = vmatpush.msrb.mxu1 %v3369_v7 }
 0x179   :  { %5499 = vst [vmem:[#allocation7_spill] sm:$0xff] %v3833_v20  ;;  %v841_v20 = vadd.f32 %v727_v2, %v3678_v42 }
 0x17a   :  { %5500 = vst [vmem:[#allocation63_spill] sm:$0xff] %v3835_v50  ;;  %v3852_v50 = vperm.slane %v3841_v47, 1 }
 0x17b   :  { %v729_v45 = vpop.f32.mrf.mxu0  ;;  %v751_v33 = vpop.f32.mrf.mxu1 }
 0x17c   :  { %5504 = vst [vmem:[#allocation67_spill] sm:$0xff] %v3852_v50  ;;  %v749_v33 = vadd.f32 %v748_v6, %v3852_v50 }
 0x180   :  { %v3843_v54 = vpop.f32.mrf.mxu2  ;;  %v3845_v30 = vpop.f32.mrf.mxu3 }
 0x181   :  { %5501 = vst [vmem:[#allocation64_spill] sm:$0xff] %v3843_v54  ;;  %v2616_v54 = vmul.f32 -1.442695, %v841_v20 }
 0x182   :  { %5502 = vst [vmem:[#allocation65_spill] sm:$0xff] %v3845_v30  ;;  %v861_v30 = vadd.f32 %v749_v33, %v3680_v48 }
 0x183   :  { %2660 = vpow2.f32 %v2616_v54 }
 0x184   :  { %v2617_v13 = vmul.f32 -1.442695, %v861_v30 }
 0x186   :  { %2662 = vpow2.f32 %v2617_v13 }
 0x188   :  { %v3854_v7 = vpop.f32.mrf.mxu2  ;;  %v3856_v45 = vpop.f32.mrf.mxu3 }
 0x189   :  { %5505 = vst [vmem:[#allocation68_spill] sm:$0xff] %v3854_v7  ;;  %v814_v26 = vpop.f32.mrf.mxu0  ;;  %v2661_v57 = vpop.eup %2660 }
 0x18a   :  { %5506 = vst [vmem:[#allocation69_spill] sm:$0xff] %v3856_v45  ;;  %v845_v45 = vadd.f32 1.0, %v2661_v57 }
 0x18c   :  { %v2663_v42 = vpop.eup %2662  ;;  %2664 = vrcp.f32 %v845_v45  ;;  %v857_v50 = vand.u32 2147483648, %v845_v45  ;;  %vm851_vm11 = vweird.f32 %v845_v45 }
 0x18d   :  { %v865_v48 = vadd.f32 1.0, %v2663_v42 }
 0x18f   :  { %2666 = vrcp.f32 %v865_v48  ;;  %v877_v29 = vand.u32 2147483648, %v865_v48  ;;  %vm871_vm15 = vweird.f32 %v865_v48  ;;  %v875_v35 = vand.u32 2147483647, %v865_v48 }
 0x190   :  { %v3861_v1 = vpop.f32.mrf.mxu2  ;;  %v3863_v16 = vpop.f32.mrf.mxu3 }
 0x191   :  { %5507 = vst [vmem:[#allocation70_spill] sm:$0xff] %v3861_v1  ;;  %v3878_v1 = vperm.slane %v3841_v47, 4  ;;  %v816_v57 = vpop.f32.mrf.mxu0  ;;  %vm876_vm1 = vcmp.eq.f32.partialorder %v875_v35, 8.507059e+37  ;;  %v5518_v35 = vld [vmem:[#allocation10_spill] sm:$0xff] }
 0x192   :  { %5508 = vst [vmem:[#allocation71_spill] sm:$0xff] %v3863_v16  ;;  %v2665_v20 = vpop.eup %2664 }
 0x193   :  { %v847_v2 = vmul.f32 %v2665_v20, %v845_v45  ;;  %5515 = vst [vmem:[#allocation78_spill] sm:$0xff] %v3878_v1  ;;  %v817_v42 = vadd.f32 %v816_v57, %v3878_v1  ;;  %vm852_vm10 = vweird.f32 %v2665_v20 }
 0x194   :  { %vm853_vm12 = vmor %vm851_vm11, %vm852_vm10 }
 0x195   :  { %v2667_v54 = vpop.eup %2666  ;;  %v848_v13 = vsub.f32 1.0, %v847_v2  ;;  %v855_v2 = vand.u32 2147483647, %v845_v45  ;;  %v5516_v45 = vld [vmem:[#allocation45_spill] sm:$0xff] }
 0x196   :  { %v867_v16 = vmul.f32 %v2667_v54, %v865_v48  ;;  %vm872_vm14 = vweird.f32 %v2667_v54 }
 0x197   :  { %vm856_vm13 = vcmp.eq.f32.partialorder %v855_v2, 8.507059e+37  ;;  %vm873_vm0 = vmor %vm871_vm15, %vm872_vm14 }
 0x198   :  { %v3865_v44 = vpop.f32.mrf.mxu2  ;;  %v3867_v7 = vpop.f32.mrf.mxu3 }
 0x199   :  { %5509 = vst [vmem:[#allocation72_spill] sm:$0xff] %v3865_v44 }
 0x19a   :  { %5510 = vst [vmem:[#allocation73_spill] sm:$0xff] %v3867_v7  ;;  %v849_v7 = vmul.f32 %v2665_v20, %v848_v13  ;;  %v858_v13 = vor.u32 1.1754944e-38, %v857_v50  ;;  %v878_v50 = vor.u32 1.1754944e-38, %v877_v29 }
 0x19c   :  { %v850_v34 = vadd.f32 %v2665_v20, %v849_v7 }
 0x19e   :  { %v854_v38 = vsel %vm853_vm12, %v2665_v20, %v850_v34  ;;  %v3889_v34 = vperm.slane %v3841_v47, 3 }
 0x19f   :  { %v859_v57 = vsel %vm856_vm13, %v858_v13, %v854_v38 }
 0x1a0   :  { %v3869_v26 = vpop.f32.mrf.mxu2  ;;  %v3871_v6 = vpop.f32.mrf.mxu3  ;;  %5517 = vst [vmem:[#allocation45_spill] sm:$0xff] %v3889_v34 }
 0x1a1   :  { %5511 = vst [vmem:[#allocation74_spill] sm:$0xff] %v3869_v26 }
 0x1a2   :  { %5512 = vst [vmem:[#allocation75_spill] sm:$0xff] %v3871_v6  ;;  %v868_v6 = vsub.f32 1.0, %v867_v16 }
 0x1a8   :  { %v3873_v33 = vpop.f32.mrf.mxu2  ;;  %v3875_v30 = vpop.f32.mrf.mxu3 }
 0x1a9   :  { %5513 = vst [vmem:[#allocation76_spill] sm:$0xff] %v3873_v33  ;;  %v3884_v33 = vperm.slane %v3841_v47, 2 }
 0x1aa   :  { %5514 = vst [vmem:[#allocation77_spill] sm:$0xff] %v3875_v30  ;;  %v869_v30 = vmul.f32 %v2667_v54, %v868_v6 }
 0x1ac   :  { %v870_v1 = vadd.f32 %v2667_v54, %v869_v30 }
 0x1b0   :  { %v555_v44 = vpop.f32.mrf.mxu2  ;;  %v3880_v26 = vpop.f32.mrf.mxu3 }
 0x1b1   :  { %v908_v58 = vadd.f32 %v817_v42, %v555_v44 }
 0x1b3   :  { %v2619_v7 = vmul.f32 -1.442695, %v908_v58 }
 0x1b5   :  { %2668 = vpow2.f32 %v2619_v7 }
 0x1b6   :  { %v836_v16 = vpop.f32.mrf.mxu1 }
 0x1b7   :  { %v5520_v16 = vld [vmem:[#allocation14_spill] sm:$0xff] }
 0x1b8   :  { %v770_v53 = vpop.f32.mrf.mxu2  ;;  %v792_v63 = vpop.f32.mrf.mxu3 }
 0x1b9   :  { %v771_v10 = vadd.f32 %v770_v53, %v3884_v33  ;;  %v874_v63 = vsel %vm873_vm0, %v2667_v54, %v870_v1  ;;  %v5519_v54 = vld [vmem:[#allocation12_spill] sm:$0xff] }
 0x1ba   :  { %v879_v58 = vsel %vm876_vm1, %v878_v50, %v874_v63 }
 0x1bb   :  { %v881_v49 = vmul.f32 %v859_v57, %v771_v10  ;;  %v2669_v20 = vpop.eup %2668  ;;  %v884_v48 = vsub.f32 1.0, %v879_v58  ;;  %v886_v2 = vmul.f32 0.0, %v879_v58  ;;  %v5539_v58 = vld [vmem:[#allocation41_spill] sm:$0xff] }
 0x1bc   :  { %v3893_v13 = vadd.f32 1.0, %v2669_v20  ;;  %v5544_v20 = vld [vmem:[#allocation44_spill] sm:$0xff] }
 0x1bd   :  { %v882_v44 = vadd.f32 %v881_v49, %v5516_v45 }
 0x1be   :  { %vm918_vm7 = vweird.f32 %v3893_v13 }
 0x1bf   :  { %2670 = vtanh.f32 %v882_v44  ;;  %v5531_v44 = vld [vmem:[#allocation32_spill] sm:$0xff] }
 0x1c0   :  { %v794_v53 = vpop.f32.mrf.mxu3  ;;  %v773_v6 = vpop.f32.mrf.mxu2 }
 0x1c1   :  { %v795_v38 = vadd.f32 %v794_v53, %v3889_v34 }
 0x1c3   :  { %v888_v10 = vadd.f32 %v795_v38, %v3821_v23  ;;  %v5540_v38 = vld [vmem:[#allocation42_spill] sm:$0xff] }
 0x1c5   :  { %v2671_v30 = vpop.eup %2670  ;;  %v2618_v42 = vmul.f32 -1.442695, %v888_v10  ;;  %v5542_v10 = vld [vmem:[#allocation48_spill] sm:$0xff] }
 0x1c6   :  { %v885_v49 = vmul.f32 %v2671_v30, %v884_v48  ;;  %v5545_v30 = vld [vmem:[#allocation34_spill] sm:$0xff] }
 0x1c7   :  { %2672 = vpow2.f32 %v2618_v42  ;;  %v5546_v42 = vld [vmem:[#allocation49_spill] sm:$0xff] }
 0x1c8   :  { %v3895_v1 = vadd.f32 %v886_v2, %v885_v49  ;;  %2674 = vrcp.f32 %v3893_v13 }
 0x1ca   :  { %2517 = vst [vmem:[%s5154_s6] sm:$0xff] %v3895_v1  ;;  %951 = vmatmul.f32.vlgmr.msra.gmra.mxu2 %v3895_v1  ;;  %973 = vmatmul.f32.vlgmr.msra.gmra.mxu3 %v3895_v1 }
 0x1cb   :  { %995 = vmatmul.f32.vlgmr.msra.gmra.mxu0 %v3895_v1  ;;  %1017 = vmatmul.f32.vlgmr.msra.gmra.mxu1 %v3895_v1 }
 0x1cc   :  { %1205 = vmatpush.msra.mxu2 %v5518_v35  ;;  %1227 = vmatpush.msra.mxu3 %v3429_v56  ;;  %v4001_v35 = vld [vmem:[#allocation2 + $0x2d8] sm:$0xff] }
 0x1cd   :  { %v2673_v29 = vpop.eup %2672  ;;  %1249 = vmatpush.msra.mxu0 %v3390_v17  ;;  %1271 = vmatpush.msra.mxu1 %v3581_v52  ;;  %v5521_v17 = vld [vmem:[#allocation16_spill] sm:$0xff]  ;;  %v838_v52 = vpop.f32.mrf.mxu1 }
 0x1ce   :  { %v892_v23 = vadd.f32 1.0, %v2673_v29  ;;  %1206 = vmatpush.msra.mxu2 %v5519_v54  ;;  %1228 = vmatpush.msra.mxu3 %v3439_v62  ;;  %v3916_v56 = vpop.eup %2674  ;;  %v5522_v62 = vld [vmem:[#allocation18_spill] sm:$0xff]  ;;  %v4004_v29 = vld [vmem:[#allocation2 + $0x2a0] sm:$0xff]  ;;  %v4010_v54 = vld [vmem:[#allocation2 + $0x270] sm:$0xff] }
 0x1cf   :  { %1250 = vmatpush.msra.mxu0 %v3396_v28  ;;  %1272 = vmatpush.msra.mxu1 %v3585_v21  ;;  %v914_v28 = vmul.f32 %v3916_v56, %v3893_v13  ;;  %vm919_vm6 = vweird.f32 %v3916_v56 }
 0x1d0   :  { %2676 = vrcp.f32 %v892_v23  ;;  %1207 = vmatpush.msra.mxu2 %v5520_v16  ;;  %1229 = vmatpush.msra.mxu3 %v3448_v0  ;;  %v5523_v0 = vld [vmem:[#allocation20_spill] sm:$0xff]  ;;  %v902_v7 = vand.u32 2147483647, %v892_v23  ;;  %vm898_vm3 = vweird.f32 %v892_v23  ;;  %vm920_vm8 = vmor %vm918_vm7, %vm919_vm6 }
 0x1d1   :  { %1251 = vmatpush.msra.mxu0 %v3408_v43  ;;  %1273 = vmatpush.msra.mxu1 %v3594_v9  ;;  %v5524_v9 = vld [vmem:[#allocation21_spill] sm:$0xff]  ;;  %v4013_v16 = vld [vmem:[#allocation2 + $0x278] sm:$0xff] }
 0x1d2   :  { %1208 = vmatpush.msra.mxu2 %v5521_v17  ;;  %1230 = vmatpush.msra.mxu3 %v3458_v5  ;;  %vm903_vm5 = vcmp.eq.f32.partialorder %v902_v7, 8.507059e+37  ;;  %v4019_v17 = vld [vmem:[#allocation2 + $0x248] sm:$0xff]  ;;  %v4066_v7 = vld [vmem:[#allocation2 + $0xc0] sm:$0xff] }
 0x1d3   :  { %1252 = vmatpush.msra.mxu0 %v3414_v59  ;;  %1274 = vmatpush.msra.mxu1 %v3598_v40  ;;  %v915_v59 = vsub.f32 1.0, %v914_v28  ;;  %v5525_v40 = vld [vmem:[#allocation23_spill] sm:$0xff] }
 0x1d4   :  { %1209 = vmatpush.msra.mxu2 %v5522_v62  ;;  %1231 = vmatpush.msra.mxu3 %v3470_v15  ;;  %v3937_v15 = vperm.slane %v3841_v47, 5  ;;  %v5529_v47 = vld [vmem:[#allocation29_spill] sm:$0xff]  ;;  %v4024_v28 = vld [vmem:[#allocation2 + $0x210] sm:$0xff]  ;;  %v4027_v62 = vld [vmem:[#allocation2 + $0x218] sm:$0xff] }
 0x1d5   :  { %1253 = vmatpush.msra.mxu0 %v5459_v19  ;;  %1275 = vmatpush.msra.mxu1 %v3607_v4  ;;  %v904_v4 = vand.u32 2147483648, %v892_v23  ;;  %v5527_v19 = vld [vmem:[#allocation26_spill] sm:$0xff] }
 0x1d6   :  { %v2677_v43 = vpop.eup %2676  ;;  %1210 = vmatpush.msra.mxu2 %v5523_v0  ;;  %1232 = vmatpush.msra.mxu3 %v5524_v9  ;;  %5526 = vst [vmem:[#allocation10_spill] sm:$0xff] %v3937_v15  ;;  %v4033_v0 = vld [vmem:[#allocation2 + $0x1e8] sm:$0xff]  ;;  %v4036_v9 = vld [vmem:[#allocation2 + $0x1b0] sm:$0xff] }
 0x1d7   :  { %v894_v5 = vmul.f32 %v2677_v43, %v892_v23  ;;  %1254 = vmatpush.msra.mxu0 %v5461_v51  ;;  %1276 = vmatpush.msra.mxu1 %v3610_v36  ;;  %v5528_v51 = vld [vmem:[#allocation27_spill] sm:$0xff]  ;;  %vm899_vm2 = vweird.f32 %v2677_v43  ;;  %v905_v45 = vor.u32 1.1754944e-38, %v904_v4  ;;  %v4007_v23 = vld [vmem:[#allocation2 + $0x2a8] sm:$0xff]  ;;  %v4054_v4 = vld [vmem:[#allocation2 + $0x120] sm:$0xff] }
 0x1d8   :  { %1211 = vmatpush.msra.mxu2 %v5525_v40  ;;  %1233 = vmatpush.msra.mxu3 %v5460_v37  ;;  %v916_v37 = vmul.f32 %v3916_v56, %v915_v59  ;;  %vm900_vm4 = vmor %vm898_vm3, %vm899_vm2  ;;  %v4042_v59 = vld [vmem:[#allocation2 + $0x180] sm:$0xff]  ;;  %v4045_v40 = vld [vmem:[#allocation2 + $0x188] sm:$0xff] }
 0x1d9   :  { %v895_v21 = vsub.f32 1.0, %v894_v5  ;;  %1255 = vmatpush.msra.mxu0 %v5465_v55  ;;  %1277 = vmatpush.msra.mxu1 %v3620_v11  ;;  %v5530_v55 = vld [vmem:[#allocation30_spill] sm:$0xff]  ;;  %v839_v11 = vadd.f32 %v838_v52, %v3937_v15  ;;  %v4039_v5 = vld [vmem:[#allocation2 + $0x1b8] sm:$0xff] }
 0x1da   :  { %1212 = vmatpush.msra.mxu2 %v5527_v19  ;;  %1234 = vmatpush.msra.mxu3 %v5528_v51  ;;  %v917_v63 = vadd.f32 %v3916_v56, %v916_v37  ;;  %v4051_v52 = vld [vmem:[#allocation2 + $0x158] sm:$0xff]  ;;  %v4057_v19 = vld [vmem:[#allocation2 + $0x128] sm:$0xff]  ;;  %v4060_v51 = vld [vmem:[#allocation2 + $0xf0] sm:$0xff] }
 0x1db   :  { %v896_v36 = vmul.f32 %v2677_v43, %v895_v21  ;;  %1256 = vmatpush.msra.mxu0 %v5467_v61  ;;  %1278 = vmatpush.msra.mxu1 %v3624_v18  ;;  %v5532_v61 = vld [vmem:[#allocation33_spill] sm:$0xff]  ;;  %v4048_v21 = vld [vmem:[#allocation2 + $0x150] sm:$0xff]  ;;  %v4069_v37 = vld [vmem:[#allocation2 + $0xc8] sm:$0xff] }
 0x1dc   :  { %1213 = vmatpush.msra.mxu2 %v5529_v47  ;;  %1235 = vmatpush.msra.mxu3 %v5530_v55  ;;  %v4072_v47 = vld [vmem:[#allocation2 + $0x90] sm:$0xff]  ;;  %v4075_v55 = vld [vmem:[#allocation2 + $0x98] sm:$0xff] }
 0x1dd   :  { %v897_v57 = vadd.f32 %v2677_v43, %v896_v36  ;;  %1257 = vmatpush.msra.mxu0 %v5471_v14  ;;  %1279 = vmatpush.msra.mxu1 %v3633_v27  ;;  %v5533_v14 = vld [vmem:[#allocation35_spill] sm:$0xff]  ;;  %v924_v27 = vand.u32 2147483648, %v3893_v13  ;;  %v4063_v36 = vld [vmem:[#allocation2 + $0xf8] sm:$0xff] }
 0x1de   :  { %1214 = vmatpush.msra.mxu2 %v5531_v44  ;;  %1236 = vmatpush.msra.mxu3 %v5532_v61  ;;  %v4087_v44 = vld [vmem:[#allocation2 + $0x38] sm:$0xff]  ;;  %v4090_v61 = vld [vmem:[#allocation2] sm:$0xff] }
 0x1df   :  { %v901_v18 = vsel %vm900_vm4, %v2677_v43, %v897_v57  ;;  %1258 = vmatpush.msra.mxu0 %v5472_v32  ;;  %1280 = vmatpush.msra.mxu1 %v3636_v60  ;;  %v922_v60 = vand.u32 2147483647, %v3893_v13  ;;  %v5534_v32 = vld [vmem:[#allocation36_spill] sm:$0xff]  ;;  %v3998_v13 = vld [vmem:[#allocation2 + $0x2d0] sm:$0xff]  ;;  %v4030_v43 = vld [vmem:[#allocation2 + $0x1e0] sm:$0xff]  ;;  %5549 = vst [vmem:[#allocation16_spill] sm:$0xff] %v4087_v44 }
 0x1e0   :  { %v906_v50 = vsel %vm903_vm5, %v905_v45, %v901_v18  ;;  %1215 = vmatpush.msra.mxu2 %v5533_v14  ;;  %1237 = vmatpush.msra.mxu3 %v3532_v24  ;;  %v921_v24 = vsel %vm920_vm8, %v3916_v56, %v917_v63  ;;  %v4016_v56 = vld [vmem:[#allocation2 + $0x240] sm:$0xff]  ;;  %v4081_v57 = vld [vmem:[#allocation2 + $0x68] sm:$0xff]  ;;  %v4084_v45 = vld [vmem:[#allocation2 + $0x30] sm:$0xff]  ;;  %5550 = vst [vmem:[#allocation18_spill] sm:$0xff] %v4090_v61 }
 0x1e1   :  { %v928_v53 = vmul.f32 %v906_v50, %v839_v11  ;;  %1259 = vmatpush.msra.mxu0 %v5476_v22  ;;  %1281 = vmatpush.msra.mxu1 %v3646_v8  ;;  %v5535_v22 = vld [vmem:[#allocation38_spill] sm:$0xff]  ;;  %v925_v8 = vor.u32 1.1754944e-38, %v924_v27  ;;  %vm923_vm9 = vcmp.eq.f32.partialorder %v922_v60, 8.507059e+37  ;;  %v4078_v11 = vld [vmem:[#allocation2 + $0x60] sm:$0xff]  ;;  %5547 = vst [vmem:[#allocation12_spill] sm:$0xff] %v4081_v57  ;;  %v5553_v60 = vld [vmem:[#allocation67_spill] sm:$0xff] }
 0x1e2   :  { %1216 = vmatpush.msra.mxu2 %v5534_v32  ;;  %1238 = vmatpush.msra.mxu3 %v5475_v25  ;;  %v5536_v25 = vld [vmem:[#allocation39_spill] sm:$0xff]  ;;  %5548 = vst [vmem:[#allocation14_spill] sm:$0xff] %v4084_v45  ;;  %v4093_v18 = vld [vmem:[#allocation2 + $0x8] sm:$0xff] }
 0x1e3   :  { %v929_v6 = vadd.f32 %v928_v53, %v3880_v26  ;;  %1260 = vmatpush.msra.mxu0 %v5477_v39  ;;  %1282 = vmatpush.msra.mxu1 %v3650_v31  ;;  %v5537_v26 = vld [vmem:[#allocation40_spill] sm:$0xff]  ;;  %v926_v39 = vsel %vm923_vm9, %v925_v8, %v921_v24  ;;  %v5538_v31 = vld [vmem:[#allocation47_spill] sm:$0xff]  ;;  %5551 = vst [vmem:[#allocation20_spill] sm:$0xff] %v4093_v18  ;;  %v5552_v27 = vld [vmem:[#allocation66_spill] sm:$0xff] }
 0x1e4   :  { %1217 = vmatpush.msra.mxu2 %v5535_v22  ;;  %1239 = vmatpush.msra.mxu3 %v3549_v3  ;;  %v5541_v3 = vld [vmem:[#allocation31_spill] sm:$0xff]  ;;  %v933_v49 = vmul.f32 0.0, %v926_v39  ;;  %v5555_v22 = vld [vmem:[#allocation53_spill] sm:$0xff] }
 0x1e5   :  { %2678 = vtanh.f32 %v929_v6  ;;  %1261 = vmatpush.msra.mxu0 %v5481_v12  ;;  %1283 = vmatpush.msra.mxu1 %v3663_v41  ;;  %v931_v12 = vsub.f32 1.0, %v926_v39  ;;  %v5543_v41 = vld [vmem:[#allocation43_spill] sm:$0xff]  ;;  %v5554_v6 = vld [vmem:[#allocation52_spill] sm:$0xff] }
 0x1e6   :  { %1218 = vmatpush.msra.mxu2 %v5536_v25  ;;  %1240 = vmatpush.msra.mxu3 %v5537_v26 }
 0x1e7   :  { %1262 = vmatpush.msra.mxu0 %v5482_v46  ;;  %1284 = vmatpush.msra.mxu1 %v5538_v31 }
 0x1e8   :  { %1219 = vmatpush.msra.mxu2 %v5539_v58  ;;  %1241 = vmatpush.msra.mxu3 %v5540_v38 }
 0x1e9   :  { %1263 = vmatpush.msra.mxu0 %v5541_v3  ;;  %1285 = vmatpush.msra.mxu1 %v5542_v10 }
 0x1ea   :  { %1220 = vmatpush.msra.mxu2 %v5543_v41  ;;  %1242 = vmatpush.msra.mxu3 %v5544_v20 }
 0x1eb   :  { %v2679_v48 = vpop.eup %2678  ;;  %1264 = vmatpush.msra.mxu0 %v5545_v30  ;;  %1286 = vmatpush.msra.mxu1 %v5546_v42 }
 0x1ec   :  { %v932_v46 = vmul.f32 %v2679_v48, %v931_v12 }
 0x1ee   :  { %v3986_v2 = vadd.f32 %v933_v49, %v932_v46 }
 0x1f0   :  { %2532 = vst [vmem:[%s5154_s6 + $0x78] sm:$0xff] %v3986_v2  ;;  %954 = vmatmul.f32.gmra.mxu2 %v3986_v2  ;;  %976 = vmatmul.f32.gmra.mxu3 %v3986_v2 }
 0x1f1   :  { %998 = vmatmul.f32.gmra.mxu0 %v3986_v2  ;;  %1019 = vmatmul.f32.gmra.mxu1 %v3986_v2 }
 0x1f8   :  { %1039 = vmatmul.f32.vlgmr.msrb.gmra.mxu2 %v3895_v1  ;;  %1061 = vmatmul.f32.vlgmr.msrb.gmra.mxu3 %v3895_v1 }
 0x1f9   :  { %1387 = vmatpush.msrb.mxu2 %v3998_v13  ;;  %1409 = vmatpush.msrb.mxu3 %v4001_v35 }
 0x1fb   :  { %1388 = vmatpush.msrb.mxu2 %v4004_v29  ;;  %1410 = vmatpush.msrb.mxu3 %v4007_v23 }
 0x1fd   :  { %1389 = vmatpush.msrb.mxu2 %v4010_v54  ;;  %1411 = vmatpush.msrb.mxu3 %v4013_v16 }
 0x1ff   :  { %1390 = vmatpush.msrb.mxu2 %v4016_v56  ;;  %1412 = vmatpush.msrb.mxu3 %v4019_v17 }
 0x200   :  { %1041 = vmatmul.f32.gmra.mxu2 %v3986_v2  ;;  %1063 = vmatmul.f32.gmra.mxu3 %v3986_v2 }
 0x201   :  { %1391 = vmatpush.msrb.mxu2 %v4024_v28  ;;  %1413 = vmatpush.msrb.mxu3 %v4027_v62 }
 0x203   :  { %1392 = vmatpush.msrb.mxu2 %v4030_v43  ;;  %1414 = vmatpush.msrb.mxu3 %v4033_v0 }
 0x205   :  { %1393 = vmatpush.msrb.mxu2 %v4036_v9  ;;  %1415 = vmatpush.msrb.mxu3 %v4039_v5 }
 0x207   :  { %1394 = vmatpush.msrb.mxu2 %v4042_v59  ;;  %1416 = vmatpush.msrb.mxu3 %v4045_v40 }
 0x209   :  { %1395 = vmatpush.msrb.mxu2 %v4048_v21  ;;  %1417 = vmatpush.msrb.mxu3 %v4051_v52 }
 0x20b   :  { %1396 = vmatpush.msrb.mxu2 %v4054_v4  ;;  %1418 = vmatpush.msrb.mxu3 %v4057_v19 }
 0x20d   :  { %1397 = vmatpush.msrb.mxu2 %v4060_v51  ;;  %1419 = vmatpush.msrb.mxu3 %v4063_v36 }
 0x20f   :  { %1398 = vmatpush.msrb.mxu2 %v4066_v7  ;;  %1420 = vmatpush.msrb.mxu3 %v4069_v37 }
 0x211   :  { %1399 = vmatpush.msrb.mxu2 %v4072_v47  ;;  %1421 = vmatpush.msrb.mxu3 %v4075_v55 }
 0x213   :  { %1400 = vmatpush.msrb.mxu2 %v4078_v11  ;;  %1422 = vmatpush.msrb.mxu3 %v4081_v57 }
 0x215   :  { %1401 = vmatpush.msrb.mxu2 %v4084_v45  ;;  %1423 = vmatpush.msrb.mxu3 %v4087_v44 }
 0x217   :  { %1402 = vmatpush.msrb.mxu2 %v4090_v61  ;;  %1424 = vmatpush.msrb.mxu3 %v4093_v18 }
 0x248   :  { %v1018_v63 = vpop.f32.mrf.mxu1  ;;  %v996_v20 = vpop.f32.mrf.mxu0 }
 0x24d   :  { %v952_v50 = vpop.f32.mrf.mxu2  ;;  %v974_v14 = vpop.f32.mrf.mxu3 }
 0x24e   :  { %v953_v53 = vadd.f32 %v952_v50, %v5552_v27  ;;  %v975_v32 = vadd.f32 %v974_v14, %v5553_v60 }
 0x250   :  { %v1067_v24 = vadd.f32 %v953_v53, %v5554_v6  ;;  %v1087_v8 = vadd.f32 %v975_v32, %v5555_v22  ;;  %v997_v53 = vadd.f32 %v996_v20, %v3884_v33 }
 0x252   :  { %v2620_v25 = vmul.f32 -1.442695, %v1067_v24  ;;  %v2621_v26 = vmul.f32 -1.442695, %v1087_v8 }
 0x254   :  { %2680 = vpow2.f32 %v2620_v25 }
 0x255   :  { %2682 = vpow2.f32 %v2621_v26 }
 0x25a   :  { %v2681_v39 = vpop.eup %2680 }
 0x25b   :  { %v2683_v31 = vpop.eup %2682  ;;  %v1071_v58 = vadd.f32 1.0, %v2681_v39 }
 0x25c   :  { %v1091_v38 = vadd.f32 1.0, %v2683_v31 }
 0x25d   :  { %2684 = vrcp.f32 %v1071_v58  ;;  %v1083_v30 = vand.u32 2147483648, %v1071_v58  ;;  %v1081_v49 = vand.u32 2147483647, %v1071_v58  ;;  %vm1077_vm11 = vweird.f32 %v1071_v58 }
 0x25e   :  { %2686 = vrcp.f32 %v1091_v38  ;;  %v1103_v8 = vand.u32 2147483648, %v1091_v38  ;;  %vm1097_vm15 = vweird.f32 %v1091_v38  ;;  %v1101_v39 = vand.u32 2147483647, %v1091_v38 }
 0x25f   :  { %v1084_v14 = vor.u32 1.1754944e-38, %v1083_v30  ;;  %vm1082_vm13 = vcmp.eq.f32.partialorder %v1081_v49, 8.507059e+37 }
 0x260   :  { %vm1102_vm1 = vcmp.eq.f32.partialorder %v1101_v39, 8.507059e+37  ;;  %v4133_v39 = vld [vmem:[#allocation2 + $0x2b8] sm:$0xff] }
 0x263   :  { %v2685_v3 = vpop.eup %2684 }
 0x264   :  { %v2687_v10 = vpop.eup %2686  ;;  %v1073_v12 = vmul.f32 %v2685_v3, %v1071_v58  ;;  %vm1078_vm10 = vweird.f32 %v2685_v3 }
 0x265   :  { %v1093_v41 = vmul.f32 %v2687_v10, %v1091_v38  ;;  %vm1079_vm12 = vmor %vm1077_vm11, %vm1078_vm10  ;;  %vm1098_vm14 = vweird.f32 %v2687_v10 }
 0x266   :  { %v1074_v48 = vsub.f32 1.0, %v1073_v12  ;;  %v5556_v12 = vld [vmem:[#allocation50_spill] sm:$0xff]  ;;  %vm1099_vm0 = vmor %vm1097_vm15, %vm1098_vm14 }
 0x267   :  { %v1094_v42 = vsub.f32 1.0, %v1093_v41 }
 0x268   :  { %v1075_v46 = vmul.f32 %v2685_v3, %v1074_v48  ;;  %v5557_v48 = vld [vmem:[#allocation59_spill] sm:$0xff] }
 0x269   :  { %v1095_v63 = vmul.f32 %v2687_v10, %v1094_v42 }
 0x26a   :  { %v1076_v50 = vadd.f32 %v2685_v3, %v1075_v46 }
 0x26b   :  { %v1096_v24 = vadd.f32 %v2687_v10, %v1095_v63 }
 0x26c   :  { %v1080_v32 = vsel %vm1079_vm12, %v2685_v3, %v1076_v50  ;;  %v1104_v3 = vor.u32 1.1754944e-38, %v1103_v8  ;;  %v4124_v8 = vld [vmem:[#allocation2 + $0x2f0] sm:$0xff] }
 0x26d   :  { %v1085_v6 = vsel %vm1082_vm13, %v1084_v14, %v1080_v32  ;;  %v1100_v58 = vsel %vm1099_vm0, %v2687_v10, %v1096_v24 }
 0x26e   :  { %v1107_v22 = vmul.f32 %v1085_v6, %v997_v53  ;;  %v999_v25 = vpop.f32.mrf.mxu0  ;;  %v1020_v26 = vpop.f32.mrf.mxu1  ;;  %v1105_v49 = vsel %vm1102_vm1, %v1104_v3, %v1100_v58  ;;  %v4142_v58 = vld [vmem:[#allocation2 + $0x280] sm:$0xff]  ;;  %v5559_v3 = vld [vmem:[#allocation78_spill] sm:$0xff] }
 0x26f   :  { %v1021_v31 = vadd.f32 %v1020_v26, %v3889_v34  ;;  %v1110_v63 = vsub.f32 1.0, %v1105_v49  ;;  %v1112_v38 = vmul.f32 %v1105_v49, %v3895_v1  ;;  %v4118_v1 = vld [vmem:[#allocation2 + $0x2e0] sm:$0xff]  ;;  %v4127_v25 = vld [vmem:[#allocation2 + $0x2f8] sm:$0xff]  ;;  %v4130_v26 = vld [vmem:[#allocation2 + $0x2b0] sm:$0xff] }
 0x270   :  { %v1108_v41 = vadd.f32 %v1107_v22, %v5556_v12  ;;  %v4121_v22 = vld [vmem:[#allocation2 + $0x2e8] sm:$0xff] }
 0x271   :  { %v1114_v30 = vadd.f32 %v1021_v31, %v5557_v48  ;;  %v4136_v31 = vld [vmem:[#allocation2 + $0x2c0] sm:$0xff]  ;;  %v4139_v12 = vld [vmem:[#allocation2 + $0x2c8] sm:$0xff] }
 0x272   :  { %2688 = vtanh.f32 %v1108_v41  ;;  %v4145_v48 = vld [vmem:[#allocation2 + $0x288] sm:$0xff] }
 0x273   :  { %v2622_v20 = vmul.f32 -1.442695, %v1114_v30  ;;  %v955_v42 = vpop.f32.mrf.mxu2  ;;  %v977_v46 = vpop.f32.mrf.mxu3  ;;  %5558 = vst [vmem:[#allocation21_spill] sm:$0xff] %v4145_v48 }
 0x274   :  { %v4151_v42 = vld [vmem:[#allocation2 + $0x290] sm:$0xff]  ;;  %v4154_v46 = vld [vmem:[#allocation2 + $0x298] sm:$0xff] }
 0x275   :  { %2690 = vpow2.f32 %v2622_v20  ;;  %5560 = vst [vmem:[#allocation23_spill] sm:$0xff] %v4151_v42 }
 0x276   :  { %5561 = vst [vmem:[#allocation26_spill] sm:$0xff] %v4154_v46 }
 0x278   :  { %v2689_v50 = vpop.eup %2688 }
 0x279   :  { %v1111_v14 = vmul.f32 %v2689_v50, %v1110_v63  ;;  %v4159_v63 = vld [vmem:[#allocation2 + $0x250] sm:$0xff]  ;;  %v4162_v50 = vld [vmem:[#allocation2 + $0x258] sm:$0xff] }
 0x27a   :  { %5562 = vst [vmem:[#allocation27_spill] sm:$0xff] %v4159_v63 }
 0x27b   :  { %v2691_v53 = vpop.eup %2690  ;;  %v4105_v32 = vadd.f32 %v1112_v38, %v1111_v14  ;;  %v1040_v6 = vpop.f32.mrf.mxu2  ;;  %5563 = vst [vmem:[#allocation29_spill] sm:$0xff] %v4162_v50  ;;  %v5564_v14 = vld [vmem:[#allocation76_spill] sm:$0xff] }
 0x27c   :  { %v1062_v10 = vpop.f32.mrf.mxu3  ;;  %v4107_v24 = vadd.f32 1.0, %v2691_v53  ;;  %v4166_v53 = vld [vmem:[#allocation2 + $0x260] sm:$0xff]  ;;  %v4169_v6 = vld [vmem:[#allocation2 + $0x268] sm:$0xff] }
 0x27d   :  { %2519 = vst [vmem:[%s5154_s6 + $0x10] sm:$0xff] %v4105_v32  ;;  %1177 = vmatmul.f32.vlgmr.msrb.gmra.mxu0 %v4105_v32  ;;  %1199 = vmatmul.f32.vlgmr.msrb.gmra.mxu1 %v4105_v32 }
 0x27e   :  { %2692 = vrcp.f32 %v4107_v24  ;;  %1221 = vmatmul.f32.vlgmr.msra.gmra.mxu2 %v4105_v32  ;;  %1243 = vmatmul.f32.vlgmr.msra.gmra.mxu3 %v4105_v32  ;;  %5565 = vst [vmem:[#allocation30_spill] sm:$0xff] %v4166_v53  ;;  %vm1124_vm3 = vweird.f32 %v4107_v24 }
 0x27f   :  { %1431 = vmatpush.msrb.mxu0 %v4118_v1  ;;  %1453 = vmatpush.msrb.mxu1 %v4121_v22  ;;  %5566 = vst [vmem:[#allocation32_spill] sm:$0xff] %v4169_v6 }
 0x280   :  { %1475 = vmatpush.msra.mxu2 %v4124_v8  ;;  %1497 = vmatpush.msra.mxu3 %v4127_v25 }
 0x281   :  { %1432 = vmatpush.msrb.mxu0 %v4130_v26  ;;  %1454 = vmatpush.msrb.mxu1 %v4133_v39 }
 0x282   :  { %1476 = vmatpush.msra.mxu2 %v4136_v31  ;;  %1498 = vmatpush.msra.mxu3 %v4139_v12 }
 0x283   :  { %v1042_v41 = vpop.f32.mrf.mxu2  ;;  %1433 = vmatpush.msrb.mxu0 %v4142_v58  ;;  %1455 = vmatpush.msrb.mxu1 %v4145_v48 }
 0x284   :  { %v4148_v30 = vpop.eup %2692  ;;  %v1043_v20 = vadd.f32 %v1042_v41, %v5559_v3  ;;  %1477 = vmatpush.msra.mxu2 %v4151_v42  ;;  %1499 = vmatpush.msra.mxu3 %v4154_v46  ;;  %v4172_v41 = vld [vmem:[#allocation2 + $0x220] sm:$0xff]  ;;  %v4175_v3 = vld [vmem:[#allocation2 + $0x228] sm:$0xff] }
 0x285   :  { %v1120_v49 = vmul.f32 %v4148_v30, %v4107_v24  ;;  %1434 = vmatpush.msrb.mxu0 %v4159_v63  ;;  %1456 = vmatpush.msrb.mxu1 %v4162_v50  ;;  %5567 = vst [vmem:[#allocation33_spill] sm:$0xff] %v4172_v41  ;;  %v4178_v63 = vld [vmem:[#allocation2 + $0x230] sm:$0xff]  ;;  %vm1125_vm2 = vweird.f32 %v4148_v30  ;;  %v4255_v46 = vld [vmem:[#allocation2 + $0x140] sm:$0xff] }
 0x286   :  { %v1134_v38 = vadd.f32 %v1043_v20, %v5564_v14  ;;  %1478 = vmatpush.msra.mxu2 %v4166_v53  ;;  %1500 = vmatpush.msra.mxu3 %v4169_v6  ;;  %5568 = vst [vmem:[#allocation35_spill] sm:$0xff] %v4175_v3  ;;  %v4181_v20 = vld [vmem:[#allocation2 + $0x238] sm:$0xff]  ;;  %vm4234_vm4 = vmor %vm1124_vm3, %vm1125_vm2  ;;  %v1064_v53 = vpop.f32.mrf.mxu3 }
 0x287   :  { %v1121_v10 = vsub.f32 1.0, %v1120_v49  ;;  %1435 = vmatpush.msrb.mxu0 %v4172_v41  ;;  %1457 = vmatpush.msrb.mxu1 %v4175_v3  ;;  %5569 = vst [vmem:[#allocation36_spill] sm:$0xff] %v4178_v63  ;;  %v4185_v49 = vld [vmem:[#allocation2 + $0x1f0] sm:$0xff]  ;;  %v4188_v41 = vld [vmem:[#allocation2 + $0x1f8] sm:$0xff] }
 0x288   :  { %v2623_v50 = vmul.f32 -1.442695, %v1134_v38  ;;  %1479 = vmatpush.msra.mxu2 %v4178_v63  ;;  %5570 = vst [vmem:[#allocation38_spill] sm:$0xff] %v4181_v20  ;;  %1501 = vmatpush.msra.mxu3 %v4181_v20  ;;  %v4191_v38 = vld [vmem:[#allocation2 + $0x200] sm:$0xff]  ;;  %v4194_v63 = vld [vmem:[#allocation2 + $0x208] sm:$0xff]  ;;  %v4249_v3 = vld [vmem:[#allocation2 + $0x130] sm:$0xff] }
 0x289   :  { %v1122_v14 = vmul.f32 %v4148_v30, %v1121_v10  ;;  %5571 = vst [vmem:[#allocation39_spill] sm:$0xff] %v4185_v49  ;;  %1436 = vmatpush.msrb.mxu0 %v4185_v49  ;;  %1458 = vmatpush.msrb.mxu1 %v4188_v41  ;;  %v4197_v20 = vld [vmem:[#allocation2 + $0x1c0] sm:$0xff]  ;;  %v4200_v10 = vld [vmem:[#allocation2 + $0x1c8] sm:$0xff]  ;;  %v4203_v49 = vld [vmem:[#allocation2 + $0x1d0] sm:$0xff] }
 0x28a   :  { %5572 = vst [vmem:[#allocation40_spill] sm:$0xff] %v4188_v41  ;;  %2694 = vpow2.f32 %v2623_v50  ;;  %1480 = vmatpush.msra.mxu2 %v4191_v38  ;;  %1502 = vmatpush.msra.mxu3 %v4194_v63  ;;  %v4206_v50 = vld [vmem:[#allocation2 + $0x1d8] sm:$0xff]  ;;  %v4218_v41 = vld [vmem:[#allocation2 + $0x1a0] sm:$0xff] }
 0x28b   :  { %5573 = vst [vmem:[#allocation47_spill] sm:$0xff] %v4191_v38  ;;  %1437 = vmatpush.msrb.mxu0 %v4197_v20  ;;  %1459 = vmatpush.msrb.mxu1 %v4200_v10  ;;  %v1123_v38 = vadd.f32 %v4148_v30, %v1122_v14  ;;  %v1128_v14 = vand.u32 2147483647, %v4107_v24  ;;  %v4252_v6 = vld [vmem:[#allocation2 + $0x138] sm:$0xff] }
 0x28c   :  { %5574 = vst [vmem:[#allocation41_spill] sm:$0xff] %v4194_v63  ;;  %1481 = vmatpush.msra.mxu2 %v4203_v49  ;;  %1503 = vmatpush.msra.mxu3 %v4206_v50  ;;  %v4211_v63 = vld [vmem:[#allocation2 + $0x190] sm:$0xff] }
 0x28d   :  { %5575 = vst [vmem:[#allocation42_spill] sm:$0xff] %v4197_v20  ;;  %1438 = vmatpush.msrb.mxu0 %v4211_v63  ;;  %v4214_v20 = vld [vmem:[#allocation2 + $0x198] sm:$0xff]  ;;  %vm1129_vm5 = vcmp.eq.f32.partialorder %v1128_v14, 8.507059e+37  ;;  %v4275_v14 = vld [vmem:[#allocation2 + $0xd0] sm:$0xff] }
 0x28e   :  { %5576 = vst [vmem:[#allocation31_spill] sm:$0xff] %v4200_v10  ;;  %1460 = vmatpush.msrb.mxu1 %v4214_v20  ;;  %v1130_v10 = vand.u32 2147483648, %v4107_v24  ;;  %1482 = vmatpush.msra.mxu2 %v4218_v41  ;;  %v4241_v24 = vld [vmem:[#allocation2 + $0x178] sm:$0xff] }
 0x28f   :  { %5577 = vst [vmem:[#allocation48_spill] sm:$0xff] %v4203_v49  ;;  %v4221_v49 = vld [vmem:[#allocation2 + $0x1a8] sm:$0xff] }
 0x290   :  { %5578 = vst [vmem:[#allocation43_spill] sm:$0xff] %v4206_v50  ;;  %1504 = vmatpush.msra.mxu3 %v4221_v49  ;;  %v4226_v50 = vld [vmem:[#allocation2 + $0x160] sm:$0xff] }
 0x291   :  { %5579 = vst [vmem:[#allocation44_spill] sm:$0xff] %v4211_v63  ;;  %1439 = vmatpush.msrb.mxu0 %v4226_v50  ;;  %v4229_v63 = vld [vmem:[#allocation2 + $0x168] sm:$0xff] }
 0x292   :  { %5580 = vst [vmem:[#allocation34_spill] sm:$0xff] %v4214_v20  ;;  %1461 = vmatpush.msrb.mxu1 %v4229_v63  ;;  %v2695_v20 = vpop.eup %2694  ;;  %1505 = vmatpush.msra.mxu3 %v4241_v24 }
 0x293   :  { %5581 = vst [vmem:[#allocation49_spill] sm:$0xff] %v4218_v41  ;;  %1440 = vmatpush.msrb.mxu0 %v4249_v3  ;;  %v4265_v41 = vld [vmem:[#allocation2 + $0x108] sm:$0xff] }
 0x294   :  { %5582 = vst [vmem:[#allocation52_spill] sm:$0xff] %v4221_v49  ;;  %v4238_v49 = vld [vmem:[#allocation2 + $0x170] sm:$0xff]  ;;  %1462 = vmatpush.msrb.mxu1 %v4252_v6 }
 0x295   :  { %5583 = vst [vmem:[#allocation53_spill] sm:$0xff] %v4226_v50  ;;  %1483 = vmatpush.msra.mxu2 %v4238_v49  ;;  %v4244_v50 = vadd.f32 1.0, %v2695_v20  ;;  %v4258_v20 = vld [vmem:[#allocation2 + $0x148] sm:$0xff] }
 0x296   :  { %5584 = vst [vmem:[#allocation50_spill] sm:$0xff] %v4229_v63  ;;  %v1127_v63 = vsel %vm4234_vm4, %v4148_v30, %v1123_v38  ;;  %1506 = vmatpush.msra.mxu3 %v4258_v20  ;;  %v4262_v30 = vld [vmem:[#allocation2 + $0x100] sm:$0xff]  ;;  %1463 = vmatpush.msrb.mxu1 %v4265_v41 }
 0x297   :  { %5587 = vst [vmem:[#allocation59_spill] sm:$0xff] %v4238_v49  ;;  %v1131_v49 = vor.u32 1.1754944e-38, %v1130_v10  ;;  %1484 = vmatpush.msra.mxu2 %v4255_v46  ;;  %2696 = vrcp.f32 %v4244_v50  ;;  %1441 = vmatpush.msrb.mxu0 %v4262_v30  ;;  %v4268_v10 = vld [vmem:[#allocation2 + $0x110] sm:$0xff]  ;;  %vm1144_vm7 = vweird.f32 %v4244_v50 }
 0x298   :  { %5588 = vst [vmem:[#allocation76_spill] sm:$0xff] %v4241_v24 }
 0x299   :  { %5589 = vst [vmem:[#allocation79_spill] sm:$0xff] %v4249_v3  ;;  %v1132_v38 = vsel %vm1129_vm5, %v1131_v49, %v1127_v63  ;;  %1485 = vmatpush.msra.mxu2 %v4268_v10  ;;  %1442 = vmatpush.msrb.mxu0 %v4275_v14  ;;  %v4284_v63 = vld [vmem:[#allocation2 + $0xe8] sm:$0xff] }
 0x29a   :  { %5590 = vst [vmem:[#allocation80_spill] sm:$0xff] %v4252_v6 }
 0x29b   :  { %5591 = vst [vmem:[#allocation81_spill] sm:$0xff] %v4255_v46  ;;  %v4271_v46 = vld [vmem:[#allocation2 + $0x118] sm:$0xff] }
 0x29c   :  { %5592 = vst [vmem:[#allocation82_spill] sm:$0xff] %v4258_v20  ;;  %1507 = vmatpush.msra.mxu3 %v4271_v46  ;;  %v1065_v20 = vadd.f32 %v1064_v53, %v3937_v15  ;;  %v4290_v53 = vld [vmem:[#allocation2 + $0xa8] sm:$0xff]  ;;  %v4293_v15 = vld [vmem:[#allocation2 + $0xb0] sm:$0xff] }
 0x29d   :  { %5593 = vst [vmem:[#allocation83_spill] sm:$0xff] %v4262_v30  ;;  %v4278_v30 = vld [vmem:[#allocation2 + $0xd8] sm:$0xff] }
 0x29e   :  { %5594 = vst [vmem:[#allocation84_spill] sm:$0xff] %v4265_v41  ;;  %1464 = vmatpush.msrb.mxu1 %v4278_v30  ;;  %v4281_v41 = vld [vmem:[#allocation2 + $0xe0] sm:$0xff]  ;;  %1508 = vmatpush.msra.mxu3 %v4284_v63  ;;  %v1154_v49 = vmul.f32 %v1132_v38, %v1065_v20  ;;  %v4302_v20 = vld [vmem:[#allocation2 + $0x78] sm:$0xff] }
 0x29f   :  { %5595 = vst [vmem:[#allocation85_spill] sm:$0xff] %v4268_v10  ;;  %1486 = vmatpush.msra.mxu2 %v4281_v41  ;;  %v4319_v10 = vld [vmem:[#allocation2 + $0x50] sm:$0xff] }
 0x2a0   :  { %5596 = vst [vmem:[#allocation86_spill] sm:$0xff] %v4271_v46  ;;  %v4287_v46 = vld [vmem:[#allocation2 + $0xa0] sm:$0xff]  ;;  %1465 = vmatpush.msrb.mxu1 %v4290_v53 }
 0x2a1   :  { %5597 = vst [vmem:[#allocation87_spill] sm:$0xff] %v4275_v14  ;;  %1443 = vmatpush.msrb.mxu0 %v4287_v46  ;;  %1487 = vmatpush.msra.mxu2 %v4293_v15  ;;  %v4299_v14 = vld [vmem:[#allocation2 + $0x70] sm:$0xff] }
 0x2a2   :  { %5598 = vst [vmem:[#allocation88_spill] sm:$0xff] %v4278_v30  ;;  %v4296_v30 = vld [vmem:[#allocation2 + $0xb8] sm:$0xff]  ;;  %1466 = vmatpush.msrb.mxu1 %v4302_v20 }
 0x2a3   :  { %5599 = vst [vmem:[#allocation89_spill] sm:$0xff] %v4281_v41  ;;  %1509 = vmatpush.msra.mxu3 %v4296_v30  ;;  %v2697_v41 = vpop.eup %2696  ;;  %1444 = vmatpush.msrb.mxu0 %v4299_v14 }
 0x2a4   :  { %5600 = vst [vmem:[#allocation90_spill] sm:$0xff] %v4284_v63  ;;  %v1140_v38 = vmul.f32 %v2697_v41, %v4244_v50  ;;  %v4313_v63 = vld [vmem:[#allocation2 + $0x40] sm:$0xff]  ;;  %vm1145_vm6 = vweird.f32 %v2697_v41 }
 0x2a5   :  { %5601 = vst [vmem:[#allocation91_spill] sm:$0xff] %v4287_v46  ;;  %1445 = vmatpush.msrb.mxu0 %v4313_v63  ;;  %vm1146_vm8 = vmor %vm1144_vm7, %vm1145_vm6 }
 0x2a6   :  { %5602 = vst [vmem:[#allocation92_spill] sm:$0xff] %v4290_v53  ;;  %v4306_v53 = vld [vmem:[#allocation2 + $0x80] sm:$0xff] }
 0x2a7   :  { %5603 = vst [vmem:[#allocation93_spill] sm:$0xff] %v4293_v15  ;;  %1488 = vmatpush.msra.mxu2 %v4306_v53  ;;  %v4309_v15 = vld [vmem:[#allocation2 + $0x88] sm:$0xff] }
 0x2a8   :  { %5604 = vst [vmem:[#allocation94_spill] sm:$0xff] %v4296_v30  ;;  %1510 = vmatpush.msra.mxu3 %v4309_v15  ;;  %v5609_v30 = vld [vmem:[#allocation77_spill] sm:$0xff] }
 0x2a9   :  { %5605 = vst [vmem:[#allocation95_spill] sm:$0xff] %v4299_v14  ;;  %v1155_v46 = vadd.f32 %v1154_v49, %v5609_v30  ;;  %v4316_v14 = vld [vmem:[#allocation2 + $0x48] sm:$0xff]  ;;  %1489 = vmatpush.msra.mxu2 %v4319_v10  ;;  %v4326_v30 = vld [vmem:[#allocation2 + $0x10] sm:$0xff]  ;;  %v4329_v49 = vld [vmem:[#allocation2 + $0x18] sm:$0xff] }
 0x2aa   :  { %5606 = vst [vmem:[#allocation96_spill] sm:$0xff] %v4302_v20  ;;  %1467 = vmatpush.msrb.mxu1 %v4316_v14  ;;  %v1141_v20 = vsub.f32 1.0, %v1140_v38  ;;  %1446 = vmatpush.msrb.mxu0 %v4326_v30  ;;  %v1148_v38 = vand.u32 2147483647, %v4244_v50 }
 0x2ab   :  { %5607 = vst [vmem:[#allocation97_spill] sm:$0xff] %v4306_v53  ;;  %v4322_v53 = vld [vmem:[#allocation2 + $0x58] sm:$0xff]  ;;  %2698 = vtanh.f32 %v1155_v46 }
 0x2ac   :  { %5608 = vst [vmem:[#allocation98_spill] sm:$0xff] %v4309_v15  ;;  %1511 = vmatpush.msra.mxu3 %v4322_v53  ;;  %v1150_v15 = vand.u32 2147483648, %v4244_v50  ;;  %1468 = vmatpush.msrb.mxu1 %v4329_v49  ;;  %vm1149_vm9 = vcmp.eq.f32.partialorder %v1148_v38, 8.507059e+37  ;;  %v5618_v46 = vld [vmem:[#allocation56_spill] sm:$0xff]  ;;  %v5619_v50 = vld [vmem:[#allocation57_spill] sm:$0xff] }
 0x2ad   :  { %5610 = vst [vmem:[#allocation77_spill] sm:$0xff] %v4313_v63  ;;  %v4333_v63 = vld [vmem:[#allocation2 + $0x20] sm:$0xff] }
 0x2ae   :  { %5611 = vst [vmem:[#allocation99_spill] sm:$0xff] %v4316_v14  ;;  %v1142_v14 = vmul.f32 %v2697_v41, %v1141_v20  ;;  %1490 = vmatpush.msra.mxu2 %v4333_v63 }
 0x2af   :  { %5612 = vst [vmem:[#allocation100_spill] sm:$0xff] %v4319_v10  ;;  %v4336_v10 = vld [vmem:[#allocation2 + $0x28] sm:$0xff] }
 0x2b0   :  { %5613 = vst [vmem:[#allocation101_spill] sm:$0xff] %v4322_v53  ;;  %1512 = vmatpush.msra.mxu3 %v4336_v10  ;;  %v1151_v53 = vor.u32 1.1754944e-38, %v1150_v15 }
 0x2b1   :  { %5614 = vst [vmem:[#allocation102_spill] sm:$0xff] %v4326_v30  ;;  %v1143_v30 = vadd.f32 %v2697_v41, %v1142_v14  ;;  %v2699_v3 = vpop.eup %2698 }
 0x2b2   :  { %5615 = vst [vmem:[#allocation103_spill] sm:$0xff] %v4329_v49 }
 0x2b3   :  { %5616 = vst [vmem:[#allocation104_spill] sm:$0xff] %v4333_v63  ;;  %v1147_v6 = vsel %vm1146_vm8, %v2697_v41, %v1143_v30 }
 0x2b4   :  { %5617 = vst [vmem:[#allocation105_spill] sm:$0xff] %v4336_v10  ;;  %v1152_v20 = vsel %vm1149_vm9, %v1151_v53, %v1147_v6 }
 0x2b5   :  { %v1157_v49 = vsub.f32 1.0, %v1152_v20  ;;  %v1159_v42 = vmul.f32 %v1152_v20, %v3986_v2 }
 0x2b7   :  { %v1158_v24 = vmul.f32 %v2699_v3, %v1157_v49 }
 0x2b9   :  { %v4341_v48 = vadd.f32 %v1159_v42, %v1158_v24 }
 0x2bb   :  { %2530 = vst [vmem:[%s5154_s6 + $0x68] sm:$0xff] %v4341_v48  ;;  %1180 = vmatmul.f32.gmra.mxu0 %v4341_v48  ;;  %1202 = vmatmul.f32.gmra.mxu1 %v4341_v48 }
 0x2bc   :  { %1224 = vmatmul.f32.gmra.mxu2 %v4341_v48  ;;  %1245 = vmatmul.f32.gmra.mxu3 %v4341_v48 }
 0x2c3   :  { %1265 = vmatmul.f32.vlgmr.msra.gmra.mxu0 %v4105_v32  ;;  %1287 = vmatmul.f32.vlgmr.msra.gmra.mxu1 %v4105_v32 }
 0x2c4   :  { %1613 = vmatpush.msra.mxu0 %v3998_v13  ;;  %1635 = vmatpush.msra.mxu1 %v4001_v35 }
 0x2c6   :  { %1614 = vmatpush.msra.mxu0 %v4004_v29  ;;  %1636 = vmatpush.msra.mxu1 %v4007_v23 }
 0x2c8   :  { %1615 = vmatpush.msra.mxu0 %v4010_v54  ;;  %1637 = vmatpush.msra.mxu1 %v4013_v16 }
 0x2ca   :  { %1616 = vmatpush.msra.mxu0 %v4016_v56  ;;  %1638 = vmatpush.msra.mxu1 %v4019_v17 }
 0x2cb   :  { %1267 = vmatmul.f32.gmra.mxu0 %v4341_v48  ;;  %1289 = vmatmul.f32.gmra.mxu1 %v4341_v48 }
 0x2cc   :  { %1617 = vmatpush.msra.mxu0 %v4024_v28  ;;  %1639 = vmatpush.msra.mxu1 %v4027_v62 }
 0x2ce   :  { %1618 = vmatpush.msra.mxu0 %v4030_v43  ;;  %1640 = vmatpush.msra.mxu1 %v4033_v0 }
 0x2d0   :  { %1619 = vmatpush.msra.mxu0 %v4036_v9  ;;  %1641 = vmatpush.msra.mxu1 %v4039_v5 }
 0x2d2   :  { %1620 = vmatpush.msra.mxu0 %v4042_v59  ;;  %1642 = vmatpush.msra.mxu1 %v4045_v40 }
 0x2d4   :  { %1621 = vmatpush.msra.mxu0 %v4048_v21  ;;  %1643 = vmatpush.msra.mxu1 %v4051_v52 }
 0x2d6   :  { %1622 = vmatpush.msra.mxu0 %v4054_v4  ;;  %1644 = vmatpush.msra.mxu1 %v4057_v19 }
 0x2d8   :  { %1623 = vmatpush.msra.mxu0 %v4060_v51  ;;  %1645 = vmatpush.msra.mxu1 %v4063_v36 }
 0x2da   :  { %1624 = vmatpush.msra.mxu0 %v4066_v7  ;;  %1646 = vmatpush.msra.mxu1 %v4069_v37 }
 0x2dc   :  { %1625 = vmatpush.msra.mxu0 %v4072_v47  ;;  %1647 = vmatpush.msra.mxu1 %v4075_v55 }
 0x2de   :  { %1626 = vmatpush.msra.mxu0 %v4078_v11  ;;  %1648 = vmatpush.msra.mxu1 %v4081_v57 }
 0x2e0   :  { %1627 = vmatpush.msra.mxu0 %v4084_v45  ;;  %1649 = vmatpush.msra.mxu1 %v4087_v44 }
 0x2e2   :  { %1628 = vmatpush.msra.mxu0 %v4090_v61  ;;  %1650 = vmatpush.msra.mxu1 %v4093_v18 }
 0x2fa   :  { %v1178_v15 = vpop.f32.mrf.mxu0  ;;  %v1200_v2 = vpop.f32.mrf.mxu1 }
 0x2fb   :  { %v1179_v3 = vadd.f32 %v1178_v15, %v5552_v27  ;;  %v1201_v42 = vadd.f32 %v1200_v2, %v5553_v60 }
 0x2fd   :  { %v1293_v6 = vadd.f32 %v1179_v3, %v5618_v46  ;;  %v1313_v24 = vadd.f32 %v1201_v42, %v5619_v50 }
 0x2ff   :  { %v2624_v41 = vmul.f32 -1.442695, %v1293_v6  ;;  %v2625_v14 = vmul.f32 -1.442695, %v1313_v24 }
 0x301   :  { %2700 = vpow2.f32 %v2624_v41  ;;  %v1244_v53 = vpop.f32.mrf.mxu3  ;;  %v1222_v50 = vpop.f32.mrf.mxu2 }
 0x302   :  { %2702 = vpow2.f32 %v2625_v14  ;;  %v1223_v14 = vadd.f32 %v1222_v50, %v3884_v33 }
 0x307   :  { %v2701_v30 = vpop.eup %2700 }
 0x308   :  { %v2703_v49 = vpop.eup %2702  ;;  %v1297_v38 = vadd.f32 1.0, %v2701_v30 }
 0x309   :  { %v1317_v20 = vadd.f32 1.0, %v2703_v49 }
 0x30a   :  { %2704 = vrcp.f32 %v1297_v38  ;;  %v1309_v3 = vand.u32 2147483648, %v1297_v38  ;;  %v1307_v42 = vand.u32 2147483647, %v1297_v38  ;;  %vm1303_vm11 = vweird.f32 %v1297_v38 }
 0x30b   :  { %2706 = vrcp.f32 %v1317_v20  ;;  %v1329_v44 = vand.u32 2147483648, %v1317_v20  ;;  %vm1323_vm15 = vweird.f32 %v1317_v20 }
 0x30c   :  { %v1310_v41 = vor.u32 1.1754944e-38, %v1309_v3  ;;  %vm1308_vm13 = vcmp.eq.f32.partialorder %v1307_v42, 8.507059e+37 }
 0x30d   :  { %v1330_v57 = vor.u32 1.1754944e-38, %v1329_v44 }
 0x310   :  { %v2705_v18 = vpop.eup %2704 }
 0x311   :  { %v2707_v61 = vpop.eup %2706  ;;  %v1299_v15 = vmul.f32 %v2705_v18, %v1297_v38  ;;  %vm1304_vm10 = vweird.f32 %v2705_v18 }
 0x312   :  { %v1319_v27 = vmul.f32 %v2707_v61, %v1317_v20  ;;  %vm1305_vm12 = vmor %vm1303_vm11, %vm1304_vm10  ;;  %vm1324_vm14 = vweird.f32 %v2707_v61 }
 0x313   :  { %v1300_v2 = vsub.f32 1.0, %v1299_v15  ;;  %vm1325_vm0 = vmor %vm1323_vm15, %vm1324_vm14 }
 0x314   :  { %v1320_v60 = vsub.f32 1.0, %v1319_v27  ;;  %v1327_v27 = vand.u32 2147483647, %v1317_v20  ;;  %v5621_v20 = vld [vmem:[#allocation21_spill] sm:$0xff] }
 0x315   :  { %v1301_v46 = vmul.f32 %v2705_v18, %v1300_v2  ;;  %v5620_v2 = vld [vmem:[#allocation54_spill] sm:$0xff] }
 0x316   :  { %v1321_v6 = vmul.f32 %v2707_v61, %v1320_v60  ;;  %vm1328_vm1 = vcmp.eq.f32.partialorder %v1327_v27, 8.507059e+37 }
 0x317   :  { %v1302_v24 = vadd.f32 %v2705_v18, %v1301_v46 }
 0x318   :  { %v1322_v49 = vadd.f32 %v2707_v61, %v1321_v6 }
 0x319   :  { %v1306_v53 = vsel %vm1305_vm12, %v2705_v18, %v1302_v24 }
 0x31a   :  { %v1311_v30 = vsel %vm1308_vm13, %v1310_v41, %v1306_v53  ;;  %v1326_v60 = vsel %vm1325_vm0, %v2707_v61, %v1322_v49  ;;  %v5622_v41 = vld [vmem:[#allocation22_spill] sm:$0xff]  ;;  %v5623_v53 = vld [vmem:[#allocation23_spill] sm:$0xff] }
 0x31b   :  { %v1333_v15 = vmul.f32 %v1311_v30, %v1223_v14  ;;  %v1331_v38 = vsel %vm1328_vm1, %v1330_v57, %v1326_v60  ;;  %v5624_v30 = vld [vmem:[#allocation26_spill] sm:$0xff]  ;;  %v5625_v49 = vld [vmem:[#allocation27_spill] sm:$0xff]  ;;  %v5628_v60 = vld [vmem:[#allocation32_spill] sm:$0xff] }
 0x31c   :  { %v1336_v3 = vsub.f32 1.0, %v1331_v38  ;;  %v1338_v18 = vmul.f32 %v1331_v38, %v4105_v32  ;;  %v5629_v38 = vld [vmem:[#allocation33_spill] sm:$0xff] }
 0x31d   :  { %v1334_v45 = vadd.f32 %v1333_v15, %v5620_v2  ;;  %v5626_v15 = vld [vmem:[#allocation29_spill] sm:$0xff]  ;;  %v5627_v2 = vld [vmem:[#allocation30_spill] sm:$0xff] }
 0x31f   :  { %2708 = vtanh.f32 %v1334_v45 }
 0x325   :  { %v2709_v46 = vpop.eup %2708 }
 0x326   :  { %v1337_v50 = vmul.f32 %v2709_v46, %v1336_v3  ;;  %v5630_v3 = vld [vmem:[#allocation35_spill] sm:$0xff]  ;;  %v5631_v46 = vld [vmem:[#allocation36_spill] sm:$0xff] }
 0x328   :  { %v4394_v6 = vadd.f32 %v1338_v18, %v1337_v50  ;;  %v5632_v50 = vld [vmem:[#allocation38_spill] sm:$0xff]  ;;  %v5633_v18 = vld [vmem:[#allocation39_spill] sm:$0xff] }
 0x32a   :  { %2521 = vst [vmem:[%s5154_s6 + $0x20] sm:$0xff] %v4394_v6  ;;  %1403 = vmatmul.f32.vlgmr.msrb.gmra.mxu2 %v4394_v6  ;;  %1425 = vmatmul.f32.vlgmr.msrb.gmra.mxu3 %v4394_v6 }
 0x32b   :  { %1447 = vmatmul.f32.vlgmr.msrb.gmra.mxu0 %v4394_v6  ;;  %1469 = vmatmul.f32.vlgmr.msrb.gmra.mxu1 %v4394_v6 }
 0x32c   :  { %1657 = vmatpush.msrb.mxu2 %v4118_v1  ;;  %1679 = vmatpush.msrb.mxu3 %v4121_v22 }
 0x32d   :  { %1701 = vmatpush.msrb.mxu0 %v4124_v8  ;;  %1723 = vmatpush.msrb.mxu1 %v4127_v25 }
 0x32e   :  { %1658 = vmatpush.msrb.mxu2 %v4130_v26  ;;  %1680 = vmatpush.msrb.mxu3 %v4133_v39 }
 0x32f   :  { %1702 = vmatpush.msrb.mxu0 %v4136_v31  ;;  %1724 = vmatpush.msrb.mxu1 %v4139_v12 }
 0x330   :  { %1659 = vmatpush.msrb.mxu2 %v4142_v58  ;;  %1681 = vmatpush.msrb.mxu3 %v5621_v20 }
 0x331   :  { %1703 = vmatpush.msrb.mxu0 %v5623_v53  ;;  %1725 = vmatpush.msrb.mxu1 %v5624_v30 }
 0x332   :  { %1660 = vmatpush.msrb.mxu2 %v5625_v49  ;;  %1682 = vmatpush.msrb.mxu3 %v5626_v15 }
 0x333   :  { %1704 = vmatpush.msrb.mxu0 %v5627_v2  ;;  %1726 = vmatpush.msrb.mxu1 %v5628_v60 }
 0x334   :  { %1661 = vmatpush.msrb.mxu2 %v5629_v38  ;;  %1683 = vmatpush.msrb.mxu3 %v5630_v3  ;;  %v5671_v38 = vld [vmem:[#allocation77_spill] sm:$0xff] }
 0x335   :  { %1705 = vmatpush.msrb.mxu0 %v5631_v46  ;;  %1727 = vmatpush.msrb.mxu1 %v5632_v50  ;;  %v5642_v50 = vld [vmem:[#allocation74_spill] sm:$0xff] }
 0x336   :  { %1662 = vmatpush.msrb.mxu2 %v5633_v18  ;;  %v5643_v18 = vld [vmem:[#allocation44_spill] sm:$0xff] }
 0x338   :  { %v1181_v42 = vpop.f32.mrf.mxu0  ;;  %v1203_v24 = vpop.f32.mrf.mxu1 }
 0x339   :  { %v5634_v42 = vld [vmem:[#allocation40_spill] sm:$0xff] }
 0x33a   :  { %1684 = vmatpush.msrb.mxu3 %v5634_v42  ;;  %v5644_v42 = vld [vmem:[#allocation34_spill] sm:$0xff] }
 0x33f   :  { %v1225_v57 = vpop.f32.mrf.mxu2  ;;  %v1246_v45 = vpop.f32.mrf.mxu3 }
 0x340   :  { %v1247_v44 = vadd.f32 %v1246_v45, %v3889_v34  ;;  %v1266_v61 = vpop.f32.mrf.mxu0  ;;  %v1288_v32 = vpop.f32.mrf.mxu1  ;;  %v5635_v57 = vld [vmem:[#allocation47_spill] sm:$0xff]  ;;  %v5636_v45 = vld [vmem:[#allocation41_spill] sm:$0xff] }
 0x341   :  { %1706 = vmatpush.msrb.mxu0 %v5635_v57  ;;  %1728 = vmatpush.msrb.mxu1 %v5636_v45  ;;  %v5638_v32 = vld [vmem:[#allocation42_spill] sm:$0xff]  ;;  %v5645_v57 = vld [vmem:[#allocation49_spill] sm:$0xff]  ;;  %v5646_v45 = vld [vmem:[#allocation52_spill] sm:$0xff] }
 0x342   :  { %v1340_v14 = vadd.f32 %v1247_v44, %v5622_v41  ;;  %v5637_v44 = vld [vmem:[#allocation78_spill] sm:$0xff]  ;;  %1663 = vmatpush.msrb.mxu2 %v5638_v32  ;;  %v5639_v41 = vld [vmem:[#allocation31_spill] sm:$0xff]  ;;  %v5647_v32 = vld [vmem:[#allocation53_spill] sm:$0xff] }
 0x343   :  { %1685 = vmatpush.msrb.mxu3 %v5639_v41  ;;  %v5648_v41 = vld [vmem:[#allocation50_spill] sm:$0xff] }
 0x344   :  { %v2626_v27 = vmul.f32 -1.442695, %v1340_v14  ;;  %v5640_v14 = vld [vmem:[#allocation48_spill] sm:$0xff]  ;;  %1664 = vmatpush.msrb.mxu2 %v5643_v18  ;;  %v5667_v18 = vld [vmem:[#allocation95_spill] sm:$0xff] }
 0x345   :  { %1707 = vmatpush.msrb.mxu0 %v5640_v14  ;;  %1686 = vmatpush.msrb.mxu3 %v5644_v42  ;;  %v5649_v14 = vld [vmem:[#allocation59_spill] sm:$0xff]  ;;  %v5653_v42 = vld [vmem:[#allocation81_spill] sm:$0xff] }
 0x346   :  { %2710 = vpow2.f32 %v2626_v27  ;;  %v5641_v27 = vld [vmem:[#allocation43_spill] sm:$0xff]  ;;  %1665 = vmatpush.msrb.mxu2 %v5647_v32  ;;  %v5657_v32 = vld [vmem:[#allocation85_spill] sm:$0xff] }
 0x347   :  { %1729 = vmatpush.msrb.mxu1 %v5641_v27  ;;  %1708 = vmatpush.msrb.mxu0 %v5645_v57  ;;  %v5650_v27 = vld [vmem:[#allocation76_spill] sm:$0xff]  ;;  %v5654_v57 = vld [vmem:[#allocation82_spill] sm:$0xff] }
 0x348   :  { %v1268_v24 = vpop.f32.mrf.mxu0  ;;  %1687 = vmatpush.msrb.mxu3 %v5648_v41  ;;  %v5658_v41 = vld [vmem:[#allocation86_spill] sm:$0xff] }
 0x349   :  { %v1269_v61 = vadd.f32 %v1268_v24, %v5637_v44  ;;  %1730 = vmatpush.msrb.mxu1 %v5646_v45  ;;  %1709 = vmatpush.msrb.mxu0 %v5649_v14  ;;  %v5659_v14 = vld [vmem:[#allocation87_spill] sm:$0xff] }
 0x34b   :  { %v1360_v46 = vadd.f32 %v1269_v61, %v5642_v50  ;;  %1731 = vmatpush.msrb.mxu1 %v5650_v27  ;;  %v5651_v50 = vld [vmem:[#allocation79_spill] sm:$0xff]  ;;  %v5652_v61 = vld [vmem:[#allocation80_spill] sm:$0xff]  ;;  %1710 = vmatpush.msrb.mxu0 %v5653_v42 }
 0x34c   :  { %v2711_v3 = vpop.eup %2710  ;;  %1666 = vmatpush.msrb.mxu2 %v5651_v50  ;;  %1688 = vmatpush.msrb.mxu3 %v5652_v61  ;;  %v5660_v27 = vld [vmem:[#allocation88_spill] sm:$0xff]  ;;  %v5661_v50 = vld [vmem:[#allocation89_spill] sm:$0xff]  ;;  %v5662_v61 = vld [vmem:[#allocation90_spill] sm:$0xff] }
 0x34d   :  { %v1344_v24 = vadd.f32 1.0, %v2711_v3  ;;  %v2627_v44 = vmul.f32 -1.442695, %v1360_v46  ;;  %1732 = vmatpush.msrb.mxu1 %v5654_v57  ;;  %v5655_v3 = vld [vmem:[#allocation83_spill] sm:$0xff]  ;;  %v5656_v46 = vld [vmem:[#allocation84_spill] sm:$0xff]  ;;  %1711 = vmatpush.msrb.mxu0 %v5657_v32  ;;  %v5666_v32 = vld [vmem:[#allocation94_spill] sm:$0xff] }
 0x34e   :  { %1667 = vmatpush.msrb.mxu2 %v5655_v3  ;;  %1689 = vmatpush.msrb.mxu3 %v5656_v46  ;;  %v5663_v42 = vld [vmem:[#allocation91_spill] sm:$0xff]  ;;  %v5664_v57 = vld [vmem:[#allocation92_spill] sm:$0xff]  ;;  %v5665_v46 = vld [vmem:[#allocation93_spill] sm:$0xff] }
 0x34f   :  { %2712 = vrcp.f32 %v1344_v24  ;;  %1733 = vmatpush.msrb.mxu1 %v5658_v41  ;;  %1712 = vmatpush.msrb.mxu0 %v5661_v50  ;;  %v5669_v50 = vld [vmem:[#allocation97_spill] sm:$0xff]  ;;  %vm1350_vm3 = vweird.f32 %v1344_v24 }
 0x350   :  { %2714 = vpow2.f32 %v2627_v44  ;;  %1668 = vmatpush.msrb.mxu2 %v5659_v14  ;;  %1690 = vmatpush.msrb.mxu3 %v5660_v27  ;;  %v5668_v14 = vld [vmem:[#allocation96_spill] sm:$0xff] }
 0x351   :  { %1734 = vmatpush.msrb.mxu1 %v5662_v61  ;;  %1713 = vmatpush.msrb.mxu0 %v5665_v46  ;;  %v5670_v61 = vld [vmem:[#allocation98_spill] sm:$0xff]  ;;  %v1354_v46 = vand.u32 2147483647, %v1344_v24 }
 0x352   :  { %1669 = vmatpush.msrb.mxu2 %v5663_v42  ;;  %1691 = vmatpush.msrb.mxu3 %v5664_v57  ;;  %v1356_v42 = vand.u32 2147483648, %v1344_v24  ;;  %v5672_v57 = vld [vmem:[#allocation99_spill] sm:$0xff] }
 0x353   :  { %1735 = vmatpush.msrb.mxu1 %v5666_v32  ;;  %1714 = vmatpush.msrb.mxu0 %v5669_v50  ;;  %v5673_v32 = vld [vmem:[#allocation100_spill] sm:$0xff]  ;;  %vm1355_vm5 = vcmp.eq.f32.partialorder %v1354_v46, 8.507059e+37 }
 0x354   :  { %1670 = vmatpush.msrb.mxu2 %v5667_v18  ;;  %1692 = vmatpush.msrb.mxu3 %v5668_v14  ;;  %v1290_v18 = vpop.f32.mrf.mxu1  ;;  %v5675_v14 = vld [vmem:[#allocation102_spill] sm:$0xff] }
 0x355   :  { %v2713_v44 = vpop.eup %2712  ;;  %1736 = vmatpush.msrb.mxu1 %v5670_v61  ;;  %1715 = vmatpush.msrb.mxu0 %v5673_v32 }
 0x356   :  { %v2715_v3 = vpop.eup %2714  ;;  %v1346_v45 = vmul.f32 %v2713_v44, %v1344_v24  ;;  %1671 = vmatpush.msrb.mxu2 %v5671_v38  ;;  %1693 = vmatpush.msrb.mxu3 %v5672_v57  ;;  %vm1351_vm2 = vweird.f32 %v2713_v44  ;;  %v1357_v57 = vor.u32 1.1754944e-38, %v1356_v42 }
 0x357   :  { %v1364_v41 = vadd.f32 1.0, %v2715_v3  ;;  %v5674_v3 = vld [vmem:[#allocation101_spill] sm:$0xff]  ;;  %1716 = vmatpush.msrb.mxu0 %v4333_v63  ;;  %vm1352_vm4 = vmor %vm1350_vm3, %vm1351_vm2 }
 0x358   :  { %v1347_v27 = vsub.f32 1.0, %v1346_v45  ;;  %1737 = vmatpush.msrb.mxu1 %v5674_v3  ;;  %1672 = vmatpush.msrb.mxu2 %v5675_v14  ;;  %v5676_v45 = vld [vmem:[#allocation103_spill] sm:$0xff] }
 0x359   :  { %2716 = vrcp.f32 %v1364_v41  ;;  %1694 = vmatpush.msrb.mxu3 %v5676_v45  ;;  %v5678_v14 = vld [vmem:[#allocation75_spill] sm:$0xff]  ;;  %v1376_v45 = vand.u32 2147483648, %v1364_v41  ;;  %v1374_v24 = vand.u32 2147483647, %v1364_v41  ;;  %vm1370_vm7 = vweird.f32 %v1364_v41 }
 0x35a   :  { %v1348_v60 = vmul.f32 %v2713_v44, %v1347_v27  ;;  %1738 = vmatpush.msrb.mxu1 %v4336_v10  ;;  %v5677_v27 = vld [vmem:[#allocation10_spill] sm:$0xff] }
 0x35b   :  { %v1291_v38 = vadd.f32 %v1290_v18, %v5677_v27  ;;  %v1377_v42 = vor.u32 1.1754944e-38, %v1376_v45  ;;  %vm1375_vm9 = vcmp.eq.f32.partialorder %v1374_v24, 8.507059e+37 }
 0x35c   :  { %v1349_v50 = vadd.f32 %v2713_v44, %v1348_v60 }
 0x35e   :  { %v1353_v61 = vsel %vm1352_vm4, %v2713_v44, %v1349_v50 }
 0x35f   :  { %v2717_v32 = vpop.eup %2716  ;;  %v1358_v2 = vsel %vm1355_vm5, %v1357_v57, %v1353_v61 }
 0x360   :  { %v1366_v3 = vmul.f32 %v2717_v32, %v1364_v41  ;;  %v1380_v15 = vmul.f32 %v1358_v2, %v1291_v38  ;;  %vm1371_vm6 = vweird.f32 %v2717_v32 }
 0x361   :  { %vm1372_vm8 = vmor %vm1370_vm7, %vm1371_vm6 }
 0x362   :  { %v1367_v49 = vsub.f32 1.0, %v1366_v3  ;;  %v1381_v30 = vadd.f32 %v1380_v15, %v5678_v14 }
 0x364   :  { %v1368_v60 = vmul.f32 %v2717_v32, %v1367_v49  ;;  %2718 = vtanh.f32 %v1381_v30 }
 0x366   :  { %v1369_v10 = vadd.f32 %v2717_v32, %v1368_v60 }
 0x368   :  { %v1373_v63 = vsel %vm1372_vm8, %v2717_v32, %v1369_v10 }
 0x369   :  { %v1378_v18 = vsel %vm1375_vm9, %v1377_v42, %v1373_v63  ;;  %v5688_v42 = vld [vmem:[#allocation8_spill] sm:$0xff] }
 0x36a   :  { %v2719_v50 = vpop.eup %2718  ;;  %v1383_v46 = vsub.f32 1.0, %v1378_v18  ;;  %v1385_v2 = vmul.f32 %v1378_v18, %v4341_v48 }
 0x36c   :  { %v1384_v57 = vmul.f32 %v2719_v50, %v1383_v46 }
 0x36e   :  { %v4475_v38 = vadd.f32 %v1385_v2, %v1384_v57 }
 0x370   :  { %2528 = vst [vmem:[%s5154_s6 + $0x58] sm:$0xff] %v4475_v38  ;;  %1406 = vmatmul.f32.gmra.mxu2 %v4475_v38  ;;  %1428 = vmatmul.f32.gmra.mxu3 %v4475_v38 }
 0x371   :  { %1450 = vmatmul.f32.gmra.mxu0 %v4475_v38  ;;  %1471 = vmatmul.f32.gmra.mxu1 %v4475_v38 }
 0x378   :  { %1491 = vmatmul.f32.vlgmr.msra.gmra.mxu2 %v4394_v6  ;;  %1513 = vmatmul.f32.vlgmr.msra.gmra.mxu3 %v4394_v6 }
 0x379   :  { %1839 = vmatpush.msra.mxu2 %v3998_v13  ;;  %1861 = vmatpush.msra.mxu3 %v4001_v35  ;;  %v5679_v13 = vld [vmem:[#allocation12_spill] sm:$0xff]  ;;  %v5680_v35 = vld [vmem:[#allocation14_spill] sm:$0xff] }
 0x37b   :  { %1840 = vmatpush.msra.mxu2 %v4004_v29  ;;  %1862 = vmatpush.msra.mxu3 %v4007_v23  ;;  %v5681_v29 = vld [vmem:[#allocation16_spill] sm:$0xff]  ;;  %v5682_v23 = vld [vmem:[#allocation18_spill] sm:$0xff] }
 0x37d   :  { %1841 = vmatpush.msra.mxu2 %v4010_v54  ;;  %1863 = vmatpush.msra.mxu3 %v4013_v16  ;;  %v5683_v54 = vld [vmem:[#allocation20_spill] sm:$0xff] }
 0x37f   :  { %1842 = vmatpush.msra.mxu2 %v4016_v56  ;;  %1864 = vmatpush.msra.mxu3 %v4019_v17 }
 0x380   :  { %1493 = vmatmul.f32.gmra.mxu2 %v4475_v38  ;;  %1515 = vmatmul.f32.gmra.mxu3 %v4475_v38 }
 0x381   :  { %1843 = vmatpush.msra.mxu2 %v4024_v28  ;;  %1865 = vmatpush.msra.mxu3 %v4027_v62  ;;  %v5684_v28 = vld [vmem:[#allocation66_spill] sm:$0xff] }
 0x383   :  { %1844 = vmatpush.msra.mxu2 %v4030_v43  ;;  %1866 = vmatpush.msra.mxu3 %v4033_v0  ;;  %v5685_v43 = vld [vmem:[#allocation67_spill] sm:$0xff] }
 0x385   :  { %1845 = vmatpush.msra.mxu2 %v4036_v9  ;;  %1867 = vmatpush.msra.mxu3 %v4039_v5  ;;  %v5686_v9 = vld [vmem:[#allocation9_spill] sm:$0xff] }
 0x387   :  { %1846 = vmatpush.msra.mxu2 %v4042_v59  ;;  %1868 = vmatpush.msra.mxu3 %v4045_v40  ;;  %v5687_v59 = vld [vmem:[#allocation11_spill] sm:$0xff] }
 0x389   :  { %1847 = vmatpush.msra.mxu2 %v4048_v21  ;;  %1869 = vmatpush.msra.mxu3 %v4051_v52 }
 0x38b   :  { %1848 = vmatpush.msra.mxu2 %v4054_v4  ;;  %1870 = vmatpush.msra.mxu3 %v4057_v19 }
 0x38d   :  { %1849 = vmatpush.msra.mxu2 %v4060_v51  ;;  %1871 = vmatpush.msra.mxu3 %v4063_v36 }
 0x38f   :  { %1850 = vmatpush.msra.mxu2 %v4066_v7  ;;  %1872 = vmatpush.msra.mxu3 %v4069_v37 }
 0x391   :  { %1851 = vmatpush.msra.mxu2 %v4072_v47  ;;  %1873 = vmatpush.msra.mxu3 %v4075_v55 }
 0x393   :  { %1852 = vmatpush.msra.mxu2 %v4078_v11  ;;  %1874 = vmatpush.msra.mxu3 %v5679_v13 }
 0x395   :  { %1853 = vmatpush.msra.mxu2 %v5680_v35  ;;  %1875 = vmatpush.msra.mxu3 %v5681_v29 }
 0x397   :  { %1854 = vmatpush.msra.mxu2 %v5682_v23  ;;  %1876 = vmatpush.msra.mxu3 %v5683_v54 }
 0x3a8   :  { %v1470_v16 = vpop.f32.mrf.mxu1  ;;  %v1448_v49 = vpop.f32.mrf.mxu0 }
 0x3a9   :  { %v1449_v14 = vadd.f32 %v1448_v49, %v3884_v33  ;;  %v5715_v49 = vld [vmem:[#allocation79_spill] sm:$0xff] }
 0x3ad   :  { %v1404_v56 = vpop.f32.mrf.mxu2  ;;  %v1426_v17 = vpop.f32.mrf.mxu3 }
 0x3ae   :  { %v1405_v62 = vadd.f32 %v1404_v56, %v5684_v28  ;;  %v1427_v0 = vadd.f32 %v1426_v17, %v5685_v43 }
 0x3b0   :  { %v1519_v5 = vadd.f32 %v1405_v62, %v5686_v9  ;;  %v1539_v40 = vadd.f32 %v1427_v0, %v5687_v59 }
 0x3b2   :  { %v2628_v21 = vmul.f32 -1.442695, %v1519_v5  ;;  %v2629_v52 = vmul.f32 -1.442695, %v1539_v40 }
 0x3b4   :  { %2720 = vpow2.f32 %v2628_v21  ;;  %v5701_v21 = vld [vmem:[#allocation47_spill] sm:$0xff] }
 0x3b5   :  { %2722 = vpow2.f32 %v2629_v52  ;;  %v5702_v52 = vld [vmem:[#allocation41_spill] sm:$0xff] }
 0x3ba   :  { %v2721_v4 = vpop.eup %2720 }
 0x3bb   :  { %v2723_v19 = vpop.eup %2722  ;;  %v1523_v51 = vadd.f32 1.0, %v2721_v4 }
 0x3bc   :  { %v1543_v36 = vadd.f32 1.0, %v2723_v19  ;;  %v5703_v19 = vld [vmem:[#allocation42_spill] sm:$0xff] }
 0x3bd   :  { %2724 = vrcp.f32 %v1523_v51  ;;  %v1535_v48 = vand.u32 2147483648, %v1523_v51  ;;  %v1533_v30 = vand.u32 2147483647, %v1523_v51  ;;  %vm1529_vm11 = vweird.f32 %v1523_v51 }
 0x3be   :  { %2726 = vrcp.f32 %v1543_v36  ;;  %v1555_v60 = vand.u32 2147483648, %v1543_v36  ;;  %vm1549_vm15 = vweird.f32 %v1543_v36  ;;  %v1553_v24 = vand.u32 2147483647, %v1543_v36 }
 0x3bf   :  { %v1536_v41 = vor.u32 1.1754944e-38, %v1535_v48  ;;  %vm1534_vm13 = vcmp.eq.f32.partialorder %v1533_v30, 8.507059e+37  ;;  %v5711_v48 = vld [vmem:[#allocation53_spill] sm:$0xff]  ;;  %v5714_v30 = vld [vmem:[#allocation76_spill] sm:$0xff] }
 0x3c0   :  { %v1556_v46 = vor.u32 1.1754944e-38, %v1555_v60  ;;  %vm1554_vm1 = vcmp.eq.f32.partialorder %v1553_v24, 8.507059e+37  ;;  %v5721_v60 = vld [vmem:[#allocation84_spill] sm:$0xff] }
 0x3c3   :  { %v2725_v7 = vpop.eup %2724 }
 0x3c4   :  { %v2727_v37 = vpop.eup %2726  ;;  %v1525_v47 = vmul.f32 %v2725_v7, %v1523_v51  ;;  %vm1530_vm10 = vweird.f32 %v2725_v7  ;;  %v5704_v51 = vld [vmem:[#allocation31_spill] sm:$0xff] }
 0x3c5   :  { %v1545_v55 = vmul.f32 %v2727_v37, %v1543_v36  ;;  %vm1531_vm12 = vmor %vm1529_vm11, %vm1530_vm10  ;;  %vm1550_vm14 = vweird.f32 %v2727_v37  ;;  %v5705_v36 = vld [vmem:[#allocation48_spill] sm:$0xff] }
 0x3c6   :  { %v1526_v11 = vsub.f32 1.0, %v1525_v47  ;;  %vm1551_vm0 = vmor %vm1549_vm15, %vm1550_vm14  ;;  %v5708_v47 = vld [vmem:[#allocation34_spill] sm:$0xff] }
 0x3c7   :  { %v1546_v10 = vsub.f32 1.0, %v1545_v55  ;;  %v5709_v55 = vld [vmem:[#allocation49_spill] sm:$0xff] }
 0x3c8   :  { %v1527_v63 = vmul.f32 %v2725_v7, %v1526_v11  ;;  %v5710_v11 = vld [vmem:[#allocation52_spill] sm:$0xff] }
 0x3c9   :  { %v1547_v15 = vmul.f32 %v2727_v37, %v1546_v10  ;;  %v5712_v10 = vld [vmem:[#allocation50_spill] sm:$0xff] }
 0x3ca   :  { %v1528_v32 = vadd.f32 %v2725_v7, %v1527_v63  ;;  %v5713_v63 = vld [vmem:[#allocation59_spill] sm:$0xff] }
 0x3cb   :  { %v1548_v3 = vadd.f32 %v2727_v37, %v1547_v15  ;;  %v5716_v15 = vld [vmem:[#allocation80_spill] sm:$0xff] }
 0x3cc   :  { %v1532_v61 = vsel %vm1531_vm12, %v2725_v7, %v1528_v32  ;;  %v5706_v7 = vld [vmem:[#allocation43_spill] sm:$0xff] }
 0x3cd   :  { %v1537_v44 = vsel %vm1534_vm13, %v1536_v41, %v1532_v61  ;;  %v1552_v50 = vsel %vm1551_vm0, %v2727_v37, %v1548_v3  ;;  %v5707_v37 = vld [vmem:[#allocation44_spill] sm:$0xff]  ;;  %v5717_v41 = vld [vmem:[#allocation81_spill] sm:$0xff] }
 0x3ce   :  { %v1559_v45 = vmul.f32 %v1537_v44, %v1449_v14  ;;  %v1557_v57 = vsel %vm1554_vm1, %v1556_v46, %v1552_v50  ;;  %v5718_v14 = vld [vmem:[#allocation82_spill] sm:$0xff]  ;;  %v5724_v50 = vld [vmem:[#allocation72_spill] sm:$0xff] }
 0x3cf   :  { %v1562_v2 = vsub.f32 1.0, %v1557_v57  ;;  %v1564_v29 = vmul.f32 %v1557_v57, %v4394_v6  ;;  %v5689_v6 = vld [vmem:[#allocation15_spill] sm:$0xff]  ;;  %v5719_v44 = vld [vmem:[#allocation78_spill] sm:$0xff] }
 0x3d0   :  { %v1560_v18 = vadd.f32 %v1559_v45, %v5688_v42  ;;  %v5720_v45 = vld [vmem:[#allocation83_spill] sm:$0xff]  ;;  %v5722_v42 = vld [vmem:[#allocation85_spill] sm:$0xff] }
 0x3d1   :  { %v5725_v57 = vld [vmem:[#allocation87_spill] sm:$0xff] }
 0x3d2   :  { %2728 = vtanh.f32 %v1560_v18  ;;  %v5723_v18 = vld [vmem:[#allocation86_spill] sm:$0xff] }
 0x3d8   :  { %v2729_v13 = vpop.eup %2728 }
 0x3d9   :  { %v1563_v35 = vmul.f32 %v2729_v13, %v1562_v2  ;;  %v5726_v2 = vld [vmem:[#allocation88_spill] sm:$0xff] }
 0x3db   :  { %v4528_v23 = vadd.f32 %v1564_v29, %v1563_v35  ;;  %v5727_v35 = vld [vmem:[#allocation89_spill] sm:$0xff]  ;;  %v5728_v29 = vld [vmem:[#allocation90_spill] sm:$0xff] }
 0x3dd   :  { %2523 = vst [vmem:[%s5154_s6 + $0x30] sm:$0xff] %v4528_v23  ;;  %1629 = vmatmul.f32.vlgmr.msra.gmra.mxu0 %v4528_v23  ;;  %1651 = vmatmul.f32.vlgmr.msra.gmra.mxu1 %v4528_v23 }
 0x3de   :  { %1673 = vmatmul.f32.vlgmr.msrb.gmra.mxu2 %v4528_v23  ;;  %1695 = vmatmul.f32.vlgmr.msrb.gmra.mxu3 %v4528_v23 }
 0x3df   :  { %1883 = vmatpush.msra.mxu0 %v4118_v1  ;;  %1905 = vmatpush.msra.mxu1 %v4121_v22  ;;  %v5690_v1 = vld [vmem:[#allocation26_spill] sm:$0xff]  ;;  %v5691_v22 = vld [vmem:[#allocation27_spill] sm:$0xff] }
 0x3e0   :  { %1927 = vmatpush.msrb.mxu2 %v4124_v8  ;;  %1949 = vmatpush.msrb.mxu3 %v4127_v25  ;;  %v5692_v8 = vld [vmem:[#allocation29_spill] sm:$0xff]  ;;  %v5693_v25 = vld [vmem:[#allocation30_spill] sm:$0xff] }
 0x3e1   :  { %1884 = vmatpush.msra.mxu0 %v4130_v26  ;;  %1906 = vmatpush.msra.mxu1 %v4133_v39  ;;  %v5694_v26 = vld [vmem:[#allocation32_spill] sm:$0xff]  ;;  %v5695_v39 = vld [vmem:[#allocation33_spill] sm:$0xff] }
 0x3e2   :  { %1928 = vmatpush.msrb.mxu2 %v4136_v31  ;;  %1950 = vmatpush.msrb.mxu3 %v4139_v12  ;;  %v5696_v31 = vld [vmem:[#allocation35_spill] sm:$0xff]  ;;  %v5697_v12 = vld [vmem:[#allocation36_spill] sm:$0xff] }
 0x3e3   :  { %1885 = vmatpush.msra.mxu0 %v4142_v58  ;;  %1907 = vmatpush.msra.mxu1 %v5621_v20  ;;  %v5698_v58 = vld [vmem:[#allocation38_spill] sm:$0xff]  ;;  %v5699_v20 = vld [vmem:[#allocation39_spill] sm:$0xff] }
 0x3e4   :  { %1929 = vmatpush.msrb.mxu2 %v5623_v53  ;;  %1951 = vmatpush.msrb.mxu3 %v5690_v1  ;;  %v5700_v53 = vld [vmem:[#allocation40_spill] sm:$0xff]  ;;  %v5735_v1 = vld [vmem:[#allocation97_spill] sm:$0xff] }
 0x3e5   :  { %1886 = vmatpush.msra.mxu0 %v5691_v22  ;;  %1908 = vmatpush.msra.mxu1 %v5692_v8  ;;  %v5736_v22 = vld [vmem:[#allocation98_spill] sm:$0xff]  ;;  %v5737_v8 = vld [vmem:[#allocation77_spill] sm:$0xff] }
 0x3e6   :  { %1930 = vmatpush.msrb.mxu2 %v5693_v25  ;;  %1952 = vmatpush.msrb.mxu3 %v5694_v26  ;;  %v5738_v25 = vld [vmem:[#allocation99_spill] sm:$0xff] }
 0x3e7   :  { %1887 = vmatpush.msra.mxu0 %v5695_v39  ;;  %1909 = vmatpush.msra.mxu1 %v5696_v31  ;;  %v5739_v39 = vld [vmem:[#allocation100_spill] sm:$0xff]  ;;  %v5740_v31 = vld [vmem:[#allocation101_spill] sm:$0xff] }
 0x3e8   :  { %1931 = vmatpush.msrb.mxu2 %v5697_v12  ;;  %1953 = vmatpush.msrb.mxu3 %v5698_v58  ;;  %v5741_v58 = vld [vmem:[#allocation102_spill] sm:$0xff] }
 0x3e9   :  { %1888 = vmatpush.msra.mxu0 %v5699_v20  ;;  %1910 = vmatpush.msra.mxu1 %v5700_v53  ;;  %v5742_v20 = vld [vmem:[#allocation103_spill] sm:$0xff] }
 0x3ea   :  { %1932 = vmatpush.msrb.mxu2 %v5701_v21  ;;  %1954 = vmatpush.msrb.mxu3 %v5702_v52 }
 0x3eb   :  { %1889 = vmatpush.msra.mxu0 %v5703_v19  ;;  %1911 = vmatpush.msra.mxu1 %v5704_v51 }
 0x3ec   :  { %1933 = vmatpush.msrb.mxu2 %v5705_v36  ;;  %1955 = vmatpush.msrb.mxu3 %v5706_v7 }
 0x3ed   :  { %1890 = vmatpush.msra.mxu0 %v5707_v37  ;;  %1912 = vmatpush.msra.mxu1 %v5708_v47 }
 0x3ee   :  { %v1451_v54 = vpop.f32.mrf.mxu0  ;;  %v1472_v16 = vpop.f32.mrf.mxu1  ;;  %1934 = vmatpush.msrb.mxu2 %v5709_v55  ;;  %1956 = vmatpush.msrb.mxu3 %v5710_v11  ;;  %v5745_v11 = vld [vmem:[#allocation73_spill] sm:$0xff] }
 0x3ef   :  { %v1473_v56 = vadd.f32 %v1472_v16, %v3889_v34  ;;  %1891 = vmatpush.msra.mxu0 %v5711_v48  ;;  %1913 = vmatpush.msra.mxu1 %v5712_v10  ;;  %v5729_v16 = vld [vmem:[#allocation91_spill] sm:$0xff] }
 0x3f0   :  { %1935 = vmatpush.msrb.mxu2 %v5713_v63  ;;  %1957 = vmatpush.msrb.mxu3 %v5714_v30 }
 0x3f1   :  { %v1566_v17 = vadd.f32 %v1473_v56, %v5689_v6  ;;  %1892 = vmatpush.msra.mxu0 %v5715_v49  ;;  %1914 = vmatpush.msra.mxu1 %v5716_v15  ;;  %v5730_v56 = vld [vmem:[#allocation92_spill] sm:$0xff] }
 0x3f2   :  { %1936 = vmatpush.msrb.mxu2 %v5717_v41  ;;  %1958 = vmatpush.msrb.mxu3 %v5718_v14 }
 0x3f3   :  { %v2630_v62 = vmul.f32 -1.442695, %v1566_v17  ;;  %v1407_v0 = vpop.f32.mrf.mxu2  ;;  %v1429_v9 = vpop.f32.mrf.mxu3  ;;  %1893 = vmatpush.msra.mxu0 %v5720_v45  ;;  %1915 = vmatpush.msra.mxu1 %v5721_v60  ;;  %v5731_v17 = vld [vmem:[#allocation93_spill] sm:$0xff] }
 0x3f4   :  { %1937 = vmatpush.msrb.mxu2 %v5722_v42  ;;  %1959 = vmatpush.msrb.mxu3 %v5723_v18  ;;  %v5733_v0 = vld [vmem:[#allocation95_spill] sm:$0xff]  ;;  %v5734_v9 = vld [vmem:[#allocation96_spill] sm:$0xff]  ;;  %v4634_v42 = vld [vmem:[#allocation2 + $0x2a0] sm:$0xff] }
 0x3f5   :  { %2730 = vpow2.f32 %v2630_v62  ;;  %1894 = vmatpush.msra.mxu0 %v5725_v57  ;;  %1916 = vmatpush.msra.mxu1 %v5726_v2  ;;  %v5732_v62 = vld [vmem:[#allocation94_spill] sm:$0xff]  ;;  %v4646_v57 = vld [vmem:[#allocation2 + $0x240] sm:$0xff] }
 0x3f6   :  { %1938 = vmatpush.msrb.mxu2 %v5727_v35  ;;  %1960 = vmatpush.msrb.mxu3 %v5728_v29  ;;  %v4637_v18 = vld [vmem:[#allocation2 + $0x2a8] sm:$0xff]  ;;  %v4657_v35 = vld [vmem:[#allocation2 + $0x218] sm:$0xff]  ;;  %v4660_v29 = vld [vmem:[#allocation2 + $0x1e0] sm:$0xff] }
 0x3f7   :  { %1895 = vmatpush.msra.mxu0 %v5729_v16  ;;  %1917 = vmatpush.msra.mxu1 %v5730_v56  ;;  %v4649_v2 = vld [vmem:[#allocation2 + $0x248] sm:$0xff]  ;;  %v4666_v16 = vld [vmem:[#allocation2 + $0x1b0] sm:$0xff]  ;;  %v4669_v56 = vld [vmem:[#allocation2 + $0x1b8] sm:$0xff] }
 0x3f8   :  { %1939 = vmatpush.msrb.mxu2 %v5731_v17  ;;  %1961 = vmatpush.msrb.mxu3 %v5732_v62  ;;  %v4675_v17 = vld [vmem:[#allocation2 + $0x188] sm:$0xff]  ;;  %v4678_v62 = vld [vmem:[#allocation2 + $0x150] sm:$0xff] }
 0x3f9   :  { %1896 = vmatpush.msra.mxu0 %v5733_v0  ;;  %1918 = vmatpush.msra.mxu1 %v5734_v9  ;;  %v4681_v0 = vld [vmem:[#allocation2 + $0x158] sm:$0xff]  ;;  %v4684_v9 = vld [vmem:[#allocation2 + $0x120] sm:$0xff] }
 0x3fa   :  { %1940 = vmatpush.msrb.mxu2 %v5735_v1  ;;  %1962 = vmatpush.msrb.mxu3 %v5736_v22  ;;  %v4687_v1 = vld [vmem:[#allocation2 + $0x128] sm:$0xff]  ;;  %v4690_v22 = vld [vmem:[#allocation2 + $0xf0] sm:$0xff] }
 0x3fb   :  { %v2731_v5 = vpop.eup %2730  ;;  %v1492_v59 = vpop.f32.mrf.mxu2  ;;  %1897 = vmatpush.msra.mxu0 %v5737_v8  ;;  %1919 = vmatpush.msra.mxu1 %v5738_v25  ;;  %v4693_v8 = vld [vmem:[#allocation2 + $0xf8] sm:$0xff]  ;;  %v4696_v25 = vld [vmem:[#allocation2 + $0xc0] sm:$0xff] }
 0x3fc   :  { %v1514_v40 = vpop.f32.mrf.mxu3  ;;  %v4564_v4 = vadd.f32 1.0, %v2731_v5  ;;  %1941 = vmatpush.msrb.mxu2 %v5739_v39  ;;  %1963 = vmatpush.msrb.mxu3 %v5740_v31  ;;  %v5743_v5 = vld [vmem:[#allocation104_spill] sm:$0xff]  ;;  %v5744_v59 = vld [vmem:[#allocation105_spill] sm:$0xff]  ;;  %v4702_v39 = vld [vmem:[#allocation2 + $0x90] sm:$0xff] }
 0x3fd   :  { %1898 = vmatpush.msra.mxu0 %v5741_v58  ;;  %1920 = vmatpush.msra.mxu1 %v5742_v20  ;;  %v4705_v31 = vld [vmem:[#allocation2 + $0x98] sm:$0xff]  ;;  %v4711_v58 = vld [vmem:[#allocation2 + $0x68] sm:$0xff]  ;;  %v4714_v20 = vld [vmem:[#allocation2 + $0x30] sm:$0xff] }
 0x3fe   :  { %2732 = vrcp.f32 %v4564_v4  ;;  %v1582_v12 = vand.u32 2147483648, %v4564_v4  ;;  %vm1576_vm3 = vweird.f32 %v4564_v4  ;;  %v1580_v53 = vand.u32 2147483647, %v4564_v4  ;;  %1942 = vmatpush.msrb.mxu2 %v5743_v5  ;;  %1964 = vmatpush.msrb.mxu3 %v5744_v59  ;;  %v4720_v5 = vld [vmem:[#allocation2] sm:$0xff]  ;;  %v4723_v59 = vld [vmem:[#allocation2 + $0x8] sm:$0xff] }
 0x400   :  { %v1583_v51 = vor.u32 1.1754944e-38, %v1582_v12  ;;  %vm1581_vm5 = vcmp.eq.f32.partialorder %v1580_v53, 8.507059e+37  ;;  %v4708_v12 = vld [vmem:[#allocation2 + $0x60] sm:$0xff]  ;;  %v4717_v53 = vld [vmem:[#allocation2 + $0x38] sm:$0xff] }
 0x403   :  { %v1494_v32 = vpop.f32.mrf.mxu2 }
 0x404   :  { %v2733_v61 = vpop.eup %2732  ;;  %v1495_v3 = vadd.f32 %v1494_v32, %v5719_v44  ;;  %v1516_v19 = vpop.f32.mrf.mxu3 }
 0x405   :  { %v1572_v24 = vmul.f32 %v2733_v61, %v4564_v4  ;;  %vm1577_vm2 = vweird.f32 %v2733_v61  ;;  %v1517_v7 = vadd.f32 %v1516_v19, %v5677_v27 }
 0x406   :  { %v1586_v46 = vadd.f32 %v1495_v3, %v5724_v50  ;;  %vm1578_vm4 = vmor %vm1576_vm3, %vm1577_vm2  ;;  %v4640_v50 = vld [vmem:[#allocation2 + $0x270] sm:$0xff] }
 0x407   :  { %v1573_v13 = vsub.f32 1.0, %v1572_v24  ;;  %v4631_v24 = vld [vmem:[#allocation2 + $0x2d8] sm:$0xff] }
 0x408   :  { %v2631_v54 = vmul.f32 -1.442695, %v1586_v46  ;;  %v4643_v46 = vld [vmem:[#allocation2 + $0x278] sm:$0xff] }
 0x409   :  { %v1574_v6 = vmul.f32 %v2733_v61, %v1573_v13  ;;  %v4654_v13 = vld [vmem:[#allocation2 + $0x210] sm:$0xff] }
 0x40a   :  { %2734 = vpow2.f32 %v2631_v54  ;;  %v4663_v54 = vld [vmem:[#allocation2 + $0x1e8] sm:$0xff] }
 0x40b   :  { %v1575_v26 = vadd.f32 %v2733_v61, %v1574_v6  ;;  %v4672_v6 = vld [vmem:[#allocation2 + $0x180] sm:$0xff] }
 0x40d   :  { %v1579_v52 = vsel %vm1578_vm4, %v2733_v61, %v1575_v26  ;;  %v4699_v26 = vld [vmem:[#allocation2 + $0xc8] sm:$0xff] }
 0x40e   :  { %v1584_v36 = vsel %vm1581_vm5, %v1583_v51, %v1579_v52  ;;  %v5746_v51 = vld [vmem:[#allocation17_spill] sm:$0xff] }
 0x40f   :  { %v1606_v37 = vmul.f32 %v1584_v36, %v1517_v7  ;;  %v5747_v7 = vld [vmem:[#allocation37_spill] sm:$0xff] }
 0x410   :  { %v2735_v40 = vpop.eup %2734 }
 0x411   :  { %v1590_v21 = vadd.f32 1.0, %v2735_v40  ;;  %v1607_v4 = vadd.f32 %v1606_v37, %v5745_v11 }
 0x413   :  { %2736 = vrcp.f32 %v1590_v21  ;;  %v1602_v10 = vand.u32 2147483648, %v1590_v21  ;;  %v1600_v30 = vand.u32 2147483647, %v1590_v21  ;;  %vm1596_vm7 = vweird.f32 %v1590_v21 }
 0x414   :  { %2738 = vtanh.f32 %v1607_v4 }
 0x415   :  { %v1603_v15 = vor.u32 1.1754944e-38, %v1602_v10  ;;  %vm1601_vm9 = vcmp.eq.f32.partialorder %v1600_v30, 8.507059e+37 }
 0x419   :  { %v2737_v47 = vpop.eup %2736 }
 0x41a   :  { %v1592_v55 = vmul.f32 %v2737_v47, %v1590_v21  ;;  %vm1597_vm6 = vweird.f32 %v2737_v47  ;;  %v2739_v61 = vpop.eup %2738 }
 0x41b   :  { %vm1598_vm8 = vmor %vm1596_vm7, %vm1597_vm6 }
 0x41c   :  { %v1593_v48 = vsub.f32 1.0, %v1592_v55 }
 0x41e   :  { %v1594_v63 = vmul.f32 %v2737_v47, %v1593_v48 }
 0x420   :  { %v1595_v49 = vadd.f32 %v2737_v47, %v1594_v63 }
 0x422   :  { %v1599_v32 = vsel %vm1598_vm8, %v2737_v47, %v1595_v49 }
 0x423   :  { %v1604_v41 = vsel %vm1601_vm9, %v1603_v15, %v1599_v32 }
 0x424   :  { %v1609_v14 = vsub.f32 1.0, %v1604_v41  ;;  %v1611_v45 = vmul.f32 %v1604_v41, %v4475_v38  ;;  %v4628_v38 = vld [vmem:[#allocation2 + $0x2d0] sm:$0xff] }
 0x426   :  { %v1610_v3 = vmul.f32 %v2739_v61, %v1609_v14 }
 0x428   :  { %v4616_v60 = vadd.f32 %v1611_v45, %v1610_v3 }
 0x42a   :  { %2526 = vst [vmem:[%s5154_s6 + $0x48] sm:$0xff] %v4616_v60  ;;  %1632 = vmatmul.f32.gmra.mxu0 %v4616_v60  ;;  %1654 = vmatmul.f32.gmra.mxu1 %v4616_v60 }
 0x42b   :  { %1676 = vmatmul.f32.gmra.mxu2 %v4616_v60  ;;  %1697 = vmatmul.f32.gmra.mxu3 %v4616_v60 }
 0x432   :  { %1717 = vmatmul.f32.vlgmr.msrb.gmra.mxu0 %v4528_v23  ;;  %1739 = vmatmul.f32.vlgmr.msrb.gmra.mxu1 %v4528_v23 }
 0x433   :  { %2065 = vmatpush.msrb.mxu0 %v4628_v38  ;;  %2087 = vmatpush.msrb.mxu1 %v4631_v24 }
 0x435   :  { %2066 = vmatpush.msrb.mxu0 %v4634_v42  ;;  %2088 = vmatpush.msrb.mxu1 %v4637_v18 }
 0x437   :  { %2067 = vmatpush.msrb.mxu0 %v4640_v50  ;;  %2089 = vmatpush.msrb.mxu1 %v4643_v46 }
 0x439   :  { %2068 = vmatpush.msrb.mxu0 %v4646_v57  ;;  %2090 = vmatpush.msrb.mxu1 %v4649_v2 }
 0x43a   :  { %1719 = vmatmul.f32.gmra.mxu0 %v4616_v60  ;;  %1741 = vmatmul.f32.gmra.mxu1 %v4616_v60 }
 0x43b   :  { %2069 = vmatpush.msrb.mxu0 %v4654_v13  ;;  %2091 = vmatpush.msrb.mxu1 %v4657_v35 }
 0x43d   :  { %2070 = vmatpush.msrb.mxu0 %v4660_v29  ;;  %2092 = vmatpush.msrb.mxu1 %v4663_v54 }
 0x43f   :  { %2071 = vmatpush.msrb.mxu0 %v4666_v16  ;;  %2093 = vmatpush.msrb.mxu1 %v4669_v56 }
 0x441   :  { %2072 = vmatpush.msrb.mxu0 %v4672_v6  ;;  %2094 = vmatpush.msrb.mxu1 %v4675_v17 }
 0x443   :  { %2073 = vmatpush.msrb.mxu0 %v4678_v62  ;;  %2095 = vmatpush.msrb.mxu1 %v4681_v0 }
 0x445   :  { %2074 = vmatpush.msrb.mxu0 %v4684_v9  ;;  %2096 = vmatpush.msrb.mxu1 %v4687_v1 }
 0x447   :  { %2075 = vmatpush.msrb.mxu0 %v4690_v22  ;;  %2097 = vmatpush.msrb.mxu1 %v4693_v8 }
 0x449   :  { %2076 = vmatpush.msrb.mxu0 %v4696_v25  ;;  %2098 = vmatpush.msrb.mxu1 %v4699_v26 }
 0x44b   :  { %2077 = vmatpush.msrb.mxu0 %v4702_v39  ;;  %2099 = vmatpush.msrb.mxu1 %v4705_v31 }
 0x44d   :  { %2078 = vmatpush.msrb.mxu0 %v4708_v12  ;;  %2100 = vmatpush.msrb.mxu1 %v4711_v58 }
 0x44f   :  { %2079 = vmatpush.msrb.mxu0 %v4714_v20  ;;  %2101 = vmatpush.msrb.mxu1 %v4717_v53 }
 0x451   :  { %2080 = vmatpush.msrb.mxu0 %v4720_v5  ;;  %2102 = vmatpush.msrb.mxu1 %v4723_v59 }
 0x45a   :  { %v1630_v40 = vpop.f32.mrf.mxu0  ;;  %v1652_v21 = vpop.f32.mrf.mxu1 }
 0x45b   :  { %v1631_v52 = vadd.f32 %v1630_v40, %v5684_v28  ;;  %v1653_v19 = vadd.f32 %v1652_v21, %v5685_v43 }
 0x45d   :  { %v1745_v36 = vadd.f32 %v1631_v52, %v5746_v51  ;;  %v1765_v37 = vadd.f32 %v1653_v19, %v5747_v7 }
 0x45f   :  { %v2632_v47 = vmul.f32 -1.442695, %v1745_v36  ;;  %v2633_v55 = vmul.f32 -1.442695, %v1765_v37 }
 0x461   :  { %2740 = vpow2.f32 %v2632_v47  ;;  %v1696_v11 = vpop.f32.mrf.mxu3  ;;  %v1674_v21 = vpop.f32.mrf.mxu2 }
 0x462   :  { %2742 = vpow2.f32 %v2633_v55  ;;  %v1675_v51 = vadd.f32 %v1674_v21, %v3884_v33  ;;  %v4758_v21 = vld [vmem:[#allocation2 + $0x2b8] sm:$0xff] }
 0x463   :  { %5749 = vst [vmem:[#allocation56_spill] sm:$0xff] %v4758_v21 }
 0x467   :  { %v2741_v4 = vpop.eup %2740 }
 0x468   :  { %v2743_v48 = vpop.eup %2742  ;;  %v1749_v10 = vadd.f32 1.0, %v2741_v4  ;;  %v5748_v4 = vld [vmem:[#allocation13_spill] sm:$0xff] }
 0x469   :  { %v1769_v63 = vadd.f32 1.0, %v2743_v48 }
 0x46a   :  { %2744 = vrcp.f32 %v1749_v10  ;;  %v1761_v61 = vand.u32 2147483648, %v1749_v10  ;;  %v1759_v45 = vand.u32 2147483647, %v1749_v10  ;;  %vm1755_vm11 = vweird.f32 %v1749_v10 }
 0x46b   :  { %2746 = vrcp.f32 %v1769_v63  ;;  %v1781_v47 = vand.u32 2147483648, %v1769_v63  ;;  %vm1775_vm15 = vweird.f32 %v1769_v63  ;;  %v1779_v11 = vand.u32 2147483647, %v1769_v63 }
 0x46c   :  { %v1762_v19 = vor.u32 1.1754944e-38, %v1761_v61  ;;  %vm1760_vm13 = vcmp.eq.f32.partialorder %v1759_v45, 8.507059e+37  ;;  %v4752_v45 = vld [vmem:[#allocation2 + $0x2f8] sm:$0xff] }
 0x46d   :  { %vm1780_vm1 = vcmp.eq.f32.partialorder %v1779_v11, 8.507059e+37  ;;  %v4785_v11 = vld [vmem:[#allocation2 + $0x260] sm:$0xff] }
 0x46e   :  { %5758 = vst [vmem:[#allocation12_spill] sm:$0xff] %v4785_v11 }
 0x470   :  { %v2745_v30 = vpop.eup %2744 }
 0x471   :  { %v2747_v49 = vpop.eup %2746  ;;  %v1751_v15 = vmul.f32 %v2745_v30, %v1749_v10  ;;  %vm1756_vm10 = vweird.f32 %v2745_v30 }
 0x472   :  { %v1771_v32 = vmul.f32 %v2747_v49, %v1769_v63  ;;  %vm1757_vm12 = vmor %vm1755_vm11, %vm1756_vm10  ;;  %vm1776_vm14 = vweird.f32 %v2747_v49  ;;  %v4743_v63 = vld [vmem:[#allocation2 + $0x2e0] sm:$0xff] }
 0x473   :  { %v1752_v41 = vsub.f32 1.0, %v1751_v15  ;;  %vm1777_vm0 = vmor %vm1775_vm15, %vm1776_vm14 }
 0x474   :  { %v1772_v14 = vsub.f32 1.0, %v1771_v32  ;;  %v1782_v32 = vor.u32 1.1754944e-38, %v1781_v47  ;;  %v4779_v47 = vld [vmem:[#allocation2 + $0x250] sm:$0xff] }
 0x475   :  { %v1753_v3 = vmul.f32 %v2745_v30, %v1752_v41  ;;  %5756 = vst [vmem:[#allocation10_spill] sm:$0xff] %v4779_v47 }
 0x476   :  { %v1773_v40 = vmul.f32 %v2747_v49, %v1772_v14 }
 0x477   :  { %v1754_v52 = vadd.f32 %v2745_v30, %v1753_v3 }
 0x478   :  { %v1774_v37 = vadd.f32 %v2747_v49, %v1773_v40  ;;  %v4755_v40 = vld [vmem:[#allocation2 + $0x2b0] sm:$0xff] }
 0x479   :  { %v1758_v36 = vsel %vm1757_vm12, %v2745_v30, %v1754_v52  ;;  %v4761_v52 = vld [vmem:[#allocation2 + $0x2c0] sm:$0xff] }
 0x47a   :  { %v1763_v7 = vsel %vm1760_vm13, %v1762_v19, %v1758_v36  ;;  %v1778_v15 = vsel %vm1777_vm0, %v2747_v49, %v1774_v37  ;;  %v4749_v49 = vld [vmem:[#allocation2 + $0x2f0] sm:$0xff]  ;;  %5750 = vst [vmem:[#allocation57_spill] sm:$0xff] %v4761_v52  ;;  %v4764_v19 = vld [vmem:[#allocation2 + $0x2c8] sm:$0xff]  ;;  %v4776_v37 = vld [vmem:[#allocation2 + $0x298] sm:$0xff] }
 0x47b   :  { %v1785_v55 = vmul.f32 %v1763_v7, %v1675_v51  ;;  %v1783_v10 = vsel %vm1780_vm1, %v1782_v32, %v1778_v15  ;;  %5751 = vst [vmem:[#allocation54_spill] sm:$0xff] %v4764_v19  ;;  %v4767_v51 = vld [vmem:[#allocation2 + $0x280] sm:$0xff]  ;;  %v4770_v36 = vld [vmem:[#allocation2 + $0x288] sm:$0xff]  ;;  %v4773_v7 = vld [vmem:[#allocation2 + $0x290] sm:$0xff] }
 0x47c   :  { %v1788_v41 = vsub.f32 1.0, %v1783_v10  ;;  %v1790_v30 = vmul.f32 %v1783_v10, %v4528_v23  ;;  %v4746_v23 = vld [vmem:[#allocation2 + $0x2e8] sm:$0xff]  ;;  %5752 = vst [vmem:[#allocation21_spill] sm:$0xff] %v4767_v51  ;;  %v4797_v32 = vld [vmem:[#allocation2 + $0x230] sm:$0xff]  ;;  %v4800_v10 = vld [vmem:[#allocation2 + $0x238] sm:$0xff] }
 0x47d   :  { %v1786_v48 = vadd.f32 %v1785_v55, %v5748_v4  ;;  %5753 = vst [vmem:[#allocation22_spill] sm:$0xff] %v4770_v36  ;;  %v4782_v55 = vld [vmem:[#allocation2 + $0x258] sm:$0xff]  ;;  %v4788_v4 = vld [vmem:[#allocation2 + $0x268] sm:$0xff] }
 0x47e   :  { %5754 = vst [vmem:[#allocation23_spill] sm:$0xff] %v4773_v7  ;;  %v4794_v15 = vld [vmem:[#allocation2 + $0x228] sm:$0xff] }
 0x47f   :  { %2748 = vtanh.f32 %v1786_v48  ;;  %5755 = vst [vmem:[#allocation74_spill] sm:$0xff] %v4776_v37  ;;  %v4791_v48 = vld [vmem:[#allocation2 + $0x220] sm:$0xff] }
 0x480   :  { %5757 = vst [vmem:[#allocation75_spill] sm:$0xff] %v4782_v55 }
 0x481   :  { %5759 = vst [vmem:[#allocation14_spill] sm:$0xff] %v4788_v4 }
 0x482   :  { %5760 = vst [vmem:[#allocation16_spill] sm:$0xff] %v4791_v48 }
 0x483   :  { %5761 = vst [vmem:[#allocation18_spill] sm:$0xff] %v4794_v15 }
 0x484   :  { %5762 = vst [vmem:[#allocation20_spill] sm:$0xff] %v4797_v32 }
 0x485   :  { %v2749_v14 = vpop.eup %2748  ;;  %5763 = vst [vmem:[#allocation66_spill] sm:$0xff] %v4800_v10 }
 0x486   :  { %v1789_v61 = vmul.f32 %v2749_v14, %v1788_v41 }
 0x488   :  { %v4733_v3 = vadd.f32 %v1790_v30, %v1789_v61  ;;  %v4803_v61 = vld [vmem:[#allocation2 + $0x1f0] sm:$0xff]  ;;  %v4806_v30 = vld [vmem:[#allocation2 + $0x1f8] sm:$0xff] }
 0x489   :  { %5764 = vst [vmem:[#allocation67_spill] sm:$0xff] %v4803_v61 }
 0x48a   :  { %2525 = vst [vmem:[%s5154_s6 + $0x40] sm:$0xff] %v4733_v3  ;;  %1855 = vmatmul.f32.vlgmr.msra.gmra.mxu2 %v4733_v3  ;;  %1877 = vmatmul.f32.vlgmr.msra.gmra.mxu3 %v4733_v3 }
 0x48b   :  { %1899 = vmatmul.f32.vlgmr.msra.gmra.mxu0 %v4733_v3  ;;  %1921 = vmatmul.f32.vlgmr.msra.gmra.mxu1 %v4733_v3  ;;  %5765 = vst [vmem:[#allocation9_spill] sm:$0xff] %v4806_v30 }
 0x48c   :  { %2109 = vmatpush.msra.mxu2 %v4743_v63  ;;  %2131 = vmatpush.msra.mxu3 %v4746_v23 }
 0x48d   :  { %2153 = vmatpush.msra.mxu0 %v4749_v49  ;;  %2175 = vmatpush.msra.mxu1 %v4752_v45 }
 0x48e   :  { %2110 = vmatpush.msra.mxu2 %v4755_v40  ;;  %2132 = vmatpush.msra.mxu3 %v4758_v21 }
 0x48f   :  { %2154 = vmatpush.msra.mxu0 %v4761_v52  ;;  %2176 = vmatpush.msra.mxu1 %v4764_v19 }
 0x490   :  { %2111 = vmatpush.msra.mxu2 %v4767_v51  ;;  %2133 = vmatpush.msra.mxu3 %v4770_v36 }
 0x491   :  { %2155 = vmatpush.msra.mxu0 %v4773_v7  ;;  %2177 = vmatpush.msra.mxu1 %v4776_v37 }
 0x492   :  { %2112 = vmatpush.msra.mxu2 %v4779_v47  ;;  %2134 = vmatpush.msra.mxu3 %v4782_v55 }
 0x493   :  { %2156 = vmatpush.msra.mxu0 %v4785_v11  ;;  %2178 = vmatpush.msra.mxu1 %v4788_v4  ;;  %v4852_v11 = vld [vmem:[#allocation2 + $0x130] sm:$0xff] }
 0x494   :  { %2113 = vmatpush.msra.mxu2 %v4791_v48  ;;  %2135 = vmatpush.msra.mxu3 %v4794_v15  ;;  %v4809_v48 = vld [vmem:[#allocation2 + $0x200] sm:$0xff]  ;;  %v4812_v15 = vld [vmem:[#allocation2 + $0x208] sm:$0xff]  ;;  %5780 = vst [vmem:[#allocation47_spill] sm:$0xff] %v4852_v11 }
 0x495   :  { %2157 = vmatpush.msra.mxu0 %v4797_v32  ;;  %2179 = vmatpush.msra.mxu1 %v4800_v10  ;;  %5766 = vst [vmem:[#allocation11_spill] sm:$0xff] %v4809_v48  ;;  %v4815_v32 = vld [vmem:[#allocation2 + $0x1c0] sm:$0xff]  ;;  %v4845_v10 = vld [vmem:[#allocation2 + $0x170] sm:$0xff] }
 0x496   :  { %2114 = vmatpush.msra.mxu2 %v4803_v61  ;;  %2136 = vmatpush.msra.mxu3 %v4806_v30  ;;  %5767 = vst [vmem:[#allocation8_spill] sm:$0xff] %v4812_v15  ;;  %v4824_v30 = vld [vmem:[#allocation2 + $0x1d8] sm:$0xff] }
 0x497   :  { %2158 = vmatpush.msra.mxu0 %v4809_v48  ;;  %2180 = vmatpush.msra.mxu1 %v4812_v15  ;;  %5768 = vst [vmem:[#allocation15_spill] sm:$0xff] %v4815_v32  ;;  %v4827_v48 = vld [vmem:[#allocation2 + $0x190] sm:$0xff]  ;;  %v4830_v15 = vld [vmem:[#allocation2 + $0x198] sm:$0xff] }
 0x498   :  { %2115 = vmatpush.msra.mxu2 %v4815_v32  ;;  %5771 = vst [vmem:[#allocation29_spill] sm:$0xff] %v4824_v30  ;;  %v4833_v32 = vld [vmem:[#allocation2 + $0x1a0] sm:$0xff] }
 0x499   :  { %2181 = vmatpush.msra.mxu1 %v4824_v30  ;;  %5772 = vst [vmem:[#allocation30_spill] sm:$0xff] %v4827_v48  ;;  %v4842_v30 = vld [vmem:[#allocation2 + $0x168] sm:$0xff] }
 0x49a   :  { %2116 = vmatpush.msra.mxu2 %v4827_v48  ;;  %5773 = vst [vmem:[#allocation32_spill] sm:$0xff] %v4830_v15 }
 0x49b   :  { %5774 = vst [vmem:[#allocation33_spill] sm:$0xff] %v4833_v32 }
 0x49c   :  { %5777 = vst [vmem:[#allocation38_spill] sm:$0xff] %v4842_v30 }
 0x49d   :  { %5778 = vst [vmem:[#allocation39_spill] sm:$0xff] %v4845_v10 }
 0x4a7   :  { %v1633_v41 = vpop.f32.mrf.mxu0  ;;  %v1655_v14 = vpop.f32.mrf.mxu1 }
 0x4a8   :  { %v4818_v41 = vld [vmem:[#allocation2 + $0x1c8] sm:$0xff]  ;;  %v4821_v14 = vld [vmem:[#allocation2 + $0x1d0] sm:$0xff] }
 0x4a9   :  { %5769 = vst [vmem:[#allocation26_spill] sm:$0xff] %v4818_v41  ;;  %2137 = vmatpush.msra.mxu3 %v4818_v41  ;;  %2159 = vmatpush.msra.mxu0 %v4821_v14  ;;  %v4836_v41 = vld [vmem:[#allocation2 + $0x1a8] sm:$0xff] }
 0x4aa   :  { %5770 = vst [vmem:[#allocation27_spill] sm:$0xff] %v4821_v14  ;;  %2182 = vmatpush.msra.mxu1 %v4836_v41  ;;  %v4839_v14 = vld [vmem:[#allocation2 + $0x160] sm:$0xff] }
 0x4ab   :  { %2138 = vmatpush.msra.mxu3 %v4830_v15  ;;  %2160 = vmatpush.msra.mxu0 %v4833_v32  ;;  %5775 = vst [vmem:[#allocation35_spill] sm:$0xff] %v4836_v41  ;;  %v4848_v15 = vld [vmem:[#allocation2 + $0x178] sm:$0xff] }
 0x4ac   :  { %5776 = vst [vmem:[#allocation36_spill] sm:$0xff] %v4839_v14  ;;  %2117 = vmatpush.msra.mxu2 %v4839_v14  ;;  %2183 = vmatpush.msra.mxu1 %v4848_v15  ;;  %v4855_v14 = vld [vmem:[#allocation2 + $0x138] sm:$0xff] }
 0x4ad   :  { %2139 = vmatpush.msra.mxu3 %v4842_v30  ;;  %2161 = vmatpush.msra.mxu0 %v4845_v10  ;;  %5779 = vst [vmem:[#allocation40_spill] sm:$0xff] %v4848_v15  ;;  %v4861_v10 = vld [vmem:[#allocation2 + $0x148] sm:$0xff]  ;;  %v5784_v15 = vld [vmem:[#allocation24_spill] sm:$0xff] }
 0x4ae   :  { %v1677_v48 = vpop.f32.mrf.mxu2  ;;  %v1698_v61 = vpop.f32.mrf.mxu3  ;;  %2118 = vmatpush.msra.mxu2 %v4852_v11  ;;  %5781 = vst [vmem:[#allocation41_spill] sm:$0xff] %v4855_v14  ;;  %2184 = vmatpush.msra.mxu1 %v4861_v10  ;;  %v4871_v11 = vld [vmem:[#allocation2 + $0x110] sm:$0xff] }
 0x4af   :  { %v1699_v41 = vadd.f32 %v1698_v61, %v3889_v34  ;;  %v1718_v32 = vpop.f32.mrf.mxu0  ;;  %v1740_v4 = vpop.f32.mrf.mxu1  ;;  %2140 = vmatpush.msra.mxu3 %v4855_v14  ;;  %v4858_v48 = vld [vmem:[#allocation2 + $0x140] sm:$0xff]  ;;  %5783 = vst [vmem:[#allocation31_spill] sm:$0xff] %v4861_v10  ;;  %v4874_v14 = vld [vmem:[#allocation2 + $0x118] sm:$0xff]  ;;  %v4877_v10 = vld [vmem:[#allocation2 + $0xd0] sm:$0xff] }
 0x4b0   :  { %5782 = vst [vmem:[#allocation42_spill] sm:$0xff] %v4858_v48  ;;  %2162 = vmatpush.msra.mxu0 %v4858_v48  ;;  %v4865_v32 = vld [vmem:[#allocation2 + $0x100] sm:$0xff]  ;;  %v4868_v4 = vld [vmem:[#allocation2 + $0x108] sm:$0xff]  ;;  %2185 = vmatpush.msra.mxu1 %v4874_v14 }
 0x4b1   :  { %v1792_v61 = vadd.f32 %v1699_v41, %v5784_v15  ;;  %5785 = vst [vmem:[#allocation48_spill] sm:$0xff] %v4865_v32  ;;  %2119 = vmatpush.msra.mxu2 %v4865_v32  ;;  %2141 = vmatpush.msra.mxu3 %v4868_v4  ;;  %v4880_v15 = vld [vmem:[#allocation2 + $0xd8] sm:$0xff]  ;;  %v4883_v41 = vld [vmem:[#allocation2 + $0xe0] sm:$0xff]  ;;  %v4921_v32 = vld [vmem:[#allocation2 + $0x50] sm:$0xff] }
 0x4b2   :  { %5786 = vst [vmem:[#allocation43_spill] sm:$0xff] %v4868_v4  ;;  %2163 = vmatpush.msra.mxu0 %v4871_v11  ;;  %v4886_v4 = vld [vmem:[#allocation2 + $0xe8] sm:$0xff] }
 0x4b3   :  { %5787 = vst [vmem:[#allocation44_spill] sm:$0xff] %v4871_v11  ;;  %v2634_v48 = vmul.f32 -1.442695, %v1792_v61  ;;  %2120 = vmatpush.msra.mxu2 %v4877_v10  ;;  %2142 = vmatpush.msra.mxu3 %v4880_v15  ;;  %v4889_v11 = vld [vmem:[#allocation2 + $0xa0] sm:$0xff]  ;;  %v4892_v61 = vld [vmem:[#allocation2 + $0xa8] sm:$0xff] }
 0x4b4   :  { %5788 = vst [vmem:[#allocation34_spill] sm:$0xff] %v4874_v14  ;;  %2164 = vmatpush.msra.mxu0 %v4883_v41  ;;  %2186 = vmatpush.msra.mxu1 %v4886_v4  ;;  %v4901_v14 = vld [vmem:[#allocation2 + $0x70] sm:$0xff] }
 0x4b5   :  { %5789 = vst [vmem:[#allocation49_spill] sm:$0xff] %v4877_v10  ;;  %2750 = vpow2.f32 %v2634_v48  ;;  %2121 = vmatpush.msra.mxu2 %v4889_v11  ;;  %2143 = vmatpush.msra.mxu3 %v4892_v61  ;;  %v4895_v10 = vld [vmem:[#allocation2 + $0xb0] sm:$0xff]  ;;  %v4904_v48 = vld [vmem:[#allocation2 + $0x78] sm:$0xff] }
 0x4b6   :  { %5790 = vst [vmem:[#allocation52_spill] sm:$0xff] %v4880_v15  ;;  %2165 = vmatpush.msra.mxu0 %v4895_v10  ;;  %v4898_v15 = vld [vmem:[#allocation2 + $0xb8] sm:$0xff] }
 0x4b7   :  { %5791 = vst [vmem:[#allocation53_spill] sm:$0xff] %v4883_v41  ;;  %2187 = vmatpush.msra.mxu1 %v4898_v15  ;;  %v1720_v41 = vpop.f32.mrf.mxu0  ;;  %2122 = vmatpush.msra.mxu2 %v4901_v14 }
 0x4b8   :  { %5792 = vst [vmem:[#allocation50_spill] sm:$0xff] %v4886_v4  ;;  %2144 = vmatpush.msra.mxu3 %v4904_v48  ;;  %v4917_v4 = vld [vmem:[#allocation2 + $0x48] sm:$0xff] }
 0x4b9   :  { %5793 = vst [vmem:[#allocation59_spill] sm:$0xff] %v4889_v11  ;;  %v1721_v11 = vadd.f32 %v1720_v41, %v5719_v44  ;;  %v4924_v41 = vld [vmem:[#allocation2 + $0x58] sm:$0xff] }
 0x4ba   :  { %5794 = vst [vmem:[#allocation76_spill] sm:$0xff] %v4892_v61  ;;  %v4908_v61 = vld [vmem:[#allocation2 + $0x80] sm:$0xff]  ;;  %2145 = vmatpush.msra.mxu3 %v4917_v4 }
 0x4bb   :  { %5795 = vst [vmem:[#allocation79_spill] sm:$0xff] %v4895_v10  ;;  %2166 = vmatpush.msra.mxu0 %v4908_v61  ;;  %v4911_v10 = vld [vmem:[#allocation2 + $0x88] sm:$0xff]  ;;  %v2751_v44 = vpop.eup %2750 }
 0x4bc   :  { %5796 = vst [vmem:[#allocation80_spill] sm:$0xff] %v4898_v15  ;;  %2188 = vmatpush.msra.mxu1 %v4911_v10  ;;  %v4914_v15 = vld [vmem:[#allocation2 + $0x40] sm:$0xff] }
 0x4bd   :  { %5797 = vst [vmem:[#allocation81_spill] sm:$0xff] %v4901_v14  ;;  %2123 = vmatpush.msra.mxu2 %v4914_v15  ;;  %v5803_v14 = vld [vmem:[#allocation70_spill] sm:$0xff]  ;;  %2167 = vmatpush.msra.mxu0 %v4921_v32 }
 0x4be   :  { %5798 = vst [vmem:[#allocation82_spill] sm:$0xff] %v4904_v48  ;;  %v1812_v48 = vadd.f32 %v1721_v11, %v5803_v14  ;;  %2189 = vmatpush.msra.mxu1 %v4924_v41  ;;  %v4933_v11 = vld [vmem:[#allocation2 + $0x20] sm:$0xff]  ;;  %v4936_v14 = vld [vmem:[#allocation2 + $0x28] sm:$0xff] }
 0x4bf   :  { %5799 = vst [vmem:[#allocation83_spill] sm:$0xff] %v4908_v61  ;;  %2168 = vmatpush.msra.mxu0 %v4933_v11 }
 0x4c0   :  { %5800 = vst [vmem:[#allocation84_spill] sm:$0xff] %v4911_v10  ;;  %v4927_v10 = vld [vmem:[#allocation2 + $0x10] sm:$0xff]  ;;  %v2635_v61 = vmul.f32 -1.442695, %v1812_v48  ;;  %2190 = vmatpush.msra.mxu1 %v4936_v14  ;;  %v1742_v48 = vpop.f32.mrf.mxu1 }
 0x4c1   :  { %5801 = vst [vmem:[#allocation85_spill] sm:$0xff] %v4914_v15  ;;  %2124 = vmatpush.msra.mxu2 %v4927_v10  ;;  %v4930_v15 = vld [vmem:[#allocation2 + $0x18] sm:$0xff]  ;;  %v1743_v37 = vadd.f32 %v1742_v48, %v5677_v27 }
 0x4c2   :  { %5802 = vst [vmem:[#allocation86_spill] sm:$0xff] %v4917_v4  ;;  %2146 = vmatpush.msra.mxu3 %v4930_v15  ;;  %v1796_v4 = vadd.f32 1.0, %v2751_v44 }
 0x4c3   :  { %5804 = vst [vmem:[#allocation72_spill] sm:$0xff] %v4921_v32 }
 0x4c4   :  { %5805 = vst [vmem:[#allocation87_spill] sm:$0xff] %v4924_v41  ;;  %2752 = vrcp.f32 %v1796_v4  ;;  %v1808_v55 = vand.u32 2147483648, %v1796_v4  ;;  %v1806_v44 = vand.u32 2147483647, %v1796_v4  ;;  %vm1802_vm3 = vweird.f32 %v1796_v4 }
 0x4c5   :  { %5806 = vst [vmem:[#allocation88_spill] sm:$0xff] %v4927_v10  ;;  %2754 = vpow2.f32 %v2635_v61 }
 0x4c6   :  { %5807 = vst [vmem:[#allocation89_spill] sm:$0xff] %v4930_v15  ;;  %vm1807_vm5 = vcmp.eq.f32.partialorder %v1806_v44, 8.507059e+37 }
 0x4c7   :  { %5808 = vst [vmem:[#allocation90_spill] sm:$0xff] %v4933_v11  ;;  %v1809_v11 = vor.u32 1.1754944e-38, %v1808_v55 }
 0x4c8   :  { %5809 = vst [vmem:[#allocation91_spill] sm:$0xff] %v4936_v14 }
 0x4ca   :  { %v2753_v41 = vpop.eup %2752 }
 0x4cb   :  { %v2755_v32 = vpop.eup %2754  ;;  %v1798_v30 = vmul.f32 %v2753_v41, %v1796_v4  ;;  %vm1803_vm2 = vweird.f32 %v2753_v41 }
 0x4cc   :  { %v1816_v10 = vadd.f32 1.0, %v2755_v32  ;;  %vm1804_vm4 = vmor %vm1802_vm3, %vm1803_vm2 }
 0x4cd   :  { %v1799_v34 = vsub.f32 1.0, %v1798_v30  ;;  %v5810_v30 = vld [vmem:[#allocation71_spill] sm:$0xff] }
 0x4ce   :  { %2756 = vrcp.f32 %v1816_v10  ;;  %v1828_v52 = vand.u32 2147483648, %v1816_v10  ;;  %v1826_v21 = vand.u32 2147483647, %v1816_v10  ;;  %vm1822_vm7 = vweird.f32 %v1816_v10 }
 0x4cf   :  { %v1800_v15 = vmul.f32 %v2753_v41, %v1799_v34 }
 0x4d0   :  { %v1829_v55 = vor.u32 1.1754944e-38, %v1828_v52  ;;  %vm1827_vm9 = vcmp.eq.f32.partialorder %v1826_v21, 8.507059e+37 }
 0x4d1   :  { %v1801_v47 = vadd.f32 %v2753_v41, %v1800_v15 }
 0x4d3   :  { %v1805_v14 = vsel %vm1804_vm4, %v2753_v41, %v1801_v47 }
 0x4d4   :  { %v2757_v61 = vpop.eup %2756  ;;  %v1810_v7 = vsel %vm1807_vm5, %v1809_v11, %v1805_v14 }
 0x4d5   :  { %v1818_v36 = vmul.f32 %v2757_v61, %v1816_v10  ;;  %v1832_v51 = vmul.f32 %v1810_v7, %v1743_v37  ;;  %vm1823_vm6 = vweird.f32 %v2757_v61 }
 0x4d6   :  { %vm1824_vm8 = vmor %vm1822_vm7, %vm1823_vm6 }
 0x4d7   :  { %v1819_v32 = vsub.f32 1.0, %v1818_v36  ;;  %v1833_v19 = vadd.f32 %v1832_v51, %v5810_v30 }
 0x4d9   :  { %v1820_v34 = vmul.f32 %v2757_v61, %v1819_v32  ;;  %2758 = vtanh.f32 %v1833_v19  ;;  %v5813_v19 = vld [vmem:[#allocation19_spill] sm:$0xff] }
 0x4db   :  { %v1821_v4 = vadd.f32 %v2757_v61, %v1820_v34 }
 0x4dd   :  { %v1825_v15 = vsel %vm1824_vm8, %v2757_v61, %v1821_v4  ;;  %v5815_v4 = vld [vmem:[#allocation57_spill] sm:$0xff] }
 0x4de   :  { %v1830_v47 = vsel %vm1827_vm9, %v1829_v55, %v1825_v15  ;;  %v5816_v55 = vld [vmem:[#allocation54_spill] sm:$0xff]  ;;  %v5817_v15 = vld [vmem:[#allocation21_spill] sm:$0xff] }
 0x4df   :  { %v2759_v41 = vpop.eup %2758  ;;  %v1835_v44 = vsub.f32 1.0, %v1830_v47  ;;  %v1837_v7 = vmul.f32 %v1830_v47, %v4616_v60  ;;  %v5818_v47 = vld [vmem:[#allocation22_spill] sm:$0xff] }
 0x4e1   :  { %v1836_v11 = vmul.f32 %v2759_v41, %v1835_v44  ;;  %v5819_v41 = vld [vmem:[#allocation23_spill] sm:$0xff]  ;;  %v5825_v44 = vld [vmem:[#allocation16_spill] sm:$0xff] }
 0x4e3   :  { %v4942_v36 = vadd.f32 %v1837_v7, %v1836_v11  ;;  %v5826_v11 = vld [vmem:[#allocation18_spill] sm:$0xff]  ;;  %v5827_v7 = vld [vmem:[#allocation20_spill] sm:$0xff] }
 0x4e5   :  { %2524 = vst [vmem:[%s5154_s6 + $0x38] sm:$0xff] %v4942_v36  ;;  %1858 = vmatmul.f32.gmra.mxu2 %v4942_v36  ;;  %1880 = vmatmul.f32.gmra.mxu3 %v4942_v36 }
 0x4e6   :  { %1902 = vmatmul.f32.gmra.mxu0 %v4942_v36  ;;  %1923 = vmatmul.f32.gmra.mxu1 %v4942_v36 }
 0x4ed   :  { %1943 = vmatmul.f32.vlgmr.msrb.gmra.mxu2 %v4733_v3  ;;  %1965 = vmatmul.f32.vlgmr.msrb.gmra.mxu3 %v4733_v3 }
 0x4ee   :  { %2291 = vmatpush.msrb.mxu2 %v4628_v38  ;;  %2313 = vmatpush.msrb.mxu3 %v4631_v24 }
 0x4f0   :  { %2292 = vmatpush.msrb.mxu2 %v4634_v42  ;;  %2314 = vmatpush.msrb.mxu3 %v4637_v18 }
 0x4f2   :  { %2293 = vmatpush.msrb.mxu2 %v4640_v50  ;;  %2315 = vmatpush.msrb.mxu3 %v4643_v46  ;;  %v5811_v50 = vld [vmem:[#allocation25_spill] sm:$0xff] }
 0x4f4   :  { %2294 = vmatpush.msrb.mxu2 %v4646_v57  ;;  %2316 = vmatpush.msrb.mxu3 %v4649_v2  ;;  %v5812_v57 = vld [vmem:[#allocation28_spill] sm:$0xff] }
 0x4f5   :  { %1945 = vmatmul.f32.gmra.mxu2 %v4942_v36  ;;  %1967 = vmatmul.f32.gmra.mxu3 %v4942_v36 }
 0x4f6   :  { %2295 = vmatpush.msrb.mxu2 %v4654_v13  ;;  %2317 = vmatpush.msrb.mxu3 %v4657_v35 }
 0x4f8   :  { %2296 = vmatpush.msrb.mxu2 %v4660_v29  ;;  %2318 = vmatpush.msrb.mxu3 %v4663_v54 }
 0x4fa   :  { %2297 = vmatpush.msrb.mxu2 %v4666_v16  ;;  %2319 = vmatpush.msrb.mxu3 %v4669_v56 }
 0x4fc   :  { %2298 = vmatpush.msrb.mxu2 %v4672_v6  ;;  %2320 = vmatpush.msrb.mxu3 %v4675_v17 }
 0x4fe   :  { %2299 = vmatpush.msrb.mxu2 %v4678_v62  ;;  %2321 = vmatpush.msrb.mxu3 %v4681_v0 }
 0x500   :  { %2300 = vmatpush.msrb.mxu2 %v4684_v9  ;;  %2322 = vmatpush.msrb.mxu3 %v4687_v1 }
 0x502   :  { %2301 = vmatpush.msrb.mxu2 %v4690_v22  ;;  %2323 = vmatpush.msrb.mxu3 %v4693_v8 }
 0x504   :  { %2302 = vmatpush.msrb.mxu2 %v4696_v25  ;;  %2324 = vmatpush.msrb.mxu3 %v4699_v26 }
 0x506   :  { %2303 = vmatpush.msrb.mxu2 %v4702_v39  ;;  %2325 = vmatpush.msrb.mxu3 %v4705_v31 }
 0x508   :  { %2304 = vmatpush.msrb.mxu2 %v4708_v12  ;;  %2326 = vmatpush.msrb.mxu3 %v4711_v58  ;;  %v1922_v60 = vpop.f32.mrf.mxu1  ;;  %v1900_v26 = vpop.f32.mrf.mxu0 }
 0x509   :  { %v1901_v58 = vadd.f32 %v1900_v26, %v3884_v33  ;;  %v5828_v60 = vld [vmem:[#allocation66_spill] sm:$0xff] }
 0x50a   :  { %2305 = vmatpush.msrb.mxu2 %v4714_v20  ;;  %2327 = vmatpush.msrb.mxu3 %v4717_v53 }
 0x50c   :  { %2306 = vmatpush.msrb.mxu2 %v4720_v5  ;;  %2328 = vmatpush.msrb.mxu3 %v4723_v59 }
 0x50d   :  { %v1856_v38 = vpop.f32.mrf.mxu2  ;;  %v1878_v24 = vpop.f32.mrf.mxu3 }
 0x50e   :  { %v1857_v42 = vadd.f32 %v1856_v38, %v5684_v28  ;;  %v1879_v18 = vadd.f32 %v1878_v24, %v5685_v43  ;;  %v5829_v38 = vld [vmem:[#allocation67_spill] sm:$0xff]  ;;  %v5830_v24 = vld [vmem:[#allocation9_spill] sm:$0xff] }
 0x510   :  { %v1971_v46 = vadd.f32 %v1857_v42, %v5811_v50  ;;  %v1991_v2 = vadd.f32 %v1879_v18, %v5812_v57  ;;  %v5831_v42 = vld [vmem:[#allocation11_spill] sm:$0xff]  ;;  %v5832_v18 = vld [vmem:[#allocation8_spill] sm:$0xff] }
 0x511   :  { %v5833_v50 = vld [vmem:[#allocation15_spill] sm:$0xff] }
 0x512   :  { %v2636_v13 = vmul.f32 -1.442695, %v1971_v46  ;;  %v2637_v35 = vmul.f32 -1.442695, %v1991_v2  ;;  %v5834_v46 = vld [vmem:[#allocation26_spill] sm:$0xff] }
 0x514   :  { %2760 = vpow2.f32 %v2636_v13  ;;  %v5835_v13 = vld [vmem:[#allocation27_spill] sm:$0xff] }
 0x515   :  { %2762 = vpow2.f32 %v2637_v35  ;;  %v5836_v35 = vld [vmem:[#allocation29_spill] sm:$0xff] }
 0x51a   :  { %v2761_v29 = vpop.eup %2760 }
 0x51b   :  { %v2763_v54 = vpop.eup %2762  ;;  %v1975_v16 = vadd.f32 1.0, %v2761_v29  ;;  %v5837_v29 = vld [vmem:[#allocation45_spill] sm:$0xff] }
 0x51c   :  { %v1995_v56 = vadd.f32 1.0, %v2763_v54 }
 0x51d   :  { %2764 = vrcp.f32 %v1975_v16  ;;  %v1987_v1 = vand.u32 2147483648, %v1975_v16  ;;  %v1985_v25 = vand.u32 2147483647, %v1975_v16  ;;  %vm1981_vm11 = vweird.f32 %v1975_v16 }
 0x51e   :  { %2766 = vrcp.f32 %v1995_v56  ;;  %v2007_v21 = vand.u32 2147483648, %v1995_v56  ;;  %vm2001_vm15 = vweird.f32 %v1995_v56  ;;  %v2005_v52 = vand.u32 2147483647, %v1995_v56 }
 0x51f   :  { %v1988_v12 = vor.u32 1.1754944e-38, %v1987_v1  ;;  %vm1986_vm13 = vcmp.eq.f32.partialorder %v1985_v25, 8.507059e+37  ;;  %v5844_v1 = vld [vmem:[#allocation38_spill] sm:$0xff] }
 0x520   :  { %v2008_v10 = vor.u32 1.1754944e-38, %v2007_v21  ;;  %vm2006_vm1 = vcmp.eq.f32.partialorder %v2005_v52, 8.507059e+37  ;;  %v5854_v21 = vld [vmem:[#allocation34_spill] sm:$0xff]  ;;  %v5855_v52 = vld [vmem:[#allocation49_spill] sm:$0xff] }
 0x523   :  { %v2765_v6 = vpop.eup %2764 }
 0x524   :  { %v2767_v17 = vpop.eup %2766  ;;  %v1977_v62 = vmul.f32 %v2765_v6, %v1975_v16  ;;  %vm1982_vm10 = vweird.f32 %v2765_v6  ;;  %v5838_v16 = vld [vmem:[#allocation30_spill] sm:$0xff] }
 0x525   :  { %v1997_v0 = vmul.f32 %v2767_v17, %v1995_v56  ;;  %vm1983_vm12 = vmor %vm1981_vm11, %vm1982_vm10  ;;  %vm2002_vm14 = vweird.f32 %v2767_v17  ;;  %v5839_v56 = vld [vmem:[#allocation32_spill] sm:$0xff] }
 0x526   :  { %v1978_v9 = vsub.f32 1.0, %v1977_v62  ;;  %vm2003_vm0 = vmor %vm2001_vm15, %vm2002_vm14  ;;  %v5842_v62 = vld [vmem:[#allocation55_spill] sm:$0xff] }
 0x527   :  { %v1998_v22 = vsub.f32 1.0, %v1997_v0 }
 0x528   :  { %v1979_v8 = vmul.f32 %v2765_v6, %v1978_v9  ;;  %v5843_v9 = vld [vmem:[#allocation36_spill] sm:$0xff] }
 0x529   :  { %v1999_v39 = vmul.f32 %v2767_v17, %v1998_v22  ;;  %v5845_v22 = vld [vmem:[#allocation39_spill] sm:$0xff] }
 0x52a   :  { %v1980_v31 = vadd.f32 %v2765_v6, %v1979_v8  ;;  %v5846_v8 = vld [vmem:[#allocation40_spill] sm:$0xff] }
 0x52b   :  { %v2000_v5 = vadd.f32 %v2767_v17, %v1999_v39 }
 0x52c   :  { %v1984_v20 = vsel %vm1983_vm12, %v2765_v6, %v1980_v31  ;;  %v5840_v6 = vld [vmem:[#allocation33_spill] sm:$0xff]  ;;  %v5847_v31 = vld [vmem:[#allocation47_spill] sm:$0xff] }
 0x52d   :  { %v1989_v53 = vsel %vm1986_vm13, %v1988_v12, %v1984_v20  ;;  %v2004_v37 = vsel %vm2003_vm0, %v2767_v17, %v2000_v5  ;;  %v5841_v17 = vld [vmem:[#allocation35_spill] sm:$0xff]  ;;  %v5848_v12 = vld [vmem:[#allocation41_spill] sm:$0xff] }
 0x52e   :  { %v2011_v59 = vmul.f32 %v1989_v53, %v1901_v58  ;;  %v2009_v14 = vsel %vm2006_vm1, %v2008_v10, %v2004_v37  ;;  %v5849_v58 = vld [vmem:[#allocation42_spill] sm:$0xff]  ;;  %v5850_v20 = vld [vmem:[#allocation31_spill] sm:$0xff]  ;;  %v5851_v53 = vld [vmem:[#allocation48_spill] sm:$0xff] }
 0x52f   :  { %v2014_v48 = vsub.f32 1.0, %v2009_v14  ;;  %v2016_v30 = vmul.f32 %v2009_v14, %v4733_v3  ;;  %v5814_v3 = vld [vmem:[#allocation56_spill] sm:$0xff]  ;;  %v5852_v5 = vld [vmem:[#allocation43_spill] sm:$0xff]  ;;  %v5858_v37 = vld [vmem:[#allocation50_spill] sm:$0xff] }
 0x530   :  { %v2012_v51 = vadd.f32 %v2011_v59, %v5813_v19  ;;  %v5853_v59 = vld [vmem:[#allocation44_spill] sm:$0xff]  ;;  %v5859_v10 = vld [vmem:[#allocation59_spill] sm:$0xff] }
 0x531   :  { %v5856_v19 = vld [vmem:[#allocation52_spill] sm:$0xff] }
 0x532   :  { %2768 = vtanh.f32 %v2012_v51  ;;  %v5857_v51 = vld [vmem:[#allocation53_spill] sm:$0xff]  ;;  %v5860_v14 = vld [vmem:[#allocation76_spill] sm:$0xff] }
 0x538   :  { %v2769_v61 = vpop.eup %2768 }
 0x539   :  { %v2015_v32 = vmul.f32 %v2769_v61, %v2014_v48  ;;  %v5861_v48 = vld [vmem:[#allocation79_spill] sm:$0xff]  ;;  %v5862_v61 = vld [vmem:[#allocation80_spill] sm:$0xff] }
 0x53b   :  { %v4995_v34 = vadd.f32 %v2016_v30, %v2015_v32 }
 0x53d   :  { %2527 = vst [vmem:[%s5154_s6 + $0x50] sm:$0xff] %v4995_v34  ;;  %2081 = vmatmul.f32.vlgmr.msrb.gmra.mxu0 %v4995_v34  ;;  %2103 = vmatmul.f32.vlgmr.msrb.gmra.mxu1 %v4995_v34 }
 0x53e   :  { %2125 = vmatmul.f32.vlgmr.msra.gmra.mxu2 %v4995_v34  ;;  %2147 = vmatmul.f32.vlgmr.msra.gmra.mxu3 %v4995_v34 }
 0x53f   :  { %2335 = vmatpush.msrb.mxu0 %v4743_v63  ;;  %2357 = vmatpush.msrb.mxu1 %v4746_v23  ;;  %v5820_v63 = vld [vmem:[#allocation74_spill] sm:$0xff] }
 0x540   :  { %2379 = vmatpush.msra.mxu2 %v4749_v49  ;;  %2401 = vmatpush.msra.mxu3 %v4752_v45  ;;  %v5821_v23 = vld [vmem:[#allocation10_spill] sm:$0xff]  ;;  %v5822_v49 = vld [vmem:[#allocation75_spill] sm:$0xff]  ;;  %v5823_v45 = vld [vmem:[#allocation12_spill] sm:$0xff] }
 0x541   :  { %2336 = vmatpush.msrb.mxu0 %v4755_v40  ;;  %2358 = vmatpush.msrb.mxu1 %v5814_v3  ;;  %v5824_v40 = vld [vmem:[#allocation14_spill] sm:$0xff] }
 0x542   :  { %2380 = vmatpush.msra.mxu2 %v5815_v4  ;;  %2402 = vmatpush.msra.mxu3 %v5816_v55  ;;  %v5863_v4 = vld [vmem:[#allocation81_spill] sm:$0xff]  ;;  %v5864_v55 = vld [vmem:[#allocation82_spill] sm:$0xff] }
 0x543   :  { %2337 = vmatpush.msrb.mxu0 %v5817_v15  ;;  %2359 = vmatpush.msrb.mxu1 %v5818_v47  ;;  %v5865_v47 = vld [vmem:[#allocation83_spill] sm:$0xff] }
 0x544   :  { %2381 = vmatpush.msra.mxu2 %v5819_v41  ;;  %2403 = vmatpush.msra.mxu3 %v5820_v63  ;;  %v5866_v41 = vld [vmem:[#allocation84_spill] sm:$0xff]  ;;  %v5867_v63 = vld [vmem:[#allocation85_spill] sm:$0xff] }
 0x545   :  { %2338 = vmatpush.msrb.mxu0 %v5821_v23  ;;  %2360 = vmatpush.msrb.mxu1 %v5822_v49  ;;  %v5868_v23 = vld [vmem:[#allocation86_spill] sm:$0xff]  ;;  %v5869_v49 = vld [vmem:[#allocation72_spill] sm:$0xff] }
 0x546   :  { %2382 = vmatpush.msra.mxu2 %v5823_v45  ;;  %2404 = vmatpush.msra.mxu3 %v5824_v40  ;;  %v5870_v45 = vld [vmem:[#allocation87_spill] sm:$0xff]  ;;  %v5871_v40 = vld [vmem:[#allocation88_spill] sm:$0xff] }
 0x547   :  { %2339 = vmatpush.msrb.mxu0 %v5825_v44  ;;  %2361 = vmatpush.msrb.mxu1 %v5826_v11  ;;  %v5872_v44 = vld [vmem:[#allocation89_spill] sm:$0xff]  ;;  %v5873_v11 = vld [vmem:[#allocation90_spill] sm:$0xff] }
 0x548   :  { %2383 = vmatpush.msra.mxu2 %v5827_v7  ;;  %2405 = vmatpush.msra.mxu3 %v5828_v60  ;;  %v5874_v7 = vld [vmem:[#allocation91_spill] sm:$0xff] }
 0x549   :  { %2340 = vmatpush.msrb.mxu0 %v5829_v38  ;;  %2362 = vmatpush.msrb.mxu1 %v5830_v24  ;;  %v5875_v24 = vld [vmem:[#allocation78_spill] sm:$0xff] }
 0x54a   :  { %2384 = vmatpush.msra.mxu2 %v5831_v42  ;;  %2406 = vmatpush.msra.mxu3 %v5832_v18 }
 0x54b   :  { %2341 = vmatpush.msrb.mxu0 %v5833_v50  ;;  %2363 = vmatpush.msrb.mxu1 %v5834_v46  ;;  %v5876_v50 = vld [vmem:[#allocation68_spill] sm:$0xff] }
 0x54c   :  { %2385 = vmatpush.msra.mxu2 %v5835_v13  ;;  %2407 = vmatpush.msra.mxu3 %v5836_v35 }
 0x54d   :  { %2342 = vmatpush.msrb.mxu0 %v5838_v16  ;;  %2364 = vmatpush.msrb.mxu1 %v5839_v56 }
 0x54e   :  { %2386 = vmatpush.msra.mxu2 %v5840_v6  ;;  %2408 = vmatpush.msra.mxu3 %v5841_v17 }
 0x54f   :  { %2343 = vmatpush.msrb.mxu0 %v5843_v9  ;;  %2365 = vmatpush.msrb.mxu1 %v5844_v1 }
 0x550   :  { %2387 = vmatpush.msra.mxu2 %v5845_v22  ;;  %2409 = vmatpush.msra.mxu3 %v5846_v8 }
 0x551   :  { %2344 = vmatpush.msrb.mxu0 %v5847_v31  ;;  %2366 = vmatpush.msrb.mxu1 %v5848_v12 }
 0x552   :  { %2388 = vmatpush.msra.mxu2 %v5849_v58  ;;  %2410 = vmatpush.msra.mxu3 %v5850_v20 }
 0x553   :  { %2345 = vmatpush.msrb.mxu0 %v5851_v53  ;;  %2367 = vmatpush.msrb.mxu1 %v5852_v5 }
 0x554   :  { %2389 = vmatpush.msra.mxu2 %v5853_v59  ;;  %2411 = vmatpush.msra.mxu3 %v5854_v21 }
 0x555   :  { %2346 = vmatpush.msrb.mxu0 %v5855_v52  ;;  %2368 = vmatpush.msrb.mxu1 %v5856_v19 }
 0x556   :  { %2390 = vmatpush.msra.mxu2 %v5857_v51  ;;  %2412 = vmatpush.msra.mxu3 %v5858_v37 }
 0x557   :  { %2347 = vmatpush.msrb.mxu0 %v5859_v10  ;;  %2369 = vmatpush.msrb.mxu1 %v5860_v14 }
 0x558   :  { %2391 = vmatpush.msra.mxu2 %v5861_v48  ;;  %2413 = vmatpush.msra.mxu3 %v5862_v61 }
 0x559   :  { %2348 = vmatpush.msrb.mxu0 %v5863_v4  ;;  %2370 = vmatpush.msrb.mxu1 %v5864_v55 }
 0x55a   :  { %2392 = vmatpush.msra.mxu2 %v5865_v47  ;;  %2414 = vmatpush.msra.mxu3 %v5866_v41 }
 0x55b   :  { %2349 = vmatpush.msrb.mxu0 %v5867_v63  ;;  %2371 = vmatpush.msrb.mxu1 %v5868_v23 }
 0x55c   :  { %2393 = vmatpush.msra.mxu2 %v5869_v49  ;;  %2415 = vmatpush.msra.mxu3 %v5870_v45 }
 0x55d   :  { %2350 = vmatpush.msrb.mxu0 %v5871_v40  ;;  %2372 = vmatpush.msrb.mxu1 %v5872_v44 }
 0x55e   :  { %2394 = vmatpush.msra.mxu2 %v5873_v11  ;;  %2416 = vmatpush.msra.mxu3 %v5874_v7 }
 0x563   :  { %v1903_v57 = vpop.f32.mrf.mxu0  ;;  %v1924_v2 = vpop.f32.mrf.mxu1 }
 0x564   :  { %v1925_v54 = vadd.f32 %v1924_v2, %v5837_v29 }
 0x566   :  { %v2018_v0 = vadd.f32 %v1925_v54, %v5842_v62 }
 0x568   :  { %v2638_v25 = vmul.f32 -1.442695, %v2018_v0  ;;  %v1859_v26 = vpop.f32.mrf.mxu2  ;;  %v1881_v39 = vpop.f32.mrf.mxu3 }
 0x569   :  { %v5877_v26 = vld [vmem:[#allocation69_spill] sm:$0xff] }
 0x56a   :  { %2770 = vpow2.f32 %v2638_v25 }
 0x570   :  { %v2771_v32 = vpop.eup %2770  ;;  %v1944_v30 = vpop.f32.mrf.mxu2 }
 0x571   :  { %v1966_v3 = vpop.f32.mrf.mxu3  ;;  %v2022_v15 = vadd.f32 1.0, %v2771_v32  ;;  %v5878_v32 = vld [vmem:[#allocation60_spill] sm:$0xff] }
 0x572   :  { %v5879_v3 = vld [vmem:[#allocation61_spill] sm:$0xff] }
 0x573   :  { %2772 = vrcp.f32 %v2022_v15  ;;  %v2034_v54 = vand.u32 2147483648, %v2022_v15  ;;  %vm2028_vm3 = vweird.f32 %v2022_v15  ;;  %v2032_v16 = vand.u32 2147483647, %v2022_v15 }
 0x575   :  { %v2035_v0 = vor.u32 1.1754944e-38, %v2034_v54  ;;  %vm2033_vm5 = vcmp.eq.f32.partialorder %v2032_v16, 8.507059e+37 }
 0x578   :  { %v1946_v60 = vpop.f32.mrf.mxu2 }
 0x579   :  { %v2773_v38 = vpop.eup %2772  ;;  %v1947_v42 = vadd.f32 %v1946_v60, %v5875_v24  ;;  %v1968_v62 = vpop.f32.mrf.mxu3 }
 0x57a   :  { %v2024_v18 = vmul.f32 %v2773_v38, %v2022_v15  ;;  %vm2029_vm2 = vweird.f32 %v2773_v38  ;;  %v1969_v1 = vadd.f32 %v1968_v62, %v5677_v27  ;;  %v5880_v62 = vld [vmem:[#allocation58_spill] sm:$0xff] }
 0x57b   :  { %v2038_v46 = vadd.f32 %v1947_v42, %v5876_v50  ;;  %vm2030_vm4 = vmor %vm2028_vm3, %vm2029_vm2 }
 0x57c   :  { %v2025_v57 = vsub.f32 1.0, %v2024_v18 }
 0x57d   :  { %v2639_v2 = vmul.f32 -1.442695, %v2038_v46 }
 0x57e   :  { %v2026_v13 = vmul.f32 %v2773_v38, %v2025_v57 }
 0x57f   :  { %2774 = vpow2.f32 %v2639_v2 }
 0x580   :  { %v2027_v35 = vadd.f32 %v2773_v38, %v2026_v13 }
 0x582   :  { %v2031_v17 = vsel %vm2030_vm4, %v2773_v38, %v2027_v35 }
 0x583   :  { %v2036_v9 = vsel %vm2033_vm5, %v2035_v0, %v2031_v17 }
 0x584   :  { %v2058_v22 = vmul.f32 %v2036_v9, %v1969_v1 }
 0x585   :  { %v2775_v56 = vpop.eup %2774 }
 0x586   :  { %v2042_v6 = vadd.f32 1.0, %v2775_v56  ;;  %v2059_v39 = vadd.f32 %v2058_v22, %v5877_v26 }
 0x588   :  { %2776 = vrcp.f32 %v2042_v6  ;;  %v2054_v12 = vand.u32 2147483648, %v2042_v6  ;;  %v2052_v20 = vand.u32 2147483647, %v2042_v6  ;;  %vm2048_vm7 = vweird.f32 %v2042_v6 }
 0x589   :  { %2778 = vtanh.f32 %v2059_v39 }
 0x58a   :  { %v2055_v5 = vor.u32 1.1754944e-38, %v2054_v12  ;;  %vm2053_vm9 = vcmp.eq.f32.partialorder %v2052_v20, 8.507059e+37 }
 0x58e   :  { %v2777_v8 = vpop.eup %2776 }
 0x58f   :  { %v2044_v25 = vmul.f32 %v2777_v8, %v2042_v6  ;;  %vm2049_vm6 = vweird.f32 %v2777_v8  ;;  %v2779_v19 = vpop.eup %2778 }
 0x590   :  { %vm2050_vm8 = vmor %vm2048_vm7, %vm2049_vm6 }
 0x591   :  { %v2045_v31 = vsub.f32 1.0, %v2044_v25 }
 0x593   :  { %v2046_v58 = vmul.f32 %v2777_v8, %v2045_v31 }
 0x595   :  { %v2047_v53 = vadd.f32 %v2777_v8, %v2046_v58 }
 0x597   :  { %v2051_v59 = vsel %vm2050_vm8, %v2777_v8, %v2047_v53 }
 0x598   :  { %v2056_v21 = vsel %vm2053_vm9, %v2055_v5, %v2051_v59 }
 0x599   :  { %v2061_v52 = vsub.f32 1.0, %v2056_v21  ;;  %v2063_v37 = vmul.f32 %v2056_v21, %v4942_v36  ;;  %v5881_v21 = vld [vmem:[#allocation51_spill] sm:$0xff] }
 0x59b   :  { %v2062_v51 = vmul.f32 %v2779_v19, %v2061_v52 }
 0x59d   :  { %v5076_v10 = vadd.f32 %v2063_v37, %v2062_v51 }
 0x59f   :  { %2522 = vst [vmem:[%s5154_s6 + $0x28] sm:$0xff] %v5076_v10  ;;  %2084 = vmatmul.f32.gmra.mxu0 %v5076_v10  ;;  %2106 = vmatmul.f32.gmra.mxu1 %v5076_v10 }
 0x5a0   :  { %2128 = vmatmul.f32.gmra.mxu2 %v5076_v10  ;;  %2149 = vmatmul.f32.gmra.mxu3 %v5076_v10 }
 0x5a7   :  { %2169 = vmatmul.f32.vlgmr.msra.gmra.mxu0 %v4995_v34  ;;  %2191 = vmatmul.f32.vlgmr.msra.gmra.mxu1 %v4995_v34 }
 0x5af   :  { %2171 = vmatmul.f32.gmra.mxu0 %v5076_v10  ;;  %2193 = vmatmul.f32.gmra.mxu1 %v5076_v10 }
 0x5ba   :  { %v2082_v36 = vpop.f32.mrf.mxu0  ;;  %v2104_v14 = vpop.f32.mrf.mxu1 }
 0x5bb   :  { %v2083_v48 = vadd.f32 %v2082_v36, %v5684_v28  ;;  %v2105_v61 = vadd.f32 %v2104_v14, %v5685_v43  ;;  %v5882_v36 = vld [vmem:[#allocation64_spill] sm:$0xff] }
 0x5bd   :  { %v2197_v30 = vadd.f32 %v2083_v48, %v5878_v32  ;;  %v2217_v4 = vadd.f32 %v2105_v61, %v5879_v3 }
 0x5bf   :  { %v2640_v55 = vmul.f32 -1.442695, %v2197_v30  ;;  %v2641_v15 = vmul.f32 -1.442695, %v2217_v4 }
 0x5c1   :  { %2780 = vpow2.f32 %v2640_v55  ;;  %v2148_v47 = vpop.f32.mrf.mxu3  ;;  %v2126_v46 = vpop.f32.mrf.mxu2 }
 0x5c2   :  { %2782 = vpow2.f32 %v2641_v15  ;;  %v2127_v13 = vadd.f32 %v2126_v46, %v3884_v33 }
 0x5c7   :  { %v2781_v41 = vpop.eup %2780 }
 0x5c8   :  { %v2783_v63 = vpop.eup %2782  ;;  %v2201_v23 = vadd.f32 1.0, %v2781_v41 }
 0x5c9   :  { %v2221_v49 = vadd.f32 1.0, %v2783_v63 }
 0x5ca   :  { %2784 = vrcp.f32 %v2201_v23  ;;  %v2213_v38 = vand.u32 2147483648, %v2201_v23  ;;  %v2211_v18 = vand.u32 2147483647, %v2201_v23  ;;  %vm2207_vm11 = vweird.f32 %v2201_v23 }
 0x5cb   :  { %2786 = vrcp.f32 %v2221_v49  ;;  %v2233_v56 = vand.u32 2147483648, %v2221_v49  ;;  %vm2227_vm15 = vweird.f32 %v2221_v49  ;;  %v2231_v17 = vand.u32 2147483647, %v2221_v49 }
 0x5cc   :  { %v2214_v2 = vor.u32 1.1754944e-38, %v2213_v38  ;;  %vm2212_vm13 = vcmp.eq.f32.partialorder %v2211_v18, 8.507059e+37  ;;  %v5883_v18 = vld [vmem:[#allocation65_spill] sm:$0xff] }
 0x5cd   :  { %v2234_v1 = vor.u32 1.1754944e-38, %v2233_v56  ;;  %vm2232_vm1 = vcmp.eq.f32.partialorder %v2231_v17, 8.507059e+37 }
 0x5d0   :  { %v2785_v45 = vpop.eup %2784 }
 0x5d1   :  { %v2787_v40 = vpop.eup %2786  ;;  %v2203_v44 = vmul.f32 %v2785_v45, %v2201_v23  ;;  %vm2208_vm10 = vweird.f32 %v2785_v45 }
 0x5d2   :  { %v2223_v11 = vmul.f32 %v2787_v40, %v2221_v49  ;;  %vm2209_vm12 = vmor %vm2207_vm11, %vm2208_vm10  ;;  %vm2228_vm14 = vweird.f32 %v2787_v40 }
 0x5d3   :  { %v2204_v7 = vsub.f32 1.0, %v2203_v44  ;;  %vm2229_vm0 = vmor %vm2227_vm15, %vm2228_vm14 }
 0x5d4   :  { %v2224_v60 = vsub.f32 1.0, %v2223_v11 }
 0x5d5   :  { %v2205_v42 = vmul.f32 %v2785_v45, %v2204_v7 }
 0x5d6   :  { %v2225_v50 = vmul.f32 %v2787_v40, %v2224_v60 }
 0x5d7   :  { %v2206_v57 = vadd.f32 %v2785_v45, %v2205_v42 }
 0x5d8   :  { %v2226_v16 = vadd.f32 %v2787_v40, %v2225_v50 }
 0x5d9   :  { %v2210_v35 = vsel %vm2209_vm12, %v2785_v45, %v2206_v57 }
 0x5da   :  { %v2215_v54 = vsel %vm2212_vm13, %v2214_v2, %v2210_v35  ;;  %v2230_v9 = vsel %vm2229_vm0, %v2787_v40, %v2226_v16 }
 0x5db   :  { %v2237_v6 = vmul.f32 %v2215_v54, %v2127_v13  ;;  %v2235_v22 = vsel %vm2232_vm1, %v2234_v1, %v2230_v9 }
 0x5dc   :  { %v2240_v8 = vsub.f32 1.0, %v2235_v22  ;;  %v2242_v39 = vmul.f32 %v2235_v22, %v4995_v34 }
 0x5dd   :  { %v2238_v0 = vadd.f32 %v2237_v6, %v5880_v62 }
 0x5df   :  { %2788 = vtanh.f32 %v2238_v0 }
 0x5e5   :  { %v2789_v25 = vpop.eup %2788 }
 0x5e6   :  { %v2241_v26 = vmul.f32 %v2789_v25, %v2240_v8  ;;  %v5884_v25 = vld [vmem:[#allocation6_spill] sm:$0xff] }
 0x5e8   :  { %v5097_v31 = vadd.f32 %v2242_v39, %v2241_v26  ;;  %v5885_v39 = vld [vmem:[#allocation62_spill] sm:$0xff] }
 0x5ea   :  { %2529 = vst [vmem:[%s5154_s6 + $0x60] sm:$0xff] %v5097_v31  ;;  %2307 = vmatmul.f32.vlgmr.msrb.gmra.mxu2 %v5097_v31  ;;  %2329 = vmatmul.f32.vlgmr.msrb.gmra.mxu3 %v5097_v31 }
 0x5eb   :  { %2351 = vmatmul.f32.vlgmr.msrb.gmra.mxu0 %v5097_v31  ;;  %2373 = vmatmul.f32.vlgmr.msrb.gmra.mxu1 %v5097_v31 }
 0x61c   :  { %v2085_v12 = vpop.f32.mrf.mxu0  ;;  %v2107_v58 = vpop.f32.mrf.mxu1 }
 0x623   :  { %v2129_v20 = vpop.f32.mrf.mxu2  ;;  %v2150_v53 = vpop.f32.mrf.mxu3 }
 0x624   :  { %v2151_v34 = vadd.f32 %v2150_v53, %v5837_v29  ;;  %v2170_v5 = vpop.f32.mrf.mxu0  ;;  %v2192_v59 = vpop.f32.mrf.mxu1 }
 0x626   :  { %v2244_v52 = vadd.f32 %v2151_v34, %v5881_v21 }
 0x628   :  { %v2642_v19 = vmul.f32 -1.442695, %v2244_v52 }
 0x62a   :  { %2790 = vpow2.f32 %v2642_v19 }
 0x62c   :  { %v2172_v51 = vpop.f32.mrf.mxu0  ;;  %v2194_v23 = vpop.f32.mrf.mxu1 }
 0x62d   :  { %v2173_v37 = vadd.f32 %v2172_v51, %v5875_v24  ;;  %v2195_v40 = vadd.f32 %v2194_v23, %v5677_v27  ;;  %v5886_v23 = vld [vmem:[#allocation5_spill] sm:$0xff] }
 0x62f   :  { %v2264_v14 = vadd.f32 %v2173_v37, %v5882_v36 }
 0x630   :  { %v2791_v48 = vpop.eup %2790 }
 0x631   :  { %v2248_v61 = vadd.f32 1.0, %v2791_v48  ;;  %v2643_v32 = vmul.f32 -1.442695, %v2264_v14 }
 0x633   :  { %2792 = vrcp.f32 %v2248_v61  ;;  %v2260_v47 = vand.u32 2147483648, %v2248_v61  ;;  %v2258_v63 = vand.u32 2147483647, %v2248_v61  ;;  %vm2254_vm3 = vweird.f32 %v2248_v61 }
 0x634   :  { %2794 = vpow2.f32 %v2643_v32 }
 0x635   :  { %v2261_v45 = vor.u32 1.1754944e-38, %v2260_v47  ;;  %vm2259_vm5 = vcmp.eq.f32.partialorder %v2258_v63, 8.507059e+37 }
 0x639   :  { %v2793_v30 = vpop.eup %2792 }
 0x63a   :  { %v2795_v3 = vpop.eup %2794  ;;  %v2250_v4 = vmul.f32 %v2793_v30, %v2248_v61  ;;  %vm2255_vm2 = vweird.f32 %v2793_v30 }
 0x63b   :  { %v2268_v55 = vadd.f32 1.0, %v2795_v3  ;;  %vm2256_vm4 = vmor %vm2254_vm3, %vm2255_vm2 }
 0x63c   :  { %v2251_v15 = vsub.f32 1.0, %v2250_v4 }
 0x63d   :  { %2796 = vrcp.f32 %v2268_v55  ;;  %v2280_v46 = vand.u32 2147483648, %v2268_v55  ;;  %v2278_v2 = vand.u32 2147483647, %v2268_v55  ;;  %vm2274_vm7 = vweird.f32 %v2268_v55 }
 0x63e   :  { %v2252_v41 = vmul.f32 %v2793_v30, %v2251_v15 }
 0x63f   :  { %v2281_v35 = vor.u32 1.1754944e-38, %v2280_v46  ;;  %vm2279_vm9 = vcmp.eq.f32.partialorder %v2278_v2, 8.507059e+37  ;;  %v5887_v46 = vld [vmem:[#allocation46_spill] sm:$0xff] }
 0x640   :  { %v2253_v49 = vadd.f32 %v2793_v30, %v2252_v41 }
 0x642   :  { %v2257_v44 = vsel %vm2256_vm4, %v2793_v30, %v2253_v49 }
 0x643   :  { %v2797_v11 = vpop.eup %2796  ;;  %v2262_v7 = vsel %vm2259_vm5, %v2261_v45, %v2257_v44 }
 0x644   :  { %v2270_v60 = vmul.f32 %v2797_v11, %v2268_v55  ;;  %v2284_v38 = vmul.f32 %v2262_v7, %v2195_v40  ;;  %vm2275_vm6 = vweird.f32 %v2797_v11 }
 0x645   :  { %vm2276_vm8 = vmor %vm2274_vm7, %vm2275_vm6 }
 0x646   :  { %v2271_v42 = vsub.f32 1.0, %v2270_v60  ;;  %v2285_v50 = vadd.f32 %v2284_v38, %v5883_v18 }
 0x648   :  { %v2272_v57 = vmul.f32 %v2797_v11, %v2271_v42  ;;  %2798 = vtanh.f32 %v2285_v50 }
 0x64a   :  { %v2273_v13 = vadd.f32 %v2797_v11, %v2272_v57 }
 0x64c   :  { %v2277_v54 = vsel %vm2276_vm8, %v2797_v11, %v2273_v13 }
 0x64d   :  { %v2282_v16 = vsel %vm2279_vm9, %v2281_v35, %v2277_v54 }
 0x64e   :  { %v2799_v56 = vpop.eup %2798  ;;  %v2287_v6 = vsub.f32 1.0, %v2282_v16  ;;  %v2289_v62 = vmul.f32 %v2282_v16, %v5076_v10 }
 0x650   :  { %v2288_v17 = vmul.f32 %v2799_v56, %v2287_v6 }
 0x652   :  { %v5114_v0 = vadd.f32 %v2289_v62, %v2288_v17 }
 0x654   :  { %2520 = vst [vmem:[%s5154_s6 + $0x18] sm:$0xff] %v5114_v0  ;;  %2310 = vmatmul.f32.gmra.mxu2 %v5114_v0  ;;  %2332 = vmatmul.f32.gmra.mxu3 %v5114_v0 }
 0x655   :  { %2354 = vmatmul.f32.gmra.mxu0 %v5114_v0  ;;  %2375 = vmatmul.f32.gmra.mxu1 %v5114_v0 }
 0x65c   :  { %2395 = vmatmul.f32.vlgmr.msra.gmra.mxu2 %v5097_v31  ;;  %2417 = vmatmul.f32.vlgmr.msra.gmra.mxu3 %v5097_v31 }
 0x664   :  { %2397 = vmatmul.f32.gmra.mxu2 %v5114_v0  ;;  %2419 = vmatmul.f32.gmra.mxu3 %v5114_v0 }
 0x668   :  { %v2374_v10 = vpop.f32.mrf.mxu1  ;;  %v2352_v48 = vpop.f32.mrf.mxu0 }
 0x669   :  { %v2353_v3 = vadd.f32 %v2352_v48, %v3884_v33 }
 0x66d   :  { %v2308_v9 = vpop.f32.mrf.mxu2  ;;  %v2330_v1 = vpop.f32.mrf.mxu3 }
 0x66e   :  { %v2309_v22 = vadd.f32 %v2308_v9, %v5684_v28  ;;  %v2331_v8 = vadd.f32 %v2330_v1, %v5685_v43  ;;  %v5888_v9 = vld [vmem:[#allocation7_spill] sm:$0xff] }
 0x670   :  { %v2423_v26 = vadd.f32 %v2309_v22, %v5884_v25  ;;  %v2443_v12 = vadd.f32 %v2331_v8, %v5885_v39 }
 0x672   :  { %v2644_v58 = vmul.f32 -1.442695, %v2423_v26  ;;  %v2645_v20 = vmul.f32 -1.442695, %v2443_v12 }
 0x674   :  { %2800 = vpow2.f32 %v2644_v58 }
 0x675   :  { %2802 = vpow2.f32 %v2645_v20 }
 0x67a   :  { %v2801_v53 = vpop.eup %2800 }
 0x67b   :  { %v2803_v34 = vpop.eup %2802  ;;  %v2427_v5 = vadd.f32 1.0, %v2801_v53 }
 0x67c   :  { %v2447_v59 = vadd.f32 1.0, %v2803_v34 }
 0x67d   :  { %2804 = vrcp.f32 %v2427_v5  ;;  %v2439_v43 = vand.u32 2147483648, %v2427_v5  ;;  %v2437_v14 = vand.u32 2147483647, %v2427_v5  ;;  %vm2433_vm11 = vweird.f32 %v2427_v5 }
 0x67e   :  { %2806 = vrcp.f32 %v2447_v59  ;;  %v2459_v41 = vand.u32 2147483648, %v2447_v59  ;;  %vm2453_vm15 = vweird.f32 %v2447_v59  ;;  %v2457_v63 = vand.u32 2147483647, %v2447_v59 }
 0x67f   :  { %v2440_v30 = vor.u32 1.1754944e-38, %v2439_v43  ;;  %vm2438_vm13 = vcmp.eq.f32.partialorder %v2437_v14, 8.507059e+37 }
 0x680   :  { %v2460_v40 = vor.u32 1.1754944e-38, %v2459_v41  ;;  %vm2458_vm1 = vcmp.eq.f32.partialorder %v2457_v63, 8.507059e+37 }
 0x683   :  { %v2805_v21 = vpop.eup %2804 }
 0x684   :  { %v2807_v52 = vpop.eup %2806  ;;  %v2429_v19 = vmul.f32 %v2805_v21, %v2427_v5  ;;  %vm2434_vm10 = vweird.f32 %v2805_v21 }
 0x685   :  { %v2449_v28 = vmul.f32 %v2807_v52, %v2447_v59  ;;  %vm2435_vm12 = vmor %vm2433_vm11, %vm2434_vm10  ;;  %vm2454_vm14 = vweird.f32 %v2807_v52 }
 0x686   :  { %v2430_v51 = vsub.f32 1.0, %v2429_v19  ;;  %vm2455_vm0 = vmor %vm2453_vm15, %vm2454_vm14  ;;  %v5889_v19 = vld [vmem:[#allocation63_spill] sm:$0xff] }
 0x687   :  { %v2450_v37 = vsub.f32 1.0, %v2449_v28 }
 0x688   :  { %v2431_v36 = vmul.f32 %v2805_v21, %v2430_v51 }
 0x689   :  { %v2451_v61 = vmul.f32 %v2807_v52, %v2450_v37 }
 0x68a   :  { %v2432_v32 = vadd.f32 %v2805_v21, %v2431_v36 }
 0x68b   :  { %v2452_v15 = vadd.f32 %v2807_v52, %v2451_v61 }
 0x68c   :  { %v2436_v4 = vsel %vm2435_vm12, %v2805_v21, %v2432_v32 }
 0x68d   :  { %v2441_v55 = vsel %vm2438_vm13, %v2440_v30, %v2436_v4  ;;  %v2456_v45 = vsel %vm2455_vm0, %v2807_v52, %v2452_v15 }
 0x68e   :  { %v2463_v47 = vmul.f32 %v2441_v55, %v2353_v3  ;;  %v2461_v44 = vsel %vm2458_vm1, %v2460_v40, %v2456_v45 }
 0x68f   :  { %v2466_v11 = vsub.f32 1.0, %v2461_v44  ;;  %v2468_v60 = vmul.f32 %v2461_v44, %v5097_v31 }
 0x690   :  { %v2464_v49 = vadd.f32 %v2463_v47, %v5886_v23 }
 0x692   :  { %2808 = vtanh.f32 %v2464_v49 }
 0x698   :  { %v2809_v7 = vpop.eup %2808 }
 0x699   :  { %v2467_v33 = vmul.f32 %v2809_v7, %v2466_v11 }
 0x69b   :  { %v2469_v38 = vadd.f32 %v2468_v60, %v2467_v33 }
 0x69d   :  { %2531 = vst [vmem:[%s5154_s6 + $0x70] sm:$0xff] %v2469_v38 }
 0x6d2   :  { %v2355_v42 = vpop.f32.mrf.mxu0  ;;  %v2376_v18 = vpop.f32.mrf.mxu1 }
 0x6d3   :  { %v2377_v50 = vadd.f32 %v2376_v18, %v5837_v29 }
 0x6d5   :  { %v2470_v57 = vadd.f32 %v2377_v50, %v5887_v46 }
 0x6d7   :  { %v2646_v2 = vmul.f32 -1.442695, %v2470_v57  ;;  %v2311_v13 = vpop.f32.mrf.mxu2  ;;  %v2333_v35 = vpop.f32.mrf.mxu3 }
 0x6d9   :  { %2810 = vpow2.f32 %v2646_v2 }
 0x6df   :  { %v2811_v54 = vpop.eup %2810  ;;  %v2396_v16 = vpop.f32.mrf.mxu2 }
 0x6e0   :  { %v2418_v56 = vpop.f32.mrf.mxu3  ;;  %v2474_v6 = vadd.f32 1.0, %v2811_v54 }
 0x6e2   :  { %2812 = vrcp.f32 %v2474_v6  ;;  %v2486_v26 = vand.u32 2147483648, %v2474_v6  ;;  %vm2480_vm3 = vweird.f32 %v2474_v6  ;;  %v2484_v39 = vand.u32 2147483647, %v2474_v6 }
 0x6e4   :  { %v2487_v34 = vor.u32 1.1754944e-38, %v2486_v26  ;;  %vm2485_vm5 = vcmp.eq.f32.partialorder %v2484_v39, 8.507059e+37 }
 0x6e7   :  { %v2398_v31 = vpop.f32.mrf.mxu2 }
 0x6e8   :  { %v2813_v17 = vpop.eup %2812  ;;  %v2399_v62 = vadd.f32 %v2398_v31, %v5875_v24  ;;  %v2420_v53 = vpop.f32.mrf.mxu3 }
 0x6e9   :  { %v2476_v10 = vmul.f32 %v2813_v17, %v2474_v6  ;;  %vm2481_vm2 = vweird.f32 %v2813_v17  ;;  %v2421_v5 = vadd.f32 %v2420_v53, %v5677_v27 }
 0x6ea   :  { %v2490_v1 = vadd.f32 %v2399_v62, %v5888_v9  ;;  %vm2482_vm4 = vmor %vm2480_vm3, %vm2481_vm2 }
 0x6eb   :  { %v2477_v22 = vsub.f32 1.0, %v2476_v10 }
 0x6ec   :  { %v2647_v29 = vmul.f32 -1.442695, %v2490_v1 }
 0x6ed   :  { %v2478_v8 = vmul.f32 %v2813_v17, %v2477_v22 }
 0x6ee   :  { %2814 = vpow2.f32 %v2647_v29 }
 0x6ef   :  { %v2479_v25 = vadd.f32 %v2813_v17, %v2478_v8 }
 0x6f1   :  { %v2483_v20 = vsel %vm2482_vm4, %v2813_v17, %v2479_v25 }
 0x6f2   :  { %v2488_v24 = vsel %vm2485_vm5, %v2487_v34, %v2483_v20 }
 0x6f3   :  { %v2510_v59 = vmul.f32 %v2488_v24, %v2421_v5 }
 0x6f4   :  { %v2815_v12 = vpop.eup %2814 }
 0x6f5   :  { %v2494_v58 = vadd.f32 1.0, %v2815_v12  ;;  %v2511_v28 = vadd.f32 %v2510_v59, %v5889_v19 }
 0x6f7   :  { %2816 = vrcp.f32 %v2494_v58  ;;  %v2506_v43 = vand.u32 2147483648, %v2494_v58  ;;  %v2504_v36 = vand.u32 2147483647, %v2494_v58  ;;  %vm2500_vm7 = vweird.f32 %v2494_v58 }
 0x6f8   :  { %2818 = vtanh.f32 %v2511_v28 }
 0x6f9   :  { %v2507_v48 = vor.u32 1.1754944e-38, %v2506_v43  ;;  %vm2505_vm9 = vcmp.eq.f32.partialorder %v2504_v36, 8.507059e+37 }
 0x6fd   :  { %v2817_v21 = vpop.eup %2816 }
 0x6fe   :  { %v2496_v52 = vmul.f32 %v2817_v21, %v2494_v58  ;;  %vm2501_vm6 = vweird.f32 %v2817_v21  ;;  %v2819_v27 = vpop.eup %2818 }
 0x6ff   :  { %vm2502_vm8 = vmor %vm2500_vm7, %vm2501_vm6 }
 0x700   :  { %v2497_v51 = vsub.f32 1.0, %v2496_v52 }
 0x702   :  { %v2498_v37 = vmul.f32 %v2817_v21, %v2497_v51 }
 0x704   :  { %v2499_v14 = vadd.f32 %v2817_v21, %v2498_v37 }
 0x706   :  { %v2503_v61 = vsel %vm2502_vm8, %v2817_v21, %v2499_v14 }
 0x707   :  { %v2508_v32 = vsel %vm2505_vm9, %v2507_v48, %v2503_v61 }
 0x708   :  { %v2513_v30 = vsub.f32 1.0, %v2508_v32  ;;  %v2515_v4 = vmul.f32 %v2508_v32, %v5114_v0 }
 0x70a   :  { %v2514_v3 = vmul.f32 %v2819_v27, %v2513_v30 }
 0x70c   :  { %v2516_v55 = vadd.f32 %v2515_v4, %v2514_v3 }
 0x70e   :  { %2518 = vst [vmem:[%s5154_s6 + $0x8] sm:$0xff] %v2516_v55 }
 0x70f   :  { %2537 = vsyncpa [#allocation3], 1 }

</bundles_post_ra>
